<compile_context>
chip_gen: v7x
topology: tpu7x:2x2x1
jax: 0.10.0
libtpu: 0.0.40
codegen_flags: <defaults>
</compile_context>

<pallas_src>
import jax
import jax.numpy as jnp
from jax.experimental import pallas as pl
from jax.experimental.pallas import tpu as pltpu

INPUT_DIM = 6
INPUT_DIM_PAD = 8          # sublane-friendly padding of the feature dim (extra cols are zero)
HIDDEN = 64
SEQ = 12
NUM_HEADS = 4
HEAD_DIM = HIDDEN // NUM_HEADS
OUT_DIM = 2
OUT_PAD = 128              # lane-dense padded output; sliced to OUT_DIM in the wrapper
MLP_HIDDEN = HIDDEN // 2


def led_kernel(x_ref,
               wih0_ref, whh0_ref, b0_ref,
               w1_ref, b1_ref,
               wq_ref, bq_ref, wkv_ref, bkv_ref,
               wo_ref, bo_ref,
               wm1_ref, bm1_ref, wm2_ref, bm2_ref,
               out_ref,
               h_scr):
    B = x_ref.shape[0]
    T = x_ref.shape[1]
    H = HIDDEN

    x = x_ref[...].astype(jnp.float32)                 # (B, T, INPUT_DIM_PAD)
    whh0 = whh0_ref[...]
    w1 = w1_ref[...]                                   # (2H, 4H) = [Wih1 ; Whh1]

    # ---- Hoisted: layer-0 input projection (no h-dependence) + bias, done once for all T ----
    xflat = x.reshape(B * T, INPUT_DIM_PAD)
    xproj = (jnp.dot(xflat, wih0_ref[...], preferred_element_type=jnp.float32)
             + b0_ref[...]).reshape(B, T, 4 * H)       # (B, T, 4H)

    # ---- Hoisted bias broadcast for layer 1 (JAX does not CSE broadcast_in_dim) ----
    b1b = jnp.broadcast_to(b1_ref[...], (B, 4 * H))

    h0 = jnp.zeros((B, H), jnp.float32)
    c0 = jnp.zeros((B, H), jnp.float32)
    h1 = jnp.zeros((B, H), jnp.float32)
    c1 = jnp.zeros((B, H), jnp.float32)

    # ---- 2-layer LSTM, statically unrolled over T (gate order i, f, g, o as in PyTorch) ----
    for t in range(T):
        # Layer 0: only the recurrent matmul stays on the serial path.
        g0 = xproj[:, t, :] + jnp.dot(h0, whh0, preferred_element_type=jnp.float32)
        i0 = jax.nn.sigmoid(g0[:, 0 * H:1 * H])
        f0 = jax.nn.sigmoid(g0[:, 1 * H:2 * H])
        gg0 = jnp.tanh(g0[:, 2 * H:3 * H])
        o0 = jax.nn.sigmoid(g0[:, 3 * H:4 * H])
        c0 = f0 * c0 + i0 * gg0
        h0 = o0 * jnp.tanh(c0)

        # Layer 1: single fused K=128 gate matmul.
        hcat = jnp.concatenate([h0, h1], axis=-1)                      # (B, 2H)
        g1 = jnp.dot(hcat, w1, preferred_element_type=jnp.float32) + b1b
        i1 = jax.nn.sigmoid(g1[:, 0 * H:1 * H])
        f1 = jax.nn.sigmoid(g1[:, 1 * H:2 * H])
        gg1 = jnp.tanh(g1[:, 2 * H:3 * H])
        o1 = jax.nn.sigmoid(g1[:, 3 * H:4 * H])
        c1 = f1 * c1 + i1 * gg1
        h1 = o1 * jnp.tanh(c1)

        # Stash second-layer hidden state; K/V projection is hoisted out of the loop.
        h_scr[:, t:t + 1, :] = h1[:, None, :]

    # ---- Fused K/V projection: one (B*T, H) x (H, 2H) matmul, lane-dense 128-wide ----
    h1_all = h_scr[...]                                                 # (B, T, H)
    kv = (jnp.dot(h1_all.reshape(B * T, H), wkv_ref[...],
                  preferred_element_type=jnp.float32)
          + bkv_ref[...]).reshape(B, T, 2 * H)                          # (B, T, 2H)
    k = kv[:, :, :H]
    v = kv[:, :, H:]

    # ---- Multi-head self-attention. Only the last query row is needed because the model
    #      only consumes attn_out[:, -1, :] and softmax rows are independent (exact). ----
    q = jnp.dot(h1, wq_ref[...], preferred_element_type=jnp.float32) + bq_ref[...]   # (B, H)
    scale = 1.0 / (float(HEAD_DIM) ** 0.5)

    ctx_heads = []
    for hh in range(NUM_HEADS):
        s, e = hh * HEAD_DIM, (hh + 1) * HEAD_DIM
        qh = q[:, s:e]                                                  # (B, hd)
        kh = k[:, :, s:e]                                               # (B, T, hd)
        vh = v[:, :, s:e]
        # q.k on the VPU (broadcast-mul + lane reduce) instead of an M=1/K=16 MXU call.
        sc = jnp.sum(qh[:, None, :] * kh, axis=-1) * scale              # (B, T)
        sc = sc - jnp.max(sc, axis=-1, keepdims=True)
        p = jnp.exp(sc)
        p = p * pl.reciprocal(jnp.sum(p, axis=-1, keepdims=True), approx=True)
        ctx_heads.append(jnp.sum(p[:, :, None] * vh, axis=1))           # (B, hd)

    # Single output projection on the concatenated head contexts.
    ctx_all = jnp.concatenate(ctx_heads, axis=-1)                       # (B, H)
    attn = (jnp.dot(ctx_all, wo_ref[...], preferred_element_type=jnp.float32)
            + bo_ref[...])                                              # (B, H)

    # ---- Output MLP: Linear -> ReLU -> Dropout(eval: identity) -> Linear ----
    m = jnp.maximum(
        jnp.dot(attn, wm1_ref[...], preferred_element_type=jnp.float32) + bm1_ref[...], 0.0)
    out = jnp.dot(m, wm2_ref[...], preferred_element_type=jnp.float32) + bm2_ref[...]  # (B, OUT_PAD)
    out_ref[...] = out.astype(out_ref.dtype)


def led_conversion_forward(x, params):
    """x: (B, SEQ, INPUT_DIM) float32 -> (B, OUT_DIM) float32."""
    B, T, F = x.shape
    assert T == SEQ and F == INPUT_DIM
    x_pad = jnp.pad(x.astype(jnp.float32), ((0, 0), (0, 0), (0, INPUT_DIM_PAD - INPUT_DIM)))

    # One-time weight fusions (tiny XLA ops outside the kernel).
    w1 = jnp.concatenate([params['wih1'], params['whh1']], axis=0)      # (2H, 4H)
    wkv = jnp.concatenate([params['wk'], params['wv']], axis=1)         # (H, 2H)
    bkv = jnp.concatenate([params['bk'], params['bv']], axis=1)         # (1, 2H)

    # Batch becomes a parallel grid axis when it is sublane-aligned (useful on v7x's 2 TCs);
    # for tiny batches run a single grid step.
    BT = 8 if (B % 8 == 0 and B > 8) else B
    assert B % BT == 0
    grid = (B // BT,)

    args = (x_pad,
            params['wih0'], params['whh0'], params['b0'],
            w1, params['b1'],
            params['wq'], params['bq'], wkv, bkv,
            params['wo'], params['bo'],
            params['wm1'], params['bm1'], params['wm2'], params['bm2'])

    def batch_spec(shape):
        blk = (BT,) + tuple(shape[1:])
        nd = len(shape)
        return pl.BlockSpec(blk, lambda i, nd=nd: (i,) + (0,) * (nd - 1))

    def full_spec(shape):
        nd = len(shape)
        return pl.BlockSpec(tuple(shape), lambda i, nd=nd: (0,) * nd)

    in_specs = [batch_spec(x_pad.shape)] + [full_spec(a.shape) for a in args[1:]]

    out = pl.pallas_call(
        led_kernel,
        grid=grid,
        in_specs=in_specs,
        out_specs=pl.BlockSpec((BT, OUT_PAD), lambda i: (i, 0)),
        out_shape=jax.ShapeDtypeStruct((B, OUT_PAD), jnp.float32),
        scratch_shapes=[pltpu.VMEM((BT, SEQ, HIDDEN), jnp.float32)],
        compiler_params=pltpu.CompilerParams(dimension_semantics=("parallel",)),
    )(*args)
    return out[:, :OUT_DIM]


def init_params(key):
    ks = jax.random.split(key, 18)
    H = HIDDEN

    def nrm(k, shape, scale=0.1):
        return jax.random.normal(k, shape, jnp.float32) * scale

    wih0 = jnp.zeros((INPUT_DIM_PAD, 4 * H), jnp.float32)
    wih0 = wih0.at[:INPUT_DIM].set(nrm(ks[0], (INPUT_DIM, 4 * H)))
    params = dict(
        wih0=wih0,
        whh0=nrm(ks[1], (H, 4 * H)),
        b0=nrm(ks[2], (1, 4 * H)),            # b_ih + b_hh combined
        wih1=nrm(ks[3], (H, 4 * H)),
        whh1=nrm(ks[4], (H, 4 * H)),
        b1=nrm(ks[5], (1, 4 * H)),
        wq=nrm(ks[6], (H, H)), bq=nrm(ks[7], (1, H)),
        wk=nrm(ks[8], (H, H)), bk=nrm(ks[9], (1, H)),
        wv=nrm(ks[10], (H, H)), bv=nrm(ks[11], (1, H)),
        wo=nrm(ks[12], (H, H)), bo=nrm(ks[13], (1, H)),
        wm1=nrm(ks[14], (H, MLP_HIDDEN)), bm1=nrm(ks[15], (1, MLP_HIDDEN)),
    )
    wm2_small = nrm(ks[16], (MLP_HIDDEN, OUT_DIM))
    bm2_small = nrm(ks[17], (1, OUT_DIM))
    wm2 = jnp.zeros((MLP_HIDDEN, OUT_PAD), jnp.float32).at[:, :OUT_DIM].set(wm2_small)
    bm2 = jnp.zeros((1, OUT_PAD), jnp.float32).at[:, :OUT_DIM].set(bm2_small)
    params['wm2'] = wm2
    params['bm2'] = bm2
    return params


def reference_forward(x, p):
    """Pure-JAX reference with full PyTorch semantics (full attention, take last row)."""
    B, T, _ = x.shape
    H = HIDDEN
    xp = jnp.pad(x.astype(jnp.float32), ((0, 0), (0, 0), (0, INPUT_DIM_PAD - INPUT_DIM)))

    def lstm_layer(inp, wih, whh, b):
        h = jnp.zeros((B, H), jnp.float32)
        c = jnp.zeros((B, H), jnp.float32)
        outs = []
        for t in range(T):
            g = inp[:, t, :] @ wih + b + h @ whh
            i = jax.nn.sigmoid(g[:, :H])
            f = jax.nn.sigmoid(g[:, H:2 * H])
            gg = jnp.tanh(g[:, 2 * H:3 * H])
            o = jax.nn.sigmoid(g[:, 3 * H:])
            c = f * c + i * gg
            h = o * jnp.tanh(c)
            outs.append(h)
        return jnp.stack(outs, axis=1)

    l0 = lstm_layer(xp, p['wih0'], p['whh0'], p['b0'])
    l1 = lstm_layer(l0, p['wih1'], p['whh1'], p['b1'])

    q = l1 @ p['wq'] + p['bq']
    k = l1 @ p['wk'] + p['bk']
    v = l1 @ p['wv'] + p['bv']
    qh = q.reshape(B, T, NUM_HEADS, HEAD_DIM).transpose(0, 2, 1, 3)
    kh = k.reshape(B, T, NUM_HEADS, HEAD_DIM).transpose(0, 2, 1, 3)
    vh = v.reshape(B, T, NUM_HEADS, HEAD_DIM).transpose(0, 2, 1, 3)
    sc = jnp.einsum('bhqd,bhkd->bhqk', qh, kh) / (float(HEAD_DIM) ** 0.5)
    pr = jax.nn.softmax(sc, axis=-1)
    ctx = jnp.einsum('bhqk,bhkd->bhqd', pr, vh).transpose(0, 2, 1, 3).reshape(B, T, H)
    attn = ctx @ p['wo'] + p['bo']

    fh = attn[:, -1, :]
    m = jax.nn.relu(fh @ p['wm1'] + p['bm1'])
    return (m @ p['wm2'] + p['bm2'])[:, :OUT_DIM]


if __name__ == "__main__":
    key = jax.random.PRNGKey(0)
    pkey, xkey = jax.random.split(key)
    params = init_params(pkey)

    B = 2
    x = jax.random.normal(xkey, (B, SEQ, INPUT_DIM), jnp.float32)

    out = led_conversion_forward(x, params)
    out = jax.block_until_ready(out)

    ref = reference_forward(x, params)
    assert out.shape == (B, OUT_DIM)
    if not jnp.allclose(out, ref, atol=1e-3, rtol=1e-3):
        raise AssertionError(f"mismatch: kernel={out}, ref={ref}")
    print("KERNEL_OK")
</pallas_src>

<mosaic_0001>
module attributes {stable_mosaic.version = 11 : i64} {
  func.func @led_kernel(%arg0: i32, %arg1: memref<2x12x8xf32, #tpu.memory_space<vmem>>, %arg2: memref<8x256xf32, #tpu.memory_space<vmem>>, %arg3: memref<64x256xf32, #tpu.memory_space<vmem>>, %arg4: memref<1x256xf32, #tpu.memory_space<vmem>>, %arg5: memref<128x256xf32, #tpu.memory_space<vmem>>, %arg6: memref<1x256xf32, #tpu.memory_space<vmem>>, %arg7: memref<64x64xf32, #tpu.memory_space<vmem>>, %arg8: memref<1x64xf32, #tpu.memory_space<vmem>>, %arg9: memref<64x128xf32, #tpu.memory_space<vmem>>, %arg10: memref<1x128xf32, #tpu.memory_space<vmem>>, %arg11: memref<64x64xf32, #tpu.memory_space<vmem>>, %arg12: memref<1x64xf32, #tpu.memory_space<vmem>>, %arg13: memref<64x32xf32, #tpu.memory_space<vmem>>, %arg14: memref<1x32xf32, #tpu.memory_space<vmem>>, %arg15: memref<32x128xf32, #tpu.memory_space<vmem>>, %arg16: memref<1x128xf32, #tpu.memory_space<vmem>>, %arg17: memref<2x128xf32, #tpu.memory_space<vmem>>, %arg18: memref<2x12x64xf32, #tpu.memory_space<vmem>>) attributes {dimension_semantics = [#tpu.dimension_semantics<parallel>], iteration_bounds = array<i64: 1>, scalar_prefetch = 0 : i64, scratch_operands = 1 : i64, tpu.core_type = #tpu.core_type<tc>, window_params = [{transform_indices = @transform_0, window_bounds = array<i64: 2, 12, 8>}, {pipeline_mode = #tpu.pipeline_mode<synchronous>, transform_indices = @transform_1, window_bounds = array<i64: 8, 256>}, {pipeline_mode = #tpu.pipeline_mode<synchronous>, transform_indices = @transform_2, window_bounds = array<i64: 64, 256>}, {pipeline_mode = #tpu.pipeline_mode<synchronous>, transform_indices = @transform_3, window_bounds = array<i64: 1, 256>}, {pipeline_mode = #tpu.pipeline_mode<synchronous>, transform_indices = @transform_4, window_bounds = array<i64: 128, 256>}, {pipeline_mode = #tpu.pipeline_mode<synchronous>, transform_indices = @transform_5, window_bounds = array<i64: 1, 256>}, {pipeline_mode = #tpu.pipeline_mode<synchronous>, transform_indices = @transform_6, window_bounds = array<i64: 64, 64>}, {pipeline_mode = #tpu.pipeline_mode<synchronous>, transform_indices = @transform_7, window_bounds = array<i64: 1, 64>}, {pipeline_mode = #tpu.pipeline_mode<synchronous>, transform_indices = @transform_8, window_bounds = array<i64: 64, 128>}, {pipeline_mode = #tpu.pipeline_mode<synchronous>, transform_indices = @transform_9, window_bounds = array<i64: 1, 128>}, {pipeline_mode = #tpu.pipeline_mode<synchronous>, transform_indices = @transform_10, window_bounds = array<i64: 64, 64>}, {pipeline_mode = #tpu.pipeline_mode<synchronous>, transform_indices = @transform_11, window_bounds = array<i64: 1, 64>}, {pipeline_mode = #tpu.pipeline_mode<synchronous>, transform_indices = @transform_12, window_bounds = array<i64: 64, 32>}, {pipeline_mode = #tpu.pipeline_mode<synchronous>, transform_indices = @transform_13, window_bounds = array<i64: 1, 32>}, {pipeline_mode = #tpu.pipeline_mode<synchronous>, transform_indices = @transform_14, window_bounds = array<i64: 32, 128>}, {pipeline_mode = #tpu.pipeline_mode<synchronous>, transform_indices = @transform_15, window_bounds = array<i64: 1, 128>}, {transform_indices = @transform_16, window_bounds = array<i64: 2, 128>}]} {
    %c0 = arith.constant 0 : index
    %c0_0 = arith.constant 0 : index
    %c0_1 = arith.constant 0 : index
    %0 = vector.load %arg1[%c0, %c0_0, %c0_1] : memref<2x12x8xf32, #tpu.memory_space<vmem>>, vector<2x12x8xf32>
    %c0_2 = arith.constant 0 : index
    %c0_3 = arith.constant 0 : index
    %1 = vector.load %arg3[%c0_2, %c0_3] : memref<64x256xf32, #tpu.memory_space<vmem>>, vector<64x256xf32>
    %c0_4 = arith.constant 0 : index
    %c0_5 = arith.constant 0 : index
    %2 = vector.load %arg5[%c0_4, %c0_5] : memref<128x256xf32, #tpu.memory_space<vmem>>, vector<128x256xf32>
    %3 = vector.shape_cast %0 : vector<2x12x8xf32> to vector<24x8xf32>
    %c0_6 = arith.constant 0 : index
    %c0_7 = arith.constant 0 : index
    %4 = vector.load %arg2[%c0_6, %c0_7] : memref<8x256xf32, #tpu.memory_space<vmem>>, vector<8x256xf32>
    %cst = arith.constant dense<0.000000e+00> : vector<24x256xf32>
    %5 = tpu.matmul %3, %4, %cst {dimension_numbers = #tpu.dot_dimension_numbers<[1], [0], [0], [1], [0, 0, 1, 1], [], []>} : vector<24x8xf32>, vector<8x256xf32>, vector<24x256xf32> -> vector<24x256xf32>
    %c0_8 = arith.constant 0 : index
    %c0_9 = arith.constant 0 : index
    %6 = vector.load %arg4[%c0_8, %c0_9] : memref<1x256xf32, #tpu.memory_space<vmem>>, vector<1x256xf32>
    %7 = vector.broadcast %6 : vector<1x256xf32> to vector<24x256xf32>
    %8 = arith.addf %5, %7 : vector<24x256xf32>
    %9 = vector.shape_cast %8 : vector<24x256xf32> to vector<2x12x256xf32>
    %c0_10 = arith.constant 0 : index
    %c0_11 = arith.constant 0 : index
    %10 = vector.load %arg6[%c0_10, %c0_11] : memref<1x256xf32, #tpu.memory_space<vmem>>, vector<1x256xf32>
    %11 = vector.shape_cast %10 : vector<1x256xf32> to vector<1x256xf32>
    %12 = vector.broadcast %11 : vector<1x256xf32> to vector<2x256xf32>
    %cst_12 = arith.constant 0.000000e+00 : f32
    %13 = vector.broadcast %cst_12 : f32 to vector<2x64xf32>
    %cst_13 = arith.constant 0.000000e+00 : f32
    %14 = vector.broadcast %cst_13 : f32 to vector<2x64xf32>
    %cst_14 = arith.constant 0.000000e+00 : f32
    %15 = vector.broadcast %cst_14 : f32 to vector<2x64xf32>
    %cst_15 = arith.constant 0.000000e+00 : f32
    %16 = vector.broadcast %cst_15 : f32 to vector<2x64xf32>
    %17 = vector.extract_strided_slice %9 {offsets = [0, 0, 0], sizes = [2, 1, 256], strides = [1, 1, 1]} : vector<2x12x256xf32> to vector<2x1x256xf32>
    %18 = vector.shape_cast %17 : vector<2x1x256xf32> to vector<2x256xf32>
    %cst_16 = arith.constant dense<0.000000e+00> : vector<2x256xf32>
    %19 = tpu.matmul %13, %1, %cst_16 {dimension_numbers = #tpu.dot_dimension_numbers<[1], [0], [0], [1], [0, 0, 1, 1], [], []>} : vector<2x64xf32>, vector<64x256xf32>, vector<2x256xf32> -> vector<2x256xf32>
    %20 = arith.addf %18, %19 : vector<2x256xf32>
    %21 = vector.extract_strided_slice %20 {offsets = [0, 0], sizes = [2, 64], strides = [1, 1]} : vector<2x256xf32> to vector<2x64xf32>
    %22 = arith.negf %21 : vector<2x64xf32>
    %23 = math.exp %22 : vector<2x64xf32>
    %cst_17 = arith.constant 1.000000e+00 : f32
    %24 = vector.broadcast %cst_17 : f32 to vector<2x64xf32>
    %25 = arith.addf %24, %23 : vector<2x64xf32>
    %26 = arith.divf %24, %25 : vector<2x64xf32>
    %27 = vector.extract_strided_slice %20 {offsets = [0, 64], sizes = [2, 64], strides = [1, 1]} : vector<2x256xf32> to vector<2x64xf32>
    %28 = arith.negf %27 : vector<2x64xf32>
    %29 = math.exp %28 : vector<2x64xf32>
    %cst_18 = arith.constant 1.000000e+00 : f32
    %30 = vector.broadcast %cst_18 : f32 to vector<2x64xf32>
    %31 = arith.addf %30, %29 : vector<2x64xf32>
    %32 = arith.divf %30, %31 : vector<2x64xf32>
    %33 = vector.extract_strided_slice %20 {offsets = [0, 128], sizes = [2, 64], strides = [1, 1]} : vector<2x256xf32> to vector<2x64xf32>
    %34 = math.tanh %33 : vector<2x64xf32>
    %35 = vector.extract_strided_slice %20 {offsets = [0, 192], sizes = [2, 64], strides = [1, 1]} : vector<2x256xf32> to vector<2x64xf32>
    %36 = arith.negf %35 : vector<2x64xf32>
    %37 = math.exp %36 : vector<2x64xf32>
    %cst_19 = arith.constant 1.000000e+00 : f32
    %38 = vector.broadcast %cst_19 : f32 to vector<2x64xf32>
    %39 = arith.addf %38, %37 : vector<2x64xf32>
    %40 = arith.divf %38, %39 : vector<2x64xf32>
    %41 = arith.mulf %32, %14 : vector<2x64xf32>
    %42 = arith.mulf %26, %34 : vector<2x64xf32>
    %43 = arith.addf %41, %42 : vector<2x64xf32>
    %44 = math.tanh %43 : vector<2x64xf32>
    %45 = arith.mulf %40, %44 : vector<2x64xf32>
    %46 = tpu.concatenate %45, %15 in 1 : vector<2x64xf32>, vector<2x64xf32> -> vector<2x128xf32>
    %cst_20 = arith.constant dense<0.000000e+00> : vector<2x256xf32>
    %47 = tpu.matmul %46, %2, %cst_20 {dimension_numbers = #tpu.dot_dimension_numbers<[1], [0], [0], [1], [0, 0, 1, 1], [], []>} : vector<2x128xf32>, vector<128x256xf32>, vector<2x256xf32> -> vector<2x256xf32>
    %48 = arith.addf %47, %12 : vector<2x256xf32>
    %49 = vector.extract_strided_slice %48 {offsets = [0, 0], sizes = [2, 64], strides = [1, 1]} : vector<2x256xf32> to vector<2x64xf32>
    %50 = arith.negf %49 : vector<2x64xf32>
    %51 = math.exp %50 : vector<2x64xf32>
    %cst_21 = arith.constant 1.000000e+00 : f32
    %52 = vector.broadcast %cst_21 : f32 to vector<2x64xf32>
    %53 = arith.addf %52, %51 : vector<2x64xf32>
    %54 = arith.divf %52, %53 : vector<2x64xf32>
    %55 = vector.extract_strided_slice %48 {offsets = [0, 64], sizes = [2, 64], strides = [1, 1]} : vector<2x256xf32> to vector<2x64xf32>
    %56 = arith.negf %55 : vector<2x64xf32>
    %57 = math.exp %56 : vector<2x64xf32>
    %cst_22 = arith.constant 1.000000e+00 : f32
    %58 = vector.broadcast %cst_22 : f32 to vector<2x64xf32>
    %59 = arith.addf %58, %57 : vector<2x64xf32>
    %60 = arith.divf %58, %59 : vector<2x64xf32>
    %61 = vector.extract_strided_slice %48 {offsets = [0, 128], sizes = [2, 64], strides = [1, 1]} : vector<2x256xf32> to vector<2x64xf32>
    %62 = math.tanh %61 : vector<2x64xf32>
    %63 = vector.extract_strided_slice %48 {offsets = [0, 192], sizes = [2, 64], strides = [1, 1]} : vector<2x256xf32> to vector<2x64xf32>
    %64 = arith.negf %63 : vector<2x64xf32>
    %65 = math.exp %64 : vector<2x64xf32>
    %cst_23 = arith.constant 1.000000e+00 : f32
    %66 = vector.broadcast %cst_23 : f32 to vector<2x64xf32>
    %67 = arith.addf %66, %65 : vector<2x64xf32>
    %68 = arith.divf %66, %67 : vector<2x64xf32>
    %69 = arith.mulf %60, %16 : vector<2x64xf32>
    %70 = arith.mulf %54, %62 : vector<2x64xf32>
    %71 = arith.addf %69, %70 : vector<2x64xf32>
    %72 = math.tanh %71 : vector<2x64xf32>
    %73 = arith.mulf %68, %72 : vector<2x64xf32>
    %74 = vector.shape_cast %73 : vector<2x64xf32> to vector<2x1x64xf32>
    %c0_24 = arith.constant 0 : index
    %c0_25 = arith.constant 0 : index
    %c0_26 = arith.constant 0 : index
    %75 = vector.load %arg18[%c0_24, %c0_25, %c0_26] : memref<2x12x64xf32, #tpu.memory_space<vmem>>, vector<2x1x64xf32>
    tpu.vector_store %arg18[%c0_24, %c0_25, %c0_26], %74 {strides = array<i32>} : memref<2x12x64xf32, #tpu.memory_space<vmem>>, vector<2x1x64xf32>,
    %76 = vector.extract_strided_slice %9 {offsets = [0, 1, 0], sizes = [2, 1, 256], strides = [1, 1, 1]} : vector<2x12x256xf32> to vector<2x1x256xf32>
    %77 = vector.shape_cast %76 : vector<2x1x256xf32> to vector<2x256xf32>
    %cst_27 = arith.constant dense<0.000000e+00> : vector<2x256xf32>
    %78 = tpu.matmul %45, %1, %cst_27 {dimension_numbers = #tpu.dot_dimension_numbers<[1], [0], [0], [1], [0, 0, 1, 1], [], []>} : vector<2x64xf32>, vector<64x256xf32>, vector<2x256xf32> -> vector<2x256xf32>
    %79 = arith.addf %77, %78 : vector<2x256xf32>
    %80 = vector.extract_strided_slice %79 {offsets = [0, 0], sizes = [2, 64], strides = [1, 1]} : vector<2x256xf32> to vector<2x64xf32>
    %81 = arith.negf %80 : vector<2x64xf32>
    %82 = math.exp %81 : vector<2x64xf32>
    %cst_28 = arith.constant 1.000000e+00 : f32
    %83 = vector.broadcast %cst_28 : f32 to vector<2x64xf32>
    %84 = arith.addf %83, %82 : vector<2x64xf32>
    %85 = arith.divf %83, %84 : vector<2x64xf32>
    %86 = vector.extract_strided_slice %79 {offsets = [0, 64], sizes = [2, 64], strides = [1, 1]} : vector<2x256xf32> to vector<2x64xf32>
    %87 = arith.negf %86 : vector<2x64xf32>
    %88 = math.exp %87 : vector<2x64xf32>
    %cst_29 = arith.constant 1.000000e+00 : f32
    %89 = vector.broadcast %cst_29 : f32 to vector<2x64xf32>
    %90 = arith.addf %89, %88 : vector<2x64xf32>
    %91 = arith.divf %89, %90 : vector<2x64xf32>
    %92 = vector.extract_strided_slice %79 {offsets = [0, 128], sizes = [2, 64], strides = [1, 1]} : vector<2x256xf32> to vector<2x64xf32>
    %93 = math.tanh %92 : vector<2x64xf32>
    %94 = vector.extract_strided_slice %79 {offsets = [0, 192], sizes = [2, 64], strides = [1, 1]} : vector<2x256xf32> to vector<2x64xf32>
    %95 = arith.negf %94 : vector<2x64xf32>
    %96 = math.exp %95 : vector<2x64xf32>
    %cst_30 = arith.constant 1.000000e+00 : f32
    %97 = vector.broadcast %cst_30 : f32 to vector<2x64xf32>
    %98 = arith.addf %97, %96 : vector<2x64xf32>
    %99 = arith.divf %97, %98 : vector<2x64xf32>
    %100 = arith.mulf %91, %43 : vector<2x64xf32>
    %101 = arith.mulf %85, %93 : vector<2x64xf32>
    %102 = arith.addf %100, %101 : vector<2x64xf32>
    %103 = math.tanh %102 : vector<2x64xf32>
    %104 = arith.mulf %99, %103 : vector<2x64xf32>
    %105 = tpu.concatenate %104, %73 in 1 : vector<2x64xf32>, vector<2x64xf32> -> vector<2x128xf32>
    %cst_31 = arith.constant dense<0.000000e+00> : vector<2x256xf32>
    %106 = tpu.matmul %105, %2, %cst_31 {dimension_numbers = #tpu.dot_dimension_numbers<[1], [0], [0], [1], [0, 0, 1, 1], [], []>} : vector<2x128xf32>, vector<128x256xf32>, vector<2x256xf32> -> vector<2x256xf32>
    %107 = arith.addf %106, %12 : vector<2x256xf32>
    %108 = vector.extract_strided_slice %107 {offsets = [0, 0], sizes = [2, 64], strides = [1, 1]} : vector<2x256xf32> to vector<2x64xf32>
    %109 = arith.negf %108 : vector<2x64xf32>
    %110 = math.exp %109 : vector<2x64xf32>
    %cst_32 = arith.constant 1.000000e+00 : f32
    %111 = vector.broadcast %cst_32 : f32 to vector<2x64xf32>
    %112 = arith.addf %111, %110 : vector<2x64xf32>
    %113 = arith.divf %111, %112 : vector<2x64xf32>
    %114 = vector.extract_strided_slice %107 {offsets = [0, 64], sizes = [2, 64], strides = [1, 1]} : vector<2x256xf32> to vector<2x64xf32>
    %115 = arith.negf %114 : vector<2x64xf32>
    %116 = math.exp %115 : vector<2x64xf32>
    %cst_33 = arith.constant 1.000000e+00 : f32
    %117 = vector.broadcast %cst_33 : f32 to vector<2x64xf32>
    %118 = arith.addf %117, %116 : vector<2x64xf32>
    %119 = arith.divf %117, %118 : vector<2x64xf32>
    %120 = vector.extract_strided_slice %107 {offsets = [0, 128], sizes = [2, 64], strides = [1, 1]} : vector<2x256xf32> to vector<2x64xf32>
    %121 = math.tanh %120 : vector<2x64xf32>
    %122 = vector.extract_strided_slice %107 {offsets = [0, 192], sizes = [2, 64], strides = [1, 1]} : vector<2x256xf32> to vector<2x64xf32>
    %123 = arith.negf %122 : vector<2x64xf32>
    %124 = math.exp %123 : vector<2x64xf32>
    %cst_34 = arith.constant 1.000000e+00 : f32
    %125 = vector.broadcast %cst_34 : f32 to vector<2x64xf32>
    %126 = arith.addf %125, %124 : vector<2x64xf32>
    %127 = arith.divf %125, %126 : vector<2x64xf32>
    %128 = arith.mulf %119, %71 : vector<2x64xf32>
    %129 = arith.mulf %113, %121 : vector<2x64xf32>
    %130 = arith.addf %128, %129 : vector<2x64xf32>
    %131 = math.tanh %130 : vector<2x64xf32>
    %132 = arith.mulf %127, %131 : vector<2x64xf32>
    %133 = vector.shape_cast %132 : vector<2x64xf32> to vector<2x1x64xf32>
    %c0_35 = arith.constant 0 : index
    %c1 = arith.constant 1 : index
    %c0_36 = arith.constant 0 : index
    %134 = vector.load %arg18[%c0_35, %c1, %c0_36] : memref<2x12x64xf32, #tpu.memory_space<vmem>>, vector<2x1x64xf32>
    tpu.vector_store %arg18[%c0_35, %c1, %c0_36], %133 {strides = array<i32>} : memref<2x12x64xf32, #tpu.memory_space<vmem>>, vector<2x1x64xf32>,
    %135 = vector.extract_strided_slice %9 {offsets = [0, 2, 0], sizes = [2, 1, 256], strides = [1, 1, 1]} : vector<2x12x256xf32> to vector<2x1x256xf32>
    %136 = vector.shape_cast %135 : vector<2x1x256xf32> to vector<2x256xf32>
    %cst_37 = arith.constant dense<0.000000e+00> : vector<2x256xf32>
    %137 = tpu.matmul %104, %1, %cst_37 {dimension_numbers = #tpu.dot_dimension_numbers<[1], [0], [0], [1], [0, 0, 1, 1], [], []>} : vector<2x64xf32>, vector<64x256xf32>, vector<2x256xf32> -> vector<2x256xf32>
    %138 = arith.addf %136, %137 : vector<2x256xf32>
    %139 = vector.extract_strided_slice %138 {offsets = [0, 0], sizes = [2, 64], strides = [1, 1]} : vector<2x256xf32> to vector<2x64xf32>
    %140 = arith.negf %139 : vector<2x64xf32>
    %141 = math.exp %140 : vector<2x64xf32>
    %cst_38 = arith.constant 1.000000e+00 : f32
    %142 = vector.broadcast %cst_38 : f32 to vector<2x64xf32>
    %143 = arith.addf %142, %141 : vector<2x64xf32>
    %144 = arith.divf %142, %143 : vector<2x64xf32>
    %145 = vector.extract_strided_slice %138 {offsets = [0, 64], sizes = [2, 64], strides = [1, 1]} : vector<2x256xf32> to vector<2x64xf32>
    %146 = arith.negf %145 : vector<2x64xf32>
    %147 = math.exp %146 : vector<2x64xf32>
    %cst_39 = arith.constant 1.000000e+00 : f32
    %148 = vector.broadcast %cst_39 : f32 to vector<2x64xf32>
    %149 = arith.addf %148, %147 : vector<2x64xf32>
    %150 = arith.divf %148, %149 : vector<2x64xf32>
    %151 = vector.extract_strided_slice %138 {offsets = [0, 128], sizes = [2, 64], strides = [1, 1]} : vector<2x256xf32> to vector<2x64xf32>
    %152 = math.tanh %151 : vector<2x64xf32>
    %153 = vector.extract_strided_slice %138 {offsets = [0, 192], sizes = [2, 64], strides = [1, 1]} : vector<2x256xf32> to vector<2x64xf32>
    %154 = arith.negf %153 : vector<2x64xf32>
    %155 = math.exp %154 : vector<2x64xf32>
    %cst_40 = arith.constant 1.000000e+00 : f32
    %156 = vector.broadcast %cst_40 : f32 to vector<2x64xf32>
    %157 = arith.addf %156, %155 : vector<2x64xf32>
    %158 = arith.divf %156, %157 : vector<2x64xf32>
    %159 = arith.mulf %150, %102 : vector<2x64xf32>
    %160 = arith.mulf %144, %152 : vector<2x64xf32>
    %161 = arith.addf %159, %160 : vector<2x64xf32>
    %162 = math.tanh %161 : vector<2x64xf32>
    %163 = arith.mulf %158, %162 : vector<2x64xf32>
    %164 = tpu.concatenate %163, %132 in 1 : vector<2x64xf32>, vector<2x64xf32> -> vector<2x128xf32>
    %cst_41 = arith.constant dense<0.000000e+00> : vector<2x256xf32>
    %165 = tpu.matmul %164, %2, %cst_41 {dimension_numbers = #tpu.dot_dimension_numbers<[1], [0], [0], [1], [0, 0, 1, 1], [], []>} : vector<2x128xf32>, vector<128x256xf32>, vector<2x256xf32> -> vector<2x256xf32>
    %166 = arith.addf %165, %12 : vector<2x256xf32>
    %167 = vector.extract_strided_slice %166 {offsets = [0, 0], sizes = [2, 64], strides = [1, 1]} : vector<2x256xf32> to vector<2x64xf32>
    %168 = arith.negf %167 : vector<2x64xf32>
    %169 = math.exp %168 : vector<2x64xf32>
    %cst_42 = arith.constant 1.000000e+00 : f32
    %170 = vector.broadcast %cst_42 : f32 to vector<2x64xf32>
    %171 = arith.addf %170, %169 : vector<2x64xf32>
    %172 = arith.divf %170, %171 : vector<2x64xf32>
    %173 = vector.extract_strided_slice %166 {offsets = [0, 64], sizes = [2, 64], strides = [1, 1]} : vector<2x256xf32> to vector<2x64xf32>
    %174 = arith.negf %173 : vector<2x64xf32>
    %175 = math.exp %174 : vector<2x64xf32>
    %cst_43 = arith.constant 1.000000e+00 : f32
    %176 = vector.broadcast %cst_43 : f32 to vector<2x64xf32>
    %177 = arith.addf %176, %175 : vector<2x64xf32>
    %178 = arith.divf %176, %177 : vector<2x64xf32>
    %179 = vector.extract_strided_slice %166 {offsets = [0, 128], sizes = [2, 64], strides = [1, 1]} : vector<2x256xf32> to vector<2x64xf32>
    %180 = math.tanh %179 : vector<2x64xf32>
    %181 = vector.extract_strided_slice %166 {offsets = [0, 192], sizes = [2, 64], strides = [1, 1]} : vector<2x256xf32> to vector<2x64xf32>
    %182 = arith.negf %181 : vector<2x64xf32>
    %183 = math.exp %182 : vector<2x64xf32>
    %cst_44 = arith.constant 1.000000e+00 : f32
    %184 = vector.broadcast %cst_44 : f32 to vector<2x64xf32>
    %185 = arith.addf %184, %183 : vector<2x64xf32>
    %186 = arith.divf %184, %185 : vector<2x64xf32>
    %187 = arith.mulf %178, %130 : vector<2x64xf32>
    %188 = arith.mulf %172, %180 : vector<2x64xf32>
    %189 = arith.addf %187, %188 : vector<2x64xf32>
    %190 = math.tanh %189 : vector<2x64xf32>
    %191 = arith.mulf %186, %190 : vector<2x64xf32>
    %192 = vector.shape_cast %191 : vector<2x64xf32> to vector<2x1x64xf32>
    %c0_45 = arith.constant 0 : index
    %c2 = arith.constant 2 : index
    %c0_46 = arith.constant 0 : index
    %193 = vector.load %arg18[%c0_45, %c2, %c0_46] : memref<2x12x64xf32, #tpu.memory_space<vmem>>, vector<2x1x64xf32>
    tpu.vector_store %arg18[%c0_45, %c2, %c0_46], %192 {strides = array<i32>} : memref<2x12x64xf32, #tpu.memory_space<vmem>>, vector<2x1x64xf32>,
    %194 = vector.extract_strided_slice %9 {offsets = [0, 3, 0], sizes = [2, 1, 256], strides = [1, 1, 1]} : vector<2x12x256xf32> to vector<2x1x256xf32>
    %195 = vector.shape_cast %194 : vector<2x1x256xf32> to vector<2x256xf32>
    %cst_47 = arith.constant dense<0.000000e+00> : vector<2x256xf32>
    %196 = tpu.matmul %163, %1, %cst_47 {dimension_numbers = #tpu.dot_dimension_numbers<[1], [0], [0], [1], [0, 0, 1, 1], [], []>} : vector<2x64xf32>, vector<64x256xf32>, vector<2x256xf32> -> vector<2x256xf32>
    %197 = arith.addf %195, %196 : vector<2x256xf32>
    %198 = vector.extract_strided_slice %197 {offsets = [0, 0], sizes = [2, 64], strides = [1, 1]} : vector<2x256xf32> to vector<2x64xf32>
    %199 = arith.negf %198 : vector<2x64xf32>
    %200 = math.exp %199 : vector<2x64xf32>
    %cst_48 = arith.constant 1.000000e+00 : f32
    %201 = vector.broadcast %cst_48 : f32 to vector<2x64xf32>
    %202 = arith.addf %201, %200 : vector<2x64xf32>
    %203 = arith.divf %201, %202 : vector<2x64xf32>
    %204 = vector.extract_strided_slice %197 {offsets = [0, 64], sizes = [2, 64], strides = [1, 1]} : vector<2x256xf32> to vector<2x64xf32>
    %205 = arith.negf %204 : vector<2x64xf32>
    %206 = math.exp %205 : vector<2x64xf32>
    %cst_49 = arith.constant 1.000000e+00 : f32
    %207 = vector.broadcast %cst_49 : f32 to vector<2x64xf32>
    %208 = arith.addf %207, %206 : vector<2x64xf32>
    %209 = arith.divf %207, %208 : vector<2x64xf32>
    %210 = vector.extract_strided_slice %197 {offsets = [0, 128], sizes = [2, 64], strides = [1, 1]} : vector<2x256xf32> to vector<2x64xf32>
    %211 = math.tanh %210 : vector<2x64xf32>
    %212 = vector.extract_strided_slice %197 {offsets = [0, 192], sizes = [2, 64], strides = [1, 1]} : vector<2x256xf32> to vector<2x64xf32>
    %213 = arith.negf %212 : vector<2x64xf32>
    %214 = math.exp %213 : vector<2x64xf32>
    %cst_50 = arith.constant 1.000000e+00 : f32
    %215 = vector.broadcast %cst_50 : f32 to vector<2x64xf32>
    %216 = arith.addf %215, %214 : vector<2x64xf32>
    %217 = arith.divf %215, %216 : vector<2x64xf32>
    %218 = arith.mulf %209, %161 : vector<2x64xf32>
    %219 = arith.mulf %203, %211 : vector<2x64xf32>
    %220 = arith.addf %218, %219 : vector<2x64xf32>
    %221 = math.tanh %220 : vector<2x64xf32>
    %222 = arith.mulf %217, %221 : vector<2x64xf32>
    %223 = tpu.concatenate %222, %191 in 1 : vector<2x64xf32>, vector<2x64xf32> -> vector<2x128xf32>
    %cst_51 = arith.constant dense<0.000000e+00> : vector<2x256xf32>
    %224 = tpu.matmul %223, %2, %cst_51 {dimension_numbers = #tpu.dot_dimension_numbers<[1], [0], [0], [1], [0, 0, 1, 1], [], []>} : vector<2x128xf32>, vector<128x256xf32>, vector<2x256xf32> -> vector<2x256xf32>
    %225 = arith.addf %224, %12 : vector<2x256xf32>
    %226 = vector.extract_strided_slice %225 {offsets = [0, 0], sizes = [2, 64], strides = [1, 1]} : vector<2x256xf32> to vector<2x64xf32>
    %227 = arith.negf %226 : vector<2x64xf32>
    %228 = math.exp %227 : vector<2x64xf32>
    %cst_52 = arith.constant 1.000000e+00 : f32
    %229 = vector.broadcast %cst_52 : f32 to vector<2x64xf32>
    %230 = arith.addf %229, %228 : vector<2x64xf32>
    %231 = arith.divf %229, %230 : vector<2x64xf32>
    %232 = vector.extract_strided_slice %225 {offsets = [0, 64], sizes = [2, 64], strides = [1, 1]} : vector<2x256xf32> to vector<2x64xf32>
    %233 = arith.negf %232 : vector<2x64xf32>
    %234 = math.exp %233 : vector<2x64xf32>
    %cst_53 = arith.constant 1.000000e+00 : f32
    %235 = vector.broadcast %cst_53 : f32 to vector<2x64xf32>
    %236 = arith.addf %235, %234 : vector<2x64xf32>
    %237 = arith.divf %235, %236 : vector<2x64xf32>
    %238 = vector.extract_strided_slice %225 {offsets = [0, 128], sizes = [2, 64], strides = [1, 1]} : vector<2x256xf32> to vector<2x64xf32>
    %239 = math.tanh %238 : vector<2x64xf32>
    %240 = vector.extract_strided_slice %225 {offsets = [0, 192], sizes = [2, 64], strides = [1, 1]} : vector<2x256xf32> to vector<2x64xf32>
    %241 = arith.negf %240 : vector<2x64xf32>
    %242 = math.exp %241 : vector<2x64xf32>
    %cst_54 = arith.constant 1.000000e+00 : f32
    %243 = vector.broadcast %cst_54 : f32 to vector<2x64xf32>
    %244 = arith.addf %243, %242 : vector<2x64xf32>
    %245 = arith.divf %243, %244 : vector<2x64xf32>
    %246 = arith.mulf %237, %189 : vector<2x64xf32>
    %247 = arith.mulf %231, %239 : vector<2x64xf32>
    %248 = arith.addf %246, %247 : vector<2x64xf32>
    %249 = math.tanh %248 : vector<2x64xf32>
    %250 = arith.mulf %245, %249 : vector<2x64xf32>
    %251 = vector.shape_cast %250 : vector<2x64xf32> to vector<2x1x64xf32>
    %c0_55 = arith.constant 0 : index
    %c3 = arith.constant 3 : index
    %c0_56 = arith.constant 0 : index
    %252 = vector.load %arg18[%c0_55, %c3, %c0_56] : memref<2x12x64xf32, #tpu.memory_space<vmem>>, vector<2x1x64xf32>
    tpu.vector_store %arg18[%c0_55, %c3, %c0_56], %251 {strides = array<i32>} : memref<2x12x64xf32, #tpu.memory_space<vmem>>, vector<2x1x64xf32>,
    %253 = vector.extract_strided_slice %9 {offsets = [0, 4, 0], sizes = [2, 1, 256], strides = [1, 1, 1]} : vector<2x12x256xf32> to vector<2x1x256xf32>
    %254 = vector.shape_cast %253 : vector<2x1x256xf32> to vector<2x256xf32>
    %cst_57 = arith.constant dense<0.000000e+00> : vector<2x256xf32>
    %255 = tpu.matmul %222, %1, %cst_57 {dimension_numbers = #tpu.dot_dimension_numbers<[1], [0], [0], [1], [0, 0, 1, 1], [], []>} : vector<2x64xf32>, vector<64x256xf32>, vector<2x256xf32> -> vector<2x256xf32>
    %256 = arith.addf %254, %255 : vector<2x256xf32>
    %257 = vector.extract_strided_slice %256 {offsets = [0, 0], sizes = [2, 64], strides = [1, 1]} : vector<2x256xf32> to vector<2x64xf32>
    %258 = arith.negf %257 : vector<2x64xf32>
    %259 = math.exp %258 : vector<2x64xf32>
    %cst_58 = arith.constant 1.000000e+00 : f32
    %260 = vector.broadcast %cst_58 : f32 to vector<2x64xf32>
    %261 = arith.addf %260, %259 : vector<2x64xf32>
    %262 = arith.divf %260, %261 : vector<2x64xf32>
    %263 = vector.extract_strided_slice %256 {offsets = [0, 64], sizes = [2, 64], strides = [1, 1]} : vector<2x256xf32> to vector<2x64xf32>
    %264 = arith.negf %263 : vector<2x64xf32>
    %265 = math.exp %264 : vector<2x64xf32>
    %cst_59 = arith.constant 1.000000e+00 : f32
    %266 = vector.broadcast %cst_59 : f32 to vector<2x64xf32>
    %267 = arith.addf %266, %265 : vector<2x64xf32>
    %268 = arith.divf %266, %267 : vector<2x64xf32>
    %269 = vector.extract_strided_slice %256 {offsets = [0, 128], sizes = [2, 64], strides = [1, 1]} : vector<2x256xf32> to vector<2x64xf32>
    %270 = math.tanh %269 : vector<2x64xf32>
    %271 = vector.extract_strided_slice %256 {offsets = [0, 192], sizes = [2, 64], strides = [1, 1]} : vector<2x256xf32> to vector<2x64xf32>
    %272 = arith.negf %271 : vector<2x64xf32>
    %273 = math.exp %272 : vector<2x64xf32>
    %cst_60 = arith.constant 1.000000e+00 : f32
    %274 = vector.broadcast %cst_60 : f32 to vector<2x64xf32>
    %275 = arith.addf %274, %273 : vector<2x64xf32>
    %276 = arith.divf %274, %275 : vector<2x64xf32>
    %277 = arith.mulf %268, %220 : vector<2x64xf32>
    %278 = arith.mulf %262, %270 : vector<2x64xf32>
    %279 = arith.addf %277, %278 : vector<2x64xf32>
    %280 = math.tanh %279 : vector<2x64xf32>
    %281 = arith.mulf %276, %280 : vector<2x64xf32>
    %282 = tpu.concatenate %281, %250 in 1 : vector<2x64xf32>, vector<2x64xf32> -> vector<2x128xf32>
    %cst_61 = arith.constant dense<0.000000e+00> : vector<2x256xf32>
    %283 = tpu.matmul %282, %2, %cst_61 {dimension_numbers = #tpu.dot_dimension_numbers<[1], [0], [0], [1], [0, 0, 1, 1], [], []>} : vector<2x128xf32>, vector<128x256xf32>, vector<2x256xf32> -> vector<2x256xf32>
    %284 = arith.addf %283, %12 : vector<2x256xf32>
    %285 = vector.extract_strided_slice %284 {offsets = [0, 0], sizes = [2, 64], strides = [1, 1]} : vector<2x256xf32> to vector<2x64xf32>
    %286 = arith.negf %285 : vector<2x64xf32>
    %287 = math.exp %286 : vector<2x64xf32>
    %cst_62 = arith.constant 1.000000e+00 : f32
    %288 = vector.broadcast %cst_62 : f32 to vector<2x64xf32>
    %289 = arith.addf %288, %287 : vector<2x64xf32>
    %290 = arith.divf %288, %289 : vector<2x64xf32>
    %291 = vector.extract_strided_slice %284 {offsets = [0, 64], sizes = [2, 64], strides = [1, 1]} : vector<2x256xf32> to vector<2x64xf32>
    %292 = arith.negf %291 : vector<2x64xf32>
    %293 = math.exp %292 : vector<2x64xf32>
    %cst_63 = arith.constant 1.000000e+00 : f32
    %294 = vector.broadcast %cst_63 : f32 to vector<2x64xf32>
    %295 = arith.addf %294, %293 : vector<2x64xf32>
    %296 = arith.divf %294, %295 : vector<2x64xf32>
    %297 = vector.extract_strided_slice %284 {offsets = [0, 128], sizes = [2, 64], strides = [1, 1]} : vector<2x256xf32> to vector<2x64xf32>
    %298 = math.tanh %297 : vector<2x64xf32>
    %299 = vector.extract_strided_slice %284 {offsets = [0, 192], sizes = [2, 64], strides = [1, 1]} : vector<2x256xf32> to vector<2x64xf32>
    %300 = arith.negf %299 : vector<2x64xf32>
    %301 = math.exp %300 : vector<2x64xf32>
    %cst_64 = arith.constant 1.000000e+00 : f32
    %302 = vector.broadcast %cst_64 : f32 to vector<2x64xf32>
    %303 = arith.addf %302, %301 : vector<2x64xf32>
    %304 = arith.divf %302, %303 : vector<2x64xf32>
    %305 = arith.mulf %296, %248 : vector<2x64xf32>
    %306 = arith.mulf %290, %298 : vector<2x64xf32>
    %307 = arith.addf %305, %306 : vector<2x64xf32>
    %308 = math.tanh %307 : vector<2x64xf32>
    %309 = arith.mulf %304, %308 : vector<2x64xf32>
    %310 = vector.shape_cast %309 : vector<2x64xf32> to vector<2x1x64xf32>
    %c0_65 = arith.constant 0 : index
    %c4 = arith.constant 4 : index
    %c0_66 = arith.constant 0 : index
    %311 = vector.load %arg18[%c0_65, %c4, %c0_66] : memref<2x12x64xf32, #tpu.memory_space<vmem>>, vector<2x1x64xf32>
    tpu.vector_store %arg18[%c0_65, %c4, %c0_66], %310 {strides = array<i32>} : memref<2x12x64xf32, #tpu.memory_space<vmem>>, vector<2x1x64xf32>,
    %312 = vector.extract_strided_slice %9 {offsets = [0, 5, 0], sizes = [2, 1, 256], strides = [1, 1, 1]} : vector<2x12x256xf32> to vector<2x1x256xf32>
    %313 = vector.shape_cast %312 : vector<2x1x256xf32> to vector<2x256xf32>
    %cst_67 = arith.constant dense<0.000000e+00> : vector<2x256xf32>
    %314 = tpu.matmul %281, %1, %cst_67 {dimension_numbers = #tpu.dot_dimension_numbers<[1], [0], [0], [1], [0, 0, 1, 1], [], []>} : vector<2x64xf32>, vector<64x256xf32>, vector<2x256xf32> -> vector<2x256xf32>
    %315 = arith.addf %313, %314 : vector<2x256xf32>
    %316 = vector.extract_strided_slice %315 {offsets = [0, 0], sizes = [2, 64], strides = [1, 1]} : vector<2x256xf32> to vector<2x64xf32>
    %317 = arith.negf %316 : vector<2x64xf32>
    %318 = math.exp %317 : vector<2x64xf32>
    %cst_68 = arith.constant 1.000000e+00 : f32
    %319 = vector.broadcast %cst_68 : f32 to vector<2x64xf32>
    %320 = arith.addf %319, %318 : vector<2x64xf32>
    %321 = arith.divf %319, %320 : vector<2x64xf32>
    %322 = vector.extract_strided_slice %315 {offsets = [0, 64], sizes = [2, 64], strides = [1, 1]} : vector<2x256xf32> to vector<2x64xf32>
    %323 = arith.negf %322 : vector<2x64xf32>
    %324 = math.exp %323 : vector<2x64xf32>
    %cst_69 = arith.constant 1.000000e+00 : f32
    %325 = vector.broadcast %cst_69 : f32 to vector<2x64xf32>
    %326 = arith.addf %325, %324 : vector<2x64xf32>
    %327 = arith.divf %325, %326 : vector<2x64xf32>
    %328 = vector.extract_strided_slice %315 {offsets = [0, 128], sizes = [2, 64], strides = [1, 1]} : vector<2x256xf32> to vector<2x64xf32>
    %329 = math.tanh %328 : vector<2x64xf32>
    %330 = vector.extract_strided_slice %315 {offsets = [0, 192], sizes = [2, 64], strides = [1, 1]} : vector<2x256xf32> to vector<2x64xf32>
    %331 = arith.negf %330 : vector<2x64xf32>
    %332 = math.exp %331 : vector<2x64xf32>
    %cst_70 = arith.constant 1.000000e+00 : f32
    %333 = vector.broadcast %cst_70 : f32 to vector<2x64xf32>
    %334 = arith.addf %333, %332 : vector<2x64xf32>
    %335 = arith.divf %333, %334 : vector<2x64xf32>
    %336 = arith.mulf %327, %279 : vector<2x64xf32>
    %337 = arith.mulf %321, %329 : vector<2x64xf32>
    %338 = arith.addf %336, %337 : vector<2x64xf32>
    %339 = math.tanh %338 : vector<2x64xf32>
    %340 = arith.mulf %335, %339 : vector<2x64xf32>
    %341 = tpu.concatenate %340, %309 in 1 : vector<2x64xf32>, vector<2x64xf32> -> vector<2x128xf32>
    %cst_71 = arith.constant dense<0.000000e+00> : vector<2x256xf32>
    %342 = tpu.matmul %341, %2, %cst_71 {dimension_numbers = #tpu.dot_dimension_numbers<[1], [0], [0], [1], [0, 0, 1, 1], [], []>} : vector<2x128xf32>, vector<128x256xf32>, vector<2x256xf32> -> vector<2x256xf32>
    %343 = arith.addf %342, %12 : vector<2x256xf32>
    %344 = vector.extract_strided_slice %343 {offsets = [0, 0], sizes = [2, 64], strides = [1, 1]} : vector<2x256xf32> to vector<2x64xf32>
    %345 = arith.negf %344 : vector<2x64xf32>
    %346 = math.exp %345 : vector<2x64xf32>
    %cst_72 = arith.constant 1.000000e+00 : f32
    %347 = vector.broadcast %cst_72 : f32 to vector<2x64xf32>
    %348 = arith.addf %347, %346 : vector<2x64xf32>
    %349 = arith.divf %347, %348 : vector<2x64xf32>
    %350 = vector.extract_strided_slice %343 {offsets = [0, 64], sizes = [2, 64], strides = [1, 1]} : vector<2x256xf32> to vector<2x64xf32>
    %351 = arith.negf %350 : vector<2x64xf32>
    %352 = math.exp %351 : vector<2x64xf32>
    %cst_73 = arith.constant 1.000000e+00 : f32
    %353 = vector.broadcast %cst_73 : f32 to vector<2x64xf32>
    %354 = arith.addf %353, %352 : vector<2x64xf32>
    %355 = arith.divf %353, %354 : vector<2x64xf32>
    %356 = vector.extract_strided_slice %343 {offsets = [0, 128], sizes = [2, 64], strides = [1, 1]} : vector<2x256xf32> to vector<2x64xf32>
    %357 = math.tanh %356 : vector<2x64xf32>
    %358 = vector.extract_strided_slice %343 {offsets = [0, 192], sizes = [2, 64], strides = [1, 1]} : vector<2x256xf32> to vector<2x64xf32>
    %359 = arith.negf %358 : vector<2x64xf32>
    %360 = math.exp %359 : vector<2x64xf32>
    %cst_74 = arith.constant 1.000000e+00 : f32
    %361 = vector.broadcast %cst_74 : f32 to vector<2x64xf32>
    %362 = arith.addf %361, %360 : vector<2x64xf32>
    %363 = arith.divf %361, %362 : vector<2x64xf32>
    %364 = arith.mulf %355, %307 : vector<2x64xf32>
    %365 = arith.mulf %349, %357 : vector<2x64xf32>
    %366 = arith.addf %364, %365 : vector<2x64xf32>
    %367 = math.tanh %366 : vector<2x64xf32>
    %368 = arith.mulf %363, %367 : vector<2x64xf32>
    %369 = vector.shape_cast %368 : vector<2x64xf32> to vector<2x1x64xf32>
    %c0_75 = arith.constant 0 : index
    %c5 = arith.constant 5 : index
    %c0_76 = arith.constant 0 : index
    %370 = vector.load %arg18[%c0_75, %c5, %c0_76] : memref<2x12x64xf32, #tpu.memory_space<vmem>>, vector<2x1x64xf32>
    tpu.vector_store %arg18[%c0_75, %c5, %c0_76], %369 {strides = array<i32>} : memref<2x12x64xf32, #tpu.memory_space<vmem>>, vector<2x1x64xf32>,
    %371 = vector.extract_strided_slice %9 {offsets = [0, 6, 0], sizes = [2, 1, 256], strides = [1, 1, 1]} : vector<2x12x256xf32> to vector<2x1x256xf32>
    %372 = vector.shape_cast %371 : vector<2x1x256xf32> to vector<2x256xf32>
    %cst_77 = arith.constant dense<0.000000e+00> : vector<2x256xf32>
    %373 = tpu.matmul %340, %1, %cst_77 {dimension_numbers = #tpu.dot_dimension_numbers<[1], [0], [0], [1], [0, 0, 1, 1], [], []>} : vector<2x64xf32>, vector<64x256xf32>, vector<2x256xf32> -> vector<2x256xf32>
    %374 = arith.addf %372, %373 : vector<2x256xf32>
    %375 = vector.extract_strided_slice %374 {offsets = [0, 0], sizes = [2, 64], strides = [1, 1]} : vector<2x256xf32> to vector<2x64xf32>
    %376 = arith.negf %375 : vector<2x64xf32>
    %377 = math.exp %376 : vector<2x64xf32>
    %cst_78 = arith.constant 1.000000e+00 : f32
    %378 = vector.broadcast %cst_78 : f32 to vector<2x64xf32>
    %379 = arith.addf %378, %377 : vector<2x64xf32>
    %380 = arith.divf %378, %379 : vector<2x64xf32>
    %381 = vector.extract_strided_slice %374 {offsets = [0, 64], sizes = [2, 64], strides = [1, 1]} : vector<2x256xf32> to vector<2x64xf32>
    %382 = arith.negf %381 : vector<2x64xf32>
    %383 = math.exp %382 : vector<2x64xf32>
    %cst_79 = arith.constant 1.000000e+00 : f32
    %384 = vector.broadcast %cst_79 : f32 to vector<2x64xf32>
    %385 = arith.addf %384, %383 : vector<2x64xf32>
    %386 = arith.divf %384, %385 : vector<2x64xf32>
    %387 = vector.extract_strided_slice %374 {offsets = [0, 128], sizes = [2, 64], strides = [1, 1]} : vector<2x256xf32> to vector<2x64xf32>
    %388 = math.tanh %387 : vector<2x64xf32>
    %389 = vector.extract_strided_slice %374 {offsets = [0, 192], sizes = [2, 64], strides = [1, 1]} : vector<2x256xf32> to vector<2x64xf32>
    %390 = arith.negf %389 : vector<2x64xf32>
    %391 = math.exp %390 : vector<2x64xf32>
    %cst_80 = arith.constant 1.000000e+00 : f32
    %392 = vector.broadcast %cst_80 : f32 to vector<2x64xf32>
    %393 = arith.addf %392, %391 : vector<2x64xf32>
    %394 = arith.divf %392, %393 : vector<2x64xf32>
    %395 = arith.mulf %386, %338 : vector<2x64xf32>
    %396 = arith.mulf %380, %388 : vector<2x64xf32>
    %397 = arith.addf %395, %396 : vector<2x64xf32>
    %398 = math.tanh %397 : vector<2x64xf32>
    %399 = arith.mulf %394, %398 : vector<2x64xf32>
    %400 = tpu.concatenate %399, %368 in 1 : vector<2x64xf32>, vector<2x64xf32> -> vector<2x128xf32>
    %cst_81 = arith.constant dense<0.000000e+00> : vector<2x256xf32>
    %401 = tpu.matmul %400, %2, %cst_81 {dimension_numbers = #tpu.dot_dimension_numbers<[1], [0], [0], [1], [0, 0, 1, 1], [], []>} : vector<2x128xf32>, vector<128x256xf32>, vector<2x256xf32> -> vector<2x256xf32>
    %402 = arith.addf %401, %12 : vector<2x256xf32>
    %403 = vector.extract_strided_slice %402 {offsets = [0, 0], sizes = [2, 64], strides = [1, 1]} : vector<2x256xf32> to vector<2x64xf32>
    %404 = arith.negf %403 : vector<2x64xf32>
    %405 = math.exp %404 : vector<2x64xf32>
    %cst_82 = arith.constant 1.000000e+00 : f32
    %406 = vector.broadcast %cst_82 : f32 to vector<2x64xf32>
    %407 = arith.addf %406, %405 : vector<2x64xf32>
    %408 = arith.divf %406, %407 : vector<2x64xf32>
    %409 = vector.extract_strided_slice %402 {offsets = [0, 64], sizes = [2, 64], strides = [1, 1]} : vector<2x256xf32> to vector<2x64xf32>
    %410 = arith.negf %409 : vector<2x64xf32>
    %411 = math.exp %410 : vector<2x64xf32>
    %cst_83 = arith.constant 1.000000e+00 : f32
    %412 = vector.broadcast %cst_83 : f32 to vector<2x64xf32>
    %413 = arith.addf %412, %411 : vector<2x64xf32>
    %414 = arith.divf %412, %413 : vector<2x64xf32>
    %415 = vector.extract_strided_slice %402 {offsets = [0, 128], sizes = [2, 64], strides = [1, 1]} : vector<2x256xf32> to vector<2x64xf32>
    %416 = math.tanh %415 : vector<2x64xf32>
    %417 = vector.extract_strided_slice %402 {offsets = [0, 192], sizes = [2, 64], strides = [1, 1]} : vector<2x256xf32> to vector<2x64xf32>
    %418 = arith.negf %417 : vector<2x64xf32>
    %419 = math.exp %418 : vector<2x64xf32>
    %cst_84 = arith.constant 1.000000e+00 : f32
    %420 = vector.broadcast %cst_84 : f32 to vector<2x64xf32>
    %421 = arith.addf %420, %419 : vector<2x64xf32>
    %422 = arith.divf %420, %421 : vector<2x64xf32>
    %423 = arith.mulf %414, %366 : vector<2x64xf32>
    %424 = arith.mulf %408, %416 : vector<2x64xf32>
    %425 = arith.addf %423, %424 : vector<2x64xf32>
    %426 = math.tanh %425 : vector<2x64xf32>
    %427 = arith.mulf %422, %426 : vector<2x64xf32>
    %428 = vector.shape_cast %427 : vector<2x64xf32> to vector<2x1x64xf32>
    %c0_85 = arith.constant 0 : index
    %c6 = arith.constant 6 : index
    %c0_86 = arith.constant 0 : index
    %429 = vector.load %arg18[%c0_85, %c6, %c0_86] : memref<2x12x64xf32, #tpu.memory_space<vmem>>, vector<2x1x64xf32>
    tpu.vector_store %arg18[%c0_85, %c6, %c0_86], %428 {strides = array<i32>} : memref<2x12x64xf32, #tpu.memory_space<vmem>>, vector<2x1x64xf32>,
    %430 = vector.extract_strided_slice %9 {offsets = [0, 7, 0], sizes = [2, 1, 256], strides = [1, 1, 1]} : vector<2x12x256xf32> to vector<2x1x256xf32>
    %431 = vector.shape_cast %430 : vector<2x1x256xf32> to vector<2x256xf32>
    %cst_87 = arith.constant dense<0.000000e+00> : vector<2x256xf32>
    %432 = tpu.matmul %399, %1, %cst_87 {dimension_numbers = #tpu.dot_dimension_numbers<[1], [0], [0], [1], [0, 0, 1, 1], [], []>} : vector<2x64xf32>, vector<64x256xf32>, vector<2x256xf32> -> vector<2x256xf32>
    %433 = arith.addf %431, %432 : vector<2x256xf32>
    %434 = vector.extract_strided_slice %433 {offsets = [0, 0], sizes = [2, 64], strides = [1, 1]} : vector<2x256xf32> to vector<2x64xf32>
    %435 = arith.negf %434 : vector<2x64xf32>
    %436 = math.exp %435 : vector<2x64xf32>
    %cst_88 = arith.constant 1.000000e+00 : f32
    %437 = vector.broadcast %cst_88 : f32 to vector<2x64xf32>
    %438 = arith.addf %437, %436 : vector<2x64xf32>
    %439 = arith.divf %437, %438 : vector<2x64xf32>
    %440 = vector.extract_strided_slice %433 {offsets = [0, 64], sizes = [2, 64], strides = [1, 1]} : vector<2x256xf32> to vector<2x64xf32>
    %441 = arith.negf %440 : vector<2x64xf32>
    %442 = math.exp %441 : vector<2x64xf32>
    %cst_89 = arith.constant 1.000000e+00 : f32
    %443 = vector.broadcast %cst_89 : f32 to vector<2x64xf32>
    %444 = arith.addf %443, %442 : vector<2x64xf32>
    %445 = arith.divf %443, %444 : vector<2x64xf32>
    %446 = vector.extract_strided_slice %433 {offsets = [0, 128], sizes = [2, 64], strides = [1, 1]} : vector<2x256xf32> to vector<2x64xf32>
    %447 = math.tanh %446 : vector<2x64xf32>
    %448 = vector.extract_strided_slice %433 {offsets = [0, 192], sizes = [2, 64], strides = [1, 1]} : vector<2x256xf32> to vector<2x64xf32>
    %449 = arith.negf %448 : vector<2x64xf32>
    %450 = math.exp %449 : vector<2x64xf32>
    %cst_90 = arith.constant 1.000000e+00 : f32
    %451 = vector.broadcast %cst_90 : f32 to vector<2x64xf32>
    %452 = arith.addf %451, %450 : vector<2x64xf32>
    %453 = arith.divf %451, %452 : vector<2x64xf32>
    %454 = arith.mulf %445, %397 : vector<2x64xf32>
    %455 = arith.mulf %439, %447 : vector<2x64xf32>
    %456 = arith.addf %454, %455 : vector<2x64xf32>
    %457 = math.tanh %456 : vector<2x64xf32>
    %458 = arith.mulf %453, %457 : vector<2x64xf32>
    %459 = tpu.concatenate %458, %427 in 1 : vector<2x64xf32>, vector<2x64xf32> -> vector<2x128xf32>
    %cst_91 = arith.constant dense<0.000000e+00> : vector<2x256xf32>
    %460 = tpu.matmul %459, %2, %cst_91 {dimension_numbers = #tpu.dot_dimension_numbers<[1], [0], [0], [1], [0, 0, 1, 1], [], []>} : vector<2x128xf32>, vector<128x256xf32>, vector<2x256xf32> -> vector<2x256xf32>
    %461 = arith.addf %460, %12 : vector<2x256xf32>
    %462 = vector.extract_strided_slice %461 {offsets = [0, 0], sizes = [2, 64], strides = [1, 1]} : vector<2x256xf32> to vector<2x64xf32>
    %463 = arith.negf %462 : vector<2x64xf32>
    %464 = math.exp %463 : vector<2x64xf32>
    %cst_92 = arith.constant 1.000000e+00 : f32
    %465 = vector.broadcast %cst_92 : f32 to vector<2x64xf32>
    %466 = arith.addf %465, %464 : vector<2x64xf32>
    %467 = arith.divf %465, %466 : vector<2x64xf32>
    %468 = vector.extract_strided_slice %461 {offsets = [0, 64], sizes = [2, 64], strides = [1, 1]} : vector<2x256xf32> to vector<2x64xf32>
    %469 = arith.negf %468 : vector<2x64xf32>
    %470 = math.exp %469 : vector<2x64xf32>
    %cst_93 = arith.constant 1.000000e+00 : f32
    %471 = vector.broadcast %cst_93 : f32 to vector<2x64xf32>
    %472 = arith.addf %471, %470 : vector<2x64xf32>
    %473 = arith.divf %471, %472 : vector<2x64xf32>
    %474 = vector.extract_strided_slice %461 {offsets = [0, 128], sizes = [2, 64], strides = [1, 1]} : vector<2x256xf32> to vector<2x64xf32>
    %475 = math.tanh %474 : vector<2x64xf32>
    %476 = vector.extract_strided_slice %461 {offsets = [0, 192], sizes = [2, 64], strides = [1, 1]} : vector<2x256xf32> to vector<2x64xf32>
    %477 = arith.negf %476 : vector<2x64xf32>
    %478 = math.exp %477 : vector<2x64xf32>
    %cst_94 = arith.constant 1.000000e+00 : f32
    %479 = vector.broadcast %cst_94 : f32 to vector<2x64xf32>
    %480 = arith.addf %479, %478 : vector<2x64xf32>
    %481 = arith.divf %479, %480 : vector<2x64xf32>
    %482 = arith.mulf %473, %425 : vector<2x64xf32>
    %483 = arith.mulf %467, %475 : vector<2x64xf32>
    %484 = arith.addf %482, %483 : vector<2x64xf32>
    %485 = math.tanh %484 : vector<2x64xf32>
    %486 = arith.mulf %481, %485 : vector<2x64xf32>
    %487 = vector.shape_cast %486 : vector<2x64xf32> to vector<2x1x64xf32>
    %c0_95 = arith.constant 0 : index
    %c7 = arith.constant 7 : index
    %c0_96 = arith.constant 0 : index
    %488 = vector.load %arg18[%c0_95, %c7, %c0_96] : memref<2x12x64xf32, #tpu.memory_space<vmem>>, vector<2x1x64xf32>
    tpu.vector_store %arg18[%c0_95, %c7, %c0_96], %487 {strides = array<i32>} : memref<2x12x64xf32, #tpu.memory_space<vmem>>, vector<2x1x64xf32>,
    %489 = vector.extract_strided_slice %9 {offsets = [0, 8, 0], sizes = [2, 1, 256], strides = [1, 1, 1]} : vector<2x12x256xf32> to vector<2x1x256xf32>
    %490 = vector.shape_cast %489 : vector<2x1x256xf32> to vector<2x256xf32>
    %cst_97 = arith.constant dense<0.000000e+00> : vector<2x256xf32>
    %491 = tpu.matmul %458, %1, %cst_97 {dimension_numbers = #tpu.dot_dimension_numbers<[1], [0], [0], [1], [0, 0, 1, 1], [], []>} : vector<2x64xf32>, vector<64x256xf32>, vector<2x256xf32> -> vector<2x256xf32>
    %492 = arith.addf %490, %491 : vector<2x256xf32>
    %493 = vector.extract_strided_slice %492 {offsets = [0, 0], sizes = [2, 64], strides = [1, 1]} : vector<2x256xf32> to vector<2x64xf32>
    %494 = arith.negf %493 : vector<2x64xf32>
    %495 = math.exp %494 : vector<2x64xf32>
    %cst_98 = arith.constant 1.000000e+00 : f32
    %496 = vector.broadcast %cst_98 : f32 to vector<2x64xf32>
    %497 = arith.addf %496, %495 : vector<2x64xf32>
    %498 = arith.divf %496, %497 : vector<2x64xf32>
    %499 = vector.extract_strided_slice %492 {offsets = [0, 64], sizes = [2, 64], strides = [1, 1]} : vector<2x256xf32> to vector<2x64xf32>
    %500 = arith.negf %499 : vector<2x64xf32>
    %501 = math.exp %500 : vector<2x64xf32>
    %cst_99 = arith.constant 1.000000e+00 : f32
    %502 = vector.broadcast %cst_99 : f32 to vector<2x64xf32>
    %503 = arith.addf %502, %501 : vector<2x64xf32>
    %504 = arith.divf %502, %503 : vector<2x64xf32>
    %505 = vector.extract_strided_slice %492 {offsets = [0, 128], sizes = [2, 64], strides = [1, 1]} : vector<2x256xf32> to vector<2x64xf32>
    %506 = math.tanh %505 : vector<2x64xf32>
    %507 = vector.extract_strided_slice %492 {offsets = [0, 192], sizes = [2, 64], strides = [1, 1]} : vector<2x256xf32> to vector<2x64xf32>
    %508 = arith.negf %507 : vector<2x64xf32>
    %509 = math.exp %508 : vector<2x64xf32>
    %cst_100 = arith.constant 1.000000e+00 : f32
    %510 = vector.broadcast %cst_100 : f32 to vector<2x64xf32>
    %511 = arith.addf %510, %509 : vector<2x64xf32>
    %512 = arith.divf %510, %511 : vector<2x64xf32>
    %513 = arith.mulf %504, %456 : vector<2x64xf32>
    %514 = arith.mulf %498, %506 : vector<2x64xf32>
    %515 = arith.addf %513, %514 : vector<2x64xf32>
    %516 = math.tanh %515 : vector<2x64xf32>
    %517 = arith.mulf %512, %516 : vector<2x64xf32>
    %518 = tpu.concatenate %517, %486 in 1 : vector<2x64xf32>, vector<2x64xf32> -> vector<2x128xf32>
    %cst_101 = arith.constant dense<0.000000e+00> : vector<2x256xf32>
    %519 = tpu.matmul %518, %2, %cst_101 {dimension_numbers = #tpu.dot_dimension_numbers<[1], [0], [0], [1], [0, 0, 1, 1], [], []>} : vector<2x128xf32>, vector<128x256xf32>, vector<2x256xf32> -> vector<2x256xf32>
    %520 = arith.addf %519, %12 : vector<2x256xf32>
    %521 = vector.extract_strided_slice %520 {offsets = [0, 0], sizes = [2, 64], strides = [1, 1]} : vector<2x256xf32> to vector<2x64xf32>
    %522 = arith.negf %521 : vector<2x64xf32>
    %523 = math.exp %522 : vector<2x64xf32>
    %cst_102 = arith.constant 1.000000e+00 : f32
    %524 = vector.broadcast %cst_102 : f32 to vector<2x64xf32>
    %525 = arith.addf %524, %523 : vector<2x64xf32>
    %526 = arith.divf %524, %525 : vector<2x64xf32>
    %527 = vector.extract_strided_slice %520 {offsets = [0, 64], sizes = [2, 64], strides = [1, 1]} : vector<2x256xf32> to vector<2x64xf32>
    %528 = arith.negf %527 : vector<2x64xf32>
    %529 = math.exp %528 : vector<2x64xf32>
    %cst_103 = arith.constant 1.000000e+00 : f32
    %530 = vector.broadcast %cst_103 : f32 to vector<2x64xf32>
    %531 = arith.addf %530, %529 : vector<2x64xf32>
    %532 = arith.divf %530, %531 : vector<2x64xf32>
    %533 = vector.extract_strided_slice %520 {offsets = [0, 128], sizes = [2, 64], strides = [1, 1]} : vector<2x256xf32> to vector<2x64xf32>
    %534 = math.tanh %533 : vector<2x64xf32>
    %535 = vector.extract_strided_slice %520 {offsets = [0, 192], sizes = [2, 64], strides = [1, 1]} : vector<2x256xf32> to vector<2x64xf32>
    %536 = arith.negf %535 : vector<2x64xf32>
    %537 = math.exp %536 : vector<2x64xf32>
    %cst_104 = arith.constant 1.000000e+00 : f32
    %538 = vector.broadcast %cst_104 : f32 to vector<2x64xf32>
    %539 = arith.addf %538, %537 : vector<2x64xf32>
    %540 = arith.divf %538, %539 : vector<2x64xf32>
    %541 = arith.mulf %532, %484 : vector<2x64xf32>
    %542 = arith.mulf %526, %534 : vector<2x64xf32>
    %543 = arith.addf %541, %542 : vector<2x64xf32>
    %544 = math.tanh %543 : vector<2x64xf32>
    %545 = arith.mulf %540, %544 : vector<2x64xf32>
    %546 = vector.shape_cast %545 : vector<2x64xf32> to vector<2x1x64xf32>
    %c0_105 = arith.constant 0 : index
    %c8 = arith.constant 8 : index
    %c0_106 = arith.constant 0 : index
    %547 = vector.load %arg18[%c0_105, %c8, %c0_106] : memref<2x12x64xf32, #tpu.memory_space<vmem>>, vector<2x1x64xf32>
    tpu.vector_store %arg18[%c0_105, %c8, %c0_106], %546 {strides = array<i32>} : memref<2x12x64xf32, #tpu.memory_space<vmem>>, vector<2x1x64xf32>,
    %548 = vector.extract_strided_slice %9 {offsets = [0, 9, 0], sizes = [2, 1, 256], strides = [1, 1, 1]} : vector<2x12x256xf32> to vector<2x1x256xf32>
    %549 = vector.shape_cast %548 : vector<2x1x256xf32> to vector<2x256xf32>
    %cst_107 = arith.constant dense<0.000000e+00> : vector<2x256xf32>
    %550 = tpu.matmul %517, %1, %cst_107 {dimension_numbers = #tpu.dot_dimension_numbers<[1], [0], [0], [1], [0, 0, 1, 1], [], []>} : vector<2x64xf32>, vector<64x256xf32>, vector<2x256xf32> -> vector<2x256xf32>
    %551 = arith.addf %549, %550 : vector<2x256xf32>
    %552 = vector.extract_strided_slice %551 {offsets = [0, 0], sizes = [2, 64], strides = [1, 1]} : vector<2x256xf32> to vector<2x64xf32>
    %553 = arith.negf %552 : vector<2x64xf32>
    %554 = math.exp %553 : vector<2x64xf32>
    %cst_108 = arith.constant 1.000000e+00 : f32
    %555 = vector.broadcast %cst_108 : f32 to vector<2x64xf32>
    %556 = arith.addf %555, %554 : vector<2x64xf32>
    %557 = arith.divf %555, %556 : vector<2x64xf32>
    %558 = vector.extract_strided_slice %551 {offsets = [0, 64], sizes = [2, 64], strides = [1, 1]} : vector<2x256xf32> to vector<2x64xf32>
    %559 = arith.negf %558 : vector<2x64xf32>
    %560 = math.exp %559 : vector<2x64xf32>
    %cst_109 = arith.constant 1.000000e+00 : f32
    %561 = vector.broadcast %cst_109 : f32 to vector<2x64xf32>
    %562 = arith.addf %561, %560 : vector<2x64xf32>
    %563 = arith.divf %561, %562 : vector<2x64xf32>
    %564 = vector.extract_strided_slice %551 {offsets = [0, 128], sizes = [2, 64], strides = [1, 1]} : vector<2x256xf32> to vector<2x64xf32>
    %565 = math.tanh %564 : vector<2x64xf32>
    %566 = vector.extract_strided_slice %551 {offsets = [0, 192], sizes = [2, 64], strides = [1, 1]} : vector<2x256xf32> to vector<2x64xf32>
    %567 = arith.negf %566 : vector<2x64xf32>
    %568 = math.exp %567 : vector<2x64xf32>
    %cst_110 = arith.constant 1.000000e+00 : f32
    %569 = vector.broadcast %cst_110 : f32 to vector<2x64xf32>
    %570 = arith.addf %569, %568 : vector<2x64xf32>
    %571 = arith.divf %569, %570 : vector<2x64xf32>
    %572 = arith.mulf %563, %515 : vector<2x64xf32>
    %573 = arith.mulf %557, %565 : vector<2x64xf32>
    %574 = arith.addf %572, %573 : vector<2x64xf32>
    %575 = math.tanh %574 : vector<2x64xf32>
    %576 = arith.mulf %571, %575 : vector<2x64xf32>
    %577 = tpu.concatenate %576, %545 in 1 : vector<2x64xf32>, vector<2x64xf32> -> vector<2x128xf32>
    %cst_111 = arith.constant dense<0.000000e+00> : vector<2x256xf32>
    %578 = tpu.matmul %577, %2, %cst_111 {dimension_numbers = #tpu.dot_dimension_numbers<[1], [0], [0], [1], [0, 0, 1, 1], [], []>} : vector<2x128xf32>, vector<128x256xf32>, vector<2x256xf32> -> vector<2x256xf32>
    %579 = arith.addf %578, %12 : vector<2x256xf32>
    %580 = vector.extract_strided_slice %579 {offsets = [0, 0], sizes = [2, 64], strides = [1, 1]} : vector<2x256xf32> to vector<2x64xf32>
    %581 = arith.negf %580 : vector<2x64xf32>
    %582 = math.exp %581 : vector<2x64xf32>
    %cst_112 = arith.constant 1.000000e+00 : f32
    %583 = vector.broadcast %cst_112 : f32 to vector<2x64xf32>
    %584 = arith.addf %583, %582 : vector<2x64xf32>
    %585 = arith.divf %583, %584 : vector<2x64xf32>
    %586 = vector.extract_strided_slice %579 {offsets = [0, 64], sizes = [2, 64], strides = [1, 1]} : vector<2x256xf32> to vector<2x64xf32>
    %587 = arith.negf %586 : vector<2x64xf32>
    %588 = math.exp %587 : vector<2x64xf32>
    %cst_113 = arith.constant 1.000000e+00 : f32
    %589 = vector.broadcast %cst_113 : f32 to vector<2x64xf32>
    %590 = arith.addf %589, %588 : vector<2x64xf32>
    %591 = arith.divf %589, %590 : vector<2x64xf32>
    %592 = vector.extract_strided_slice %579 {offsets = [0, 128], sizes = [2, 64], strides = [1, 1]} : vector<2x256xf32> to vector<2x64xf32>
    %593 = math.tanh %592 : vector<2x64xf32>
    %594 = vector.extract_strided_slice %579 {offsets = [0, 192], sizes = [2, 64], strides = [1, 1]} : vector<2x256xf32> to vector<2x64xf32>
    %595 = arith.negf %594 : vector<2x64xf32>
    %596 = math.exp %595 : vector<2x64xf32>
    %cst_114 = arith.constant 1.000000e+00 : f32
    %597 = vector.broadcast %cst_114 : f32 to vector<2x64xf32>
    %598 = arith.addf %597, %596 : vector<2x64xf32>
    %599 = arith.divf %597, %598 : vector<2x64xf32>
    %600 = arith.mulf %591, %543 : vector<2x64xf32>
    %601 = arith.mulf %585, %593 : vector<2x64xf32>
    %602 = arith.addf %600, %601 : vector<2x64xf32>
    %603 = math.tanh %602 : vector<2x64xf32>
    %604 = arith.mulf %599, %603 : vector<2x64xf32>
    %605 = vector.shape_cast %604 : vector<2x64xf32> to vector<2x1x64xf32>
    %c0_115 = arith.constant 0 : index
    %c9 = arith.constant 9 : index
    %c0_116 = arith.constant 0 : index
    %606 = vector.load %arg18[%c0_115, %c9, %c0_116] : memref<2x12x64xf32, #tpu.memory_space<vmem>>, vector<2x1x64xf32>
    tpu.vector_store %arg18[%c0_115, %c9, %c0_116], %605 {strides = array<i32>} : memref<2x12x64xf32, #tpu.memory_space<vmem>>, vector<2x1x64xf32>,
    %607 = vector.extract_strided_slice %9 {offsets = [0, 10, 0], sizes = [2, 1, 256], strides = [1, 1, 1]} : vector<2x12x256xf32> to vector<2x1x256xf32>
    %608 = vector.shape_cast %607 : vector<2x1x256xf32> to vector<2x256xf32>
    %cst_117 = arith.constant dense<0.000000e+00> : vector<2x256xf32>
    %609 = tpu.matmul %576, %1, %cst_117 {dimension_numbers = #tpu.dot_dimension_numbers<[1], [0], [0], [1], [0, 0, 1, 1], [], []>} : vector<2x64xf32>, vector<64x256xf32>, vector<2x256xf32> -> vector<2x256xf32>
    %610 = arith.addf %608, %609 : vector<2x256xf32>
    %611 = vector.extract_strided_slice %610 {offsets = [0, 0], sizes = [2, 64], strides = [1, 1]} : vector<2x256xf32> to vector<2x64xf32>
    %612 = arith.negf %611 : vector<2x64xf32>
    %613 = math.exp %612 : vector<2x64xf32>
    %cst_118 = arith.constant 1.000000e+00 : f32
    %614 = vector.broadcast %cst_118 : f32 to vector<2x64xf32>
    %615 = arith.addf %614, %613 : vector<2x64xf32>
    %616 = arith.divf %614, %615 : vector<2x64xf32>
    %617 = vector.extract_strided_slice %610 {offsets = [0, 64], sizes = [2, 64], strides = [1, 1]} : vector<2x256xf32> to vector<2x64xf32>
    %618 = arith.negf %617 : vector<2x64xf32>
    %619 = math.exp %618 : vector<2x64xf32>
    %cst_119 = arith.constant 1.000000e+00 : f32
    %620 = vector.broadcast %cst_119 : f32 to vector<2x64xf32>
    %621 = arith.addf %620, %619 : vector<2x64xf32>
    %622 = arith.divf %620, %621 : vector<2x64xf32>
    %623 = vector.extract_strided_slice %610 {offsets = [0, 128], sizes = [2, 64], strides = [1, 1]} : vector<2x256xf32> to vector<2x64xf32>
    %624 = math.tanh %623 : vector<2x64xf32>
    %625 = vector.extract_strided_slice %610 {offsets = [0, 192], sizes = [2, 64], strides = [1, 1]} : vector<2x256xf32> to vector<2x64xf32>
    %626 = arith.negf %625 : vector<2x64xf32>
    %627 = math.exp %626 : vector<2x64xf32>
    %cst_120 = arith.constant 1.000000e+00 : f32
    %628 = vector.broadcast %cst_120 : f32 to vector<2x64xf32>
    %629 = arith.addf %628, %627 : vector<2x64xf32>
    %630 = arith.divf %628, %629 : vector<2x64xf32>
    %631 = arith.mulf %622, %574 : vector<2x64xf32>
    %632 = arith.mulf %616, %624 : vector<2x64xf32>
    %633 = arith.addf %631, %632 : vector<2x64xf32>
    %634 = math.tanh %633 : vector<2x64xf32>
    %635 = arith.mulf %630, %634 : vector<2x64xf32>
    %636 = tpu.concatenate %635, %604 in 1 : vector<2x64xf32>, vector<2x64xf32> -> vector<2x128xf32>
    %cst_121 = arith.constant dense<0.000000e+00> : vector<2x256xf32>
    %637 = tpu.matmul %636, %2, %cst_121 {dimension_numbers = #tpu.dot_dimension_numbers<[1], [0], [0], [1], [0, 0, 1, 1], [], []>} : vector<2x128xf32>, vector<128x256xf32>, vector<2x256xf32> -> vector<2x256xf32>
    %638 = arith.addf %637, %12 : vector<2x256xf32>
    %639 = vector.extract_strided_slice %638 {offsets = [0, 0], sizes = [2, 64], strides = [1, 1]} : vector<2x256xf32> to vector<2x64xf32>
    %640 = arith.negf %639 : vector<2x64xf32>
    %641 = math.exp %640 : vector<2x64xf32>
    %cst_122 = arith.constant 1.000000e+00 : f32
    %642 = vector.broadcast %cst_122 : f32 to vector<2x64xf32>
    %643 = arith.addf %642, %641 : vector<2x64xf32>
    %644 = arith.divf %642, %643 : vector<2x64xf32>
    %645 = vector.extract_strided_slice %638 {offsets = [0, 64], sizes = [2, 64], strides = [1, 1]} : vector<2x256xf32> to vector<2x64xf32>
    %646 = arith.negf %645 : vector<2x64xf32>
    %647 = math.exp %646 : vector<2x64xf32>
    %cst_123 = arith.constant 1.000000e+00 : f32
    %648 = vector.broadcast %cst_123 : f32 to vector<2x64xf32>
    %649 = arith.addf %648, %647 : vector<2x64xf32>
    %650 = arith.divf %648, %649 : vector<2x64xf32>
    %651 = vector.extract_strided_slice %638 {offsets = [0, 128], sizes = [2, 64], strides = [1, 1]} : vector<2x256xf32> to vector<2x64xf32>
    %652 = math.tanh %651 : vector<2x64xf32>
    %653 = vector.extract_strided_slice %638 {offsets = [0, 192], sizes = [2, 64], strides = [1, 1]} : vector<2x256xf32> to vector<2x64xf32>
    %654 = arith.negf %653 : vector<2x64xf32>
    %655 = math.exp %654 : vector<2x64xf32>
    %cst_124 = arith.constant 1.000000e+00 : f32
    %656 = vector.broadcast %cst_124 : f32 to vector<2x64xf32>
    %657 = arith.addf %656, %655 : vector<2x64xf32>
    %658 = arith.divf %656, %657 : vector<2x64xf32>
    %659 = arith.mulf %650, %602 : vector<2x64xf32>
    %660 = arith.mulf %644, %652 : vector<2x64xf32>
    %661 = arith.addf %659, %660 : vector<2x64xf32>
    %662 = math.tanh %661 : vector<2x64xf32>
    %663 = arith.mulf %658, %662 : vector<2x64xf32>
    %664 = vector.shape_cast %663 : vector<2x64xf32> to vector<2x1x64xf32>
    %c0_125 = arith.constant 0 : index
    %c10 = arith.constant 10 : index
    %c0_126 = arith.constant 0 : index
    %665 = vector.load %arg18[%c0_125, %c10, %c0_126] : memref<2x12x64xf32, #tpu.memory_space<vmem>>, vector<2x1x64xf32>
    tpu.vector_store %arg18[%c0_125, %c10, %c0_126], %664 {strides = array<i32>} : memref<2x12x64xf32, #tpu.memory_space<vmem>>, vector<2x1x64xf32>,
    %666 = vector.extract_strided_slice %9 {offsets = [0, 11, 0], sizes = [2, 1, 256], strides = [1, 1, 1]} : vector<2x12x256xf32> to vector<2x1x256xf32>
    %667 = vector.shape_cast %666 : vector<2x1x256xf32> to vector<2x256xf32>
    %cst_127 = arith.constant dense<0.000000e+00> : vector<2x256xf32>
    %668 = tpu.matmul %635, %1, %cst_127 {dimension_numbers = #tpu.dot_dimension_numbers<[1], [0], [0], [1], [0, 0, 1, 1], [], []>} : vector<2x64xf32>, vector<64x256xf32>, vector<2x256xf32> -> vector<2x256xf32>
    %669 = arith.addf %667, %668 : vector<2x256xf32>
    %670 = vector.extract_strided_slice %669 {offsets = [0, 0], sizes = [2, 64], strides = [1, 1]} : vector<2x256xf32> to vector<2x64xf32>
    %671 = arith.negf %670 : vector<2x64xf32>
    %672 = math.exp %671 : vector<2x64xf32>
    %cst_128 = arith.constant 1.000000e+00 : f32
    %673 = vector.broadcast %cst_128 : f32 to vector<2x64xf32>
    %674 = arith.addf %673, %672 : vector<2x64xf32>
    %675 = arith.divf %673, %674 : vector<2x64xf32>
    %676 = vector.extract_strided_slice %669 {offsets = [0, 64], sizes = [2, 64], strides = [1, 1]} : vector<2x256xf32> to vector<2x64xf32>
    %677 = arith.negf %676 : vector<2x64xf32>
    %678 = math.exp %677 : vector<2x64xf32>
    %cst_129 = arith.constant 1.000000e+00 : f32
    %679 = vector.broadcast %cst_129 : f32 to vector<2x64xf32>
    %680 = arith.addf %679, %678 : vector<2x64xf32>
    %681 = arith.divf %679, %680 : vector<2x64xf32>
    %682 = vector.extract_strided_slice %669 {offsets = [0, 128], sizes = [2, 64], strides = [1, 1]} : vector<2x256xf32> to vector<2x64xf32>
    %683 = math.tanh %682 : vector<2x64xf32>
    %684 = vector.extract_strided_slice %669 {offsets = [0, 192], sizes = [2, 64], strides = [1, 1]} : vector<2x256xf32> to vector<2x64xf32>
    %685 = arith.negf %684 : vector<2x64xf32>
    %686 = math.exp %685 : vector<2x64xf32>
    %cst_130 = arith.constant 1.000000e+00 : f32
    %687 = vector.broadcast %cst_130 : f32 to vector<2x64xf32>
    %688 = arith.addf %687, %686 : vector<2x64xf32>
    %689 = arith.divf %687, %688 : vector<2x64xf32>
    %690 = arith.mulf %681, %633 : vector<2x64xf32>
    %691 = arith.mulf %675, %683 : vector<2x64xf32>
    %692 = arith.addf %690, %691 : vector<2x64xf32>
    %693 = math.tanh %692 : vector<2x64xf32>
    %694 = arith.mulf %689, %693 : vector<2x64xf32>
    %695 = tpu.concatenate %694, %663 in 1 : vector<2x64xf32>, vector<2x64xf32> -> vector<2x128xf32>
    %cst_131 = arith.constant dense<0.000000e+00> : vector<2x256xf32>
    %696 = tpu.matmul %695, %2, %cst_131 {dimension_numbers = #tpu.dot_dimension_numbers<[1], [0], [0], [1], [0, 0, 1, 1], [], []>} : vector<2x128xf32>, vector<128x256xf32>, vector<2x256xf32> -> vector<2x256xf32>
    %697 = arith.addf %696, %12 : vector<2x256xf32>
    %698 = vector.extract_strided_slice %697 {offsets = [0, 0], sizes = [2, 64], strides = [1, 1]} : vector<2x256xf32> to vector<2x64xf32>
    %699 = arith.negf %698 : vector<2x64xf32>
    %700 = math.exp %699 : vector<2x64xf32>
    %cst_132 = arith.constant 1.000000e+00 : f32
    %701 = vector.broadcast %cst_132 : f32 to vector<2x64xf32>
    %702 = arith.addf %701, %700 : vector<2x64xf32>
    %703 = arith.divf %701, %702 : vector<2x64xf32>
    %704 = vector.extract_strided_slice %697 {offsets = [0, 64], sizes = [2, 64], strides = [1, 1]} : vector<2x256xf32> to vector<2x64xf32>
    %705 = arith.negf %704 : vector<2x64xf32>
    %706 = math.exp %705 : vector<2x64xf32>
    %cst_133 = arith.constant 1.000000e+00 : f32
    %707 = vector.broadcast %cst_133 : f32 to vector<2x64xf32>
    %708 = arith.addf %707, %706 : vector<2x64xf32>
    %709 = arith.divf %707, %708 : vector<2x64xf32>
    %710 = vector.extract_strided_slice %697 {offsets = [0, 128], sizes = [2, 64], strides = [1, 1]} : vector<2x256xf32> to vector<2x64xf32>
    %711 = math.tanh %710 : vector<2x64xf32>
    %712 = vector.extract_strided_slice %697 {offsets = [0, 192], sizes = [2, 64], strides = [1, 1]} : vector<2x256xf32> to vector<2x64xf32>
    %713 = arith.negf %712 : vector<2x64xf32>
    %714 = math.exp %713 : vector<2x64xf32>
    %cst_134 = arith.constant 1.000000e+00 : f32
    %715 = vector.broadcast %cst_134 : f32 to vector<2x64xf32>
    %716 = arith.addf %715, %714 : vector<2x64xf32>
    %717 = arith.divf %715, %716 : vector<2x64xf32>
    %718 = arith.mulf %709, %661 : vector<2x64xf32>
    %719 = arith.mulf %703, %711 : vector<2x64xf32>
    %720 = arith.addf %718, %719 : vector<2x64xf32>
    %721 = math.tanh %720 : vector<2x64xf32>
    %722 = arith.mulf %717, %721 : vector<2x64xf32>
    %723 = vector.shape_cast %722 : vector<2x64xf32> to vector<2x1x64xf32>
    %c0_135 = arith.constant 0 : index
    %c11 = arith.constant 11 : index
    %c0_136 = arith.constant 0 : index
    %724 = vector.load %arg18[%c0_135, %c11, %c0_136] : memref<2x12x64xf32, #tpu.memory_space<vmem>>, vector<2x1x64xf32>
    tpu.vector_store %arg18[%c0_135, %c11, %c0_136], %723 {strides = array<i32>} : memref<2x12x64xf32, #tpu.memory_space<vmem>>, vector<2x1x64xf32>,
    %c0_137 = arith.constant 0 : index
    %c0_138 = arith.constant 0 : index
    %c0_139 = arith.constant 0 : index
    %725 = vector.load %arg18[%c0_137, %c0_138, %c0_139] : memref<2x12x64xf32, #tpu.memory_space<vmem>>, vector<2x12x64xf32>
    %726 = vector.shape_cast %725 : vector<2x12x64xf32> to vector<24x64xf32>
    %c0_140 = arith.constant 0 : index
    %c0_141 = arith.constant 0 : index
    %727 = vector.load %arg9[%c0_140, %c0_141] : memref<64x128xf32, #tpu.memory_space<vmem>>, vector<64x128xf32>
    %cst_142 = arith.constant dense<0.000000e+00> : vector<24x128xf32>
    %728 = tpu.matmul %726, %727, %cst_142 {dimension_numbers = #tpu.dot_dimension_numbers<[1], [0], [0], [1], [0, 0, 1, 1], [], []>} : vector<24x64xf32>, vector<64x128xf32>, vector<24x128xf32> -> vector<24x128xf32>
    %c0_143 = arith.constant 0 : index
    %c0_144 = arith.constant 0 : index
    %729 = vector.load %arg10[%c0_143, %c0_144] : memref<1x128xf32, #tpu.memory_space<vmem>>, vector<1x128xf32>
    %730 = vector.broadcast %729 : vector<1x128xf32> to vector<24x128xf32>
    %731 = arith.addf %728, %730 : vector<24x128xf32>
    %732 = vector.shape_cast %731 : vector<24x128xf32> to vector<2x12x128xf32>
    %733 = vector.extract_strided_slice %732 {offsets = [0, 0, 0], sizes = [2, 12, 64], strides = [1, 1, 1]} : vector<2x12x128xf32> to vector<2x12x64xf32>
    %734 = vector.extract_strided_slice %732 {offsets = [0, 0, 64], sizes = [2, 12, 64], strides = [1, 1, 1]} : vector<2x12x128xf32> to vector<2x12x64xf32>
    %c0_145 = arith.constant 0 : index
    %c0_146 = arith.constant 0 : index
    %735 = vector.load %arg7[%c0_145, %c0_146] : memref<64x64xf32, #tpu.memory_space<vmem>>, vector<64x64xf32>
    %cst_147 = arith.constant dense<0.000000e+00> : vector<2x64xf32>
    %736 = tpu.matmul %722, %735, %cst_147 {dimension_numbers = #tpu.dot_dimension_numbers<[1], [0], [0], [1], [0, 0, 1, 1], [], []>} : vector<2x64xf32>, vector<64x64xf32>, vector<2x64xf32> -> vector<2x64xf32>
    %c0_148 = arith.constant 0 : index
    %c0_149 = arith.constant 0 : index
    %737 = vector.load %arg8[%c0_148, %c0_149] : memref<1x64xf32, #tpu.memory_space<vmem>>, vector<1x64xf32>
    %738 = vector.broadcast %737 : vector<1x64xf32> to vector<2x64xf32>
    %739 = arith.addf %736, %738 : vector<2x64xf32>
    %740 = vector.extract_strided_slice %739 {offsets = [0, 0], sizes = [2, 16], strides = [1, 1]} : vector<2x64xf32> to vector<2x16xf32>
    %741 = vector.extract_strided_slice %733 {offsets = [0, 0, 0], sizes = [2, 12, 16], strides = [1, 1, 1]} : vector<2x12x64xf32> to vector<2x12x16xf32>
    %742 = vector.extract_strided_slice %734 {offsets = [0, 0, 0], sizes = [2, 12, 16], strides = [1, 1, 1]} : vector<2x12x64xf32> to vector<2x12x16xf32>
    %743 = vector.shape_cast %740 : vector<2x16xf32> to vector<2x1x16xf32>
    %744 = vector.broadcast %743 : vector<2x1x16xf32> to vector<2x12x16xf32>
    %745 = arith.mulf %744, %741 : vector<2x12x16xf32>
    %cst_150 = arith.constant dense<0.000000e+00> : vector<2x12xf32>
    %746 = vector.multi_reduction <add>, %745, %cst_150 [2] : vector<2x12x16xf32> to vector<2x12xf32>
    %cst_151 = arith.constant 2.500000e-01 : f32
    %747 = vector.broadcast %cst_151 : f32 to vector<2x12xf32>
    %748 = arith.mulf %746, %747 : vector<2x12xf32>
    %cst_152 = arith.constant dense<0xFF800000> : vector<2xf32>
    %749 = vector.multi_reduction <maximumf>, %748, %cst_152 [1] : vector<2x12xf32> to vector<2xf32>
    %750 = vector.shape_cast %749 : vector<2xf32> to vector<2x1xf32>
    %751 = vector.broadcast %750 : vector<2x1xf32> to vector<2x12xf32>
    %752 = arith.subf %748, %751 : vector<2x12xf32>
    %753 = math.exp %752 : vector<2x12xf32>
    %cst_153 = arith.constant dense<0.000000e+00> : vector<2xf32>
    %754 = vector.multi_reduction <add>, %753, %cst_153 [1] : vector<2x12xf32> to vector<2xf32>
    %755 = vector.shape_cast %754 : vector<2xf32> to vector<2x1xf32>
    %756 = tpu.reciprocal %755 {approx = true} : vector<2x1xf32> -> vector<2x1xf32>
    %757 = vector.broadcast %756 : vector<2x1xf32> to vector<2x12xf32>
    %758 = arith.mulf %753, %757 : vector<2x12xf32>
    %759 = vector.shape_cast %758 : vector<2x12xf32> to vector<2x12x1xf32>
    %760 = vector.broadcast %759 : vector<2x12x1xf32> to vector<2x12x16xf32>
    %761 = arith.mulf %760, %742 : vector<2x12x16xf32>
    %cst_154 = arith.constant dense<0.000000e+00> : vector<2x16xf32>
    %762 = vector.multi_reduction <add>, %761, %cst_154 [1] : vector<2x12x16xf32> to vector<2x16xf32>
    %763 = vector.extract_strided_slice %739 {offsets = [0, 16], sizes = [2, 16], strides = [1, 1]} : vector<2x64xf32> to vector<2x16xf32>
    %764 = vector.extract_strided_slice %733 {offsets = [0, 0, 16], sizes = [2, 12, 16], strides = [1, 1, 1]} : vector<2x12x64xf32> to vector<2x12x16xf32>
    %765 = vector.extract_strided_slice %734 {offsets = [0, 0, 16], sizes = [2, 12, 16], strides = [1, 1, 1]} : vector<2x12x64xf32> to vector<2x12x16xf32>
    %766 = vector.shape_cast %763 : vector<2x16xf32> to vector<2x1x16xf32>
    %767 = vector.broadcast %766 : vector<2x1x16xf32> to vector<2x12x16xf32>
    %768 = arith.mulf %767, %764 : vector<2x12x16xf32>
    %cst_155 = arith.constant dense<0.000000e+00> : vector<2x12xf32>
    %769 = vector.multi_reduction <add>, %768, %cst_155 [2] : vector<2x12x16xf32> to vector<2x12xf32>
    %cst_156 = arith.constant 2.500000e-01 : f32
    %770 = vector.broadcast %cst_156 : f32 to vector<2x12xf32>
    %771 = arith.mulf %769, %770 : vector<2x12xf32>
    %cst_157 = arith.constant dense<0xFF800000> : vector<2xf32>
    %772 = vector.multi_reduction <maximumf>, %771, %cst_157 [1] : vector<2x12xf32> to vector<2xf32>
    %773 = vector.shape_cast %772 : vector<2xf32> to vector<2x1xf32>
    %774 = vector.broadcast %773 : vector<2x1xf32> to vector<2x12xf32>
    %775 = arith.subf %771, %774 : vector<2x12xf32>
    %776 = math.exp %775 : vector<2x12xf32>
    %cst_158 = arith.constant dense<0.000000e+00> : vector<2xf32>
    %777 = vector.multi_reduction <add>, %776, %cst_158 [1] : vector<2x12xf32> to vector<2xf32>
    %778 = vector.shape_cast %777 : vector<2xf32> to vector<2x1xf32>
    %779 = tpu.reciprocal %778 {approx = true} : vector<2x1xf32> -> vector<2x1xf32>
    %780 = vector.broadcast %779 : vector<2x1xf32> to vector<2x12xf32>
    %781 = arith.mulf %776, %780 : vector<2x12xf32>
    %782 = vector.shape_cast %781 : vector<2x12xf32> to vector<2x12x1xf32>
    %783 = vector.broadcast %782 : vector<2x12x1xf32> to vector<2x12x16xf32>
    %784 = arith.mulf %783, %765 : vector<2x12x16xf32>
    %cst_159 = arith.constant dense<0.000000e+00> : vector<2x16xf32>
    %785 = vector.multi_reduction <add>, %784, %cst_159 [1] : vector<2x12x16xf32> to vector<2x16xf32>
    %786 = vector.extract_strided_slice %739 {offsets = [0, 32], sizes = [2, 16], strides = [1, 1]} : vector<2x64xf32> to vector<2x16xf32>
    %787 = vector.extract_strided_slice %733 {offsets = [0, 0, 32], sizes = [2, 12, 16], strides = [1, 1, 1]} : vector<2x12x64xf32> to vector<2x12x16xf32>
    %788 = vector.extract_strided_slice %734 {offsets = [0, 0, 32], sizes = [2, 12, 16], strides = [1, 1, 1]} : vector<2x12x64xf32> to vector<2x12x16xf32>
    %789 = vector.shape_cast %786 : vector<2x16xf32> to vector<2x1x16xf32>
    %790 = vector.broadcast %789 : vector<2x1x16xf32> to vector<2x12x16xf32>
    %791 = arith.mulf %790, %787 : vector<2x12x16xf32>
    %cst_160 = arith.constant dense<0.000000e+00> : vector<2x12xf32>
    %792 = vector.multi_reduction <add>, %791, %cst_160 [2] : vector<2x12x16xf32> to vector<2x12xf32>
    %cst_161 = arith.constant 2.500000e-01 : f32
    %793 = vector.broadcast %cst_161 : f32 to vector<2x12xf32>
    %794 = arith.mulf %792, %793 : vector<2x12xf32>
    %cst_162 = arith.constant dense<0xFF800000> : vector<2xf32>
    %795 = vector.multi_reduction <maximumf>, %794, %cst_162 [1] : vector<2x12xf32> to vector<2xf32>
    %796 = vector.shape_cast %795 : vector<2xf32> to vector<2x1xf32>
    %797 = vector.broadcast %796 : vector<2x1xf32> to vector<2x12xf32>
    %798 = arith.subf %794, %797 : vector<2x12xf32>
    %799 = math.exp %798 : vector<2x12xf32>
    %cst_163 = arith.constant dense<0.000000e+00> : vector<2xf32>
    %800 = vector.multi_reduction <add>, %799, %cst_163 [1] : vector<2x12xf32> to vector<2xf32>
    %801 = vector.shape_cast %800 : vector<2xf32> to vector<2x1xf32>
    %802 = tpu.reciprocal %801 {approx = true} : vector<2x1xf32> -> vector<2x1xf32>
    %803 = vector.broadcast %802 : vector<2x1xf32> to vector<2x12xf32>
    %804 = arith.mulf %799, %803 : vector<2x12xf32>
    %805 = vector.shape_cast %804 : vector<2x12xf32> to vector<2x12x1xf32>
    %806 = vector.broadcast %805 : vector<2x12x1xf32> to vector<2x12x16xf32>
    %807 = arith.mulf %806, %788 : vector<2x12x16xf32>
    %cst_164 = arith.constant dense<0.000000e+00> : vector<2x16xf32>
    %808 = vector.multi_reduction <add>, %807, %cst_164 [1] : vector<2x12x16xf32> to vector<2x16xf32>
    %809 = vector.extract_strided_slice %739 {offsets = [0, 48], sizes = [2, 16], strides = [1, 1]} : vector<2x64xf32> to vector<2x16xf32>
    %810 = vector.extract_strided_slice %733 {offsets = [0, 0, 48], sizes = [2, 12, 16], strides = [1, 1, 1]} : vector<2x12x64xf32> to vector<2x12x16xf32>
    %811 = vector.extract_strided_slice %734 {offsets = [0, 0, 48], sizes = [2, 12, 16], strides = [1, 1, 1]} : vector<2x12x64xf32> to vector<2x12x16xf32>
    %812 = vector.shape_cast %809 : vector<2x16xf32> to vector<2x1x16xf32>
    %813 = vector.broadcast %812 : vector<2x1x16xf32> to vector<2x12x16xf32>
    %814 = arith.mulf %813, %810 : vector<2x12x16xf32>
    %cst_165 = arith.constant dense<0.000000e+00> : vector<2x12xf32>
    %815 = vector.multi_reduction <add>, %814, %cst_165 [2] : vector<2x12x16xf32> to vector<2x12xf32>
    %cst_166 = arith.constant 2.500000e-01 : f32
    %816 = vector.broadcast %cst_166 : f32 to vector<2x12xf32>
    %817 = arith.mulf %815, %816 : vector<2x12xf32>
    %cst_167 = arith.constant dense<0xFF800000> : vector<2xf32>
    %818 = vector.multi_reduction <maximumf>, %817, %cst_167 [1] : vector<2x12xf32> to vector<2xf32>
    %819 = vector.shape_cast %818 : vector<2xf32> to vector<2x1xf32>
    %820 = vector.broadcast %819 : vector<2x1xf32> to vector<2x12xf32>
    %821 = arith.subf %817, %820 : vector<2x12xf32>
    %822 = math.exp %821 : vector<2x12xf32>
    %cst_168 = arith.constant dense<0.000000e+00> : vector<2xf32>
    %823 = vector.multi_reduction <add>, %822, %cst_168 [1] : vector<2x12xf32> to vector<2xf32>
    %824 = vector.shape_cast %823 : vector<2xf32> to vector<2x1xf32>
    %825 = tpu.reciprocal %824 {approx = true} : vector<2x1xf32> -> vector<2x1xf32>
    %826 = vector.broadcast %825 : vector<2x1xf32> to vector<2x12xf32>
    %827 = arith.mulf %822, %826 : vector<2x12xf32>
    %828 = vector.shape_cast %827 : vector<2x12xf32> to vector<2x12x1xf32>
    %829 = vector.broadcast %828 : vector<2x12x1xf32> to vector<2x12x16xf32>
    %830 = arith.mulf %829, %811 : vector<2x12x16xf32>
    %cst_169 = arith.constant dense<0.000000e+00> : vector<2x16xf32>
    %831 = vector.multi_reduction <add>, %830, %cst_169 [1] : vector<2x12x16xf32> to vector<2x16xf32>
    %832 = tpu.concatenate %762, %785, %808, %831 in 1 : vector<2x16xf32>, vector<2x16xf32>, vector<2x16xf32>, vector<2x16xf32> -> vector<2x64xf32>
    %c0_170 = arith.constant 0 : index
    %c0_171 = arith.constant 0 : index
    %833 = vector.load %arg11[%c0_170, %c0_171] : memref<64x64xf32, #tpu.memory_space<vmem>>, vector<64x64xf32>
    %cst_172 = arith.constant dense<0.000000e+00> : vector<2x64xf32>
    %834 = tpu.matmul %832, %833, %cst_172 {dimension_numbers = #tpu.dot_dimension_numbers<[1], [0], [0], [1], [0, 0, 1, 1], [], []>} : vector<2x64xf32>, vector<64x64xf32>, vector<2x64xf32> -> vector<2x64xf32>
    %c0_173 = arith.constant 0 : index
    %c0_174 = arith.constant 0 : index
    %835 = vector.load %arg12[%c0_173, %c0_174] : memref<1x64xf32, #tpu.memory_space<vmem>>, vector<1x64xf32>
    %836 = vector.broadcast %835 : vector<1x64xf32> to vector<2x64xf32>
    %837 = arith.addf %834, %836 : vector<2x64xf32>
    %c0_175 = arith.constant 0 : index
    %c0_176 = arith.constant 0 : index
    %838 = vector.load %arg13[%c0_175, %c0_176] : memref<64x32xf32, #tpu.memory_space<vmem>>, vector<64x32xf32>
    %cst_177 = arith.constant dense<0.000000e+00> : vector<2x32xf32>
    %839 = tpu.matmul %837, %838, %cst_177 {dimension_numbers = #tpu.dot_dimension_numbers<[1], [0], [0], [1], [0, 0, 1, 1], [], []>} : vector<2x64xf32>, vector<64x32xf32>, vector<2x32xf32> -> vector<2x32xf32>
    %c0_178 = arith.constant 0 : index
    %c0_179 = arith.constant 0 : index
    %840 = vector.load %arg14[%c0_178, %c0_179] : memref<1x32xf32, #tpu.memory_space<vmem>>, vector<1x32xf32>
    %841 = vector.broadcast %840 : vector<1x32xf32> to vector<2x32xf32>
    %842 = arith.addf %839, %841 : vector<2x32xf32>
    %cst_180 = arith.constant 0.000000e+00 : f32
    %843 = vector.broadcast %cst_180 : f32 to vector<2x32xf32>
    %844 = arith.maximumf %842, %843 : vector<2x32xf32>
    %c0_181 = arith.constant 0 : index
    %c0_182 = arith.constant 0 : index
    %845 = vector.load %arg15[%c0_181, %c0_182] : memref<32x128xf32, #tpu.memory_space<vmem>>, vector<32x128xf32>
    %cst_183 = arith.constant dense<0.000000e+00> : vector<2x128xf32>
    %846 = tpu.matmul %844, %845, %cst_183 {dimension_numbers = #tpu.dot_dimension_numbers<[1], [0], [0], [1], [0, 0, 1, 1], [], []>} : vector<2x32xf32>, vector<32x128xf32>, vector<2x128xf32> -> vector<2x128xf32>
    %c0_184 = arith.constant 0 : index
    %c0_185 = arith.constant 0 : index
    %847 = vector.load %arg16[%c0_184, %c0_185] : memref<1x128xf32, #tpu.memory_space<vmem>>, vector<1x128xf32>
    %848 = vector.broadcast %847 : vector<1x128xf32> to vector<2x128xf32>
    %849 = arith.addf %846, %848 : vector<2x128xf32>
    %c0_186 = arith.constant 0 : index
    %c0_187 = arith.constant 0 : index
    %850 = vector.load %arg17[%c0_186, %c0_187] : memref<2x128xf32, #tpu.memory_space<vmem>>, vector<2x128xf32>
    tpu.vector_store %arg17[%c0_186, %c0_187], %849 {strides = array<i32>} : memref<2x128xf32, #tpu.memory_space<vmem>>, vector<2x128xf32>,
    return
  }
  func.func @transform_0(%arg0: i32) -> (i32, i32, i32) {
    %c0_i32 = arith.constant 0 : i32
    %c0_i32_0 = arith.constant 0 : i32
    %c0_i32_1 = arith.constant 0 : i32
    return %arg0, %c0_i32, %c0_i32_0 : i32, i32, i32
  }
  func.func @transform_1(%arg0: i32) -> (i32, i32) {
    %c0_i32 = arith.constant 0 : i32
    %c0_i32_0 = arith.constant 0 : i32
    %c0_i32_1 = arith.constant 0 : i32
    return %c0_i32, %c0_i32_0 : i32, i32
  }
  func.func @transform_2(%arg0: i32) -> (i32, i32) {
    %c0_i32 = arith.constant 0 : i32
    %c0_i32_0 = arith.constant 0 : i32
    %c0_i32_1 = arith.constant 0 : i32
    return %c0_i32, %c0_i32_0 : i32, i32
  }
  func.func @transform_3(%arg0: i32) -> (i32, i32) {
    %c0_i32 = arith.constant 0 : i32
    %c0_i32_0 = arith.constant 0 : i32
    %c0_i32_1 = arith.constant 0 : i32
    return %c0_i32, %c0_i32_0 : i32, i32
  }
  func.func @transform_4(%arg0: i32) -> (i32, i32) {
    %c0_i32 = arith.constant 0 : i32
    %c0_i32_0 = arith.constant 0 : i32
    %c0_i32_1 = arith.constant 0 : i32
    return %c0_i32, %c0_i32_0 : i32, i32
  }
  func.func @transform_5(%arg0: i32) -> (i32, i32) {
    %c0_i32 = arith.constant 0 : i32
    %c0_i32_0 = arith.constant 0 : i32
    %c0_i32_1 = arith.constant 0 : i32
    return %c0_i32, %c0_i32_0 : i32, i32
  }
  func.func @transform_6(%arg0: i32) -> (i32, i32) {
    %c0_i32 = arith.constant 0 : i32
    %c0_i32_0 = arith.constant 0 : i32
    %c0_i32_1 = arith.constant 0 : i32
    return %c0_i32, %c0_i32_0 : i32, i32
  }
  func.func @transform_7(%arg0: i32) -> (i32, i32) {
    %c0_i32 = arith.constant 0 : i32
    %c0_i32_0 = arith.constant 0 : i32
    %c0_i32_1 = arith.constant 0 : i32
    return %c0_i32, %c0_i32_0 : i32, i32
  }
  func.func @transform_8(%arg0: i32) -> (i32, i32) {
    %c0_i32 = arith.constant 0 : i32
    %c0_i32_0 = arith.constant 0 : i32
    %c0_i32_1 = arith.constant 0 : i32
    return %c0_i32, %c0_i32_0 : i32, i32
  }
  func.func @transform_9(%arg0: i32) -> (i32, i32) {
    %c0_i32 = arith.constant 0 : i32
    %c0_i32_0 = arith.constant 0 : i32
    %c0_i32_1 = arith.constant 0 : i32
    return %c0_i32, %c0_i32_0 : i32, i32
  }
  func.func @transform_10(%arg0: i32) -> (i32, i32) {
    %c0_i32 = arith.constant 0 : i32
    %c0_i32_0 = arith.constant 0 : i32
    %c0_i32_1 = arith.constant 0 : i32
    return %c0_i32, %c0_i32_0 : i32, i32
  }
  func.func @transform_11(%arg0: i32) -> (i32, i32) {
    %c0_i32 = arith.constant 0 : i32
    %c0_i32_0 = arith.constant 0 : i32
    %c0_i32_1 = arith.constant 0 : i32
    return %c0_i32, %c0_i32_0 : i32, i32
  }
  func.func @transform_12(%arg0: i32) -> (i32, i32) {
    %c0_i32 = arith.constant 0 : i32
    %c0_i32_0 = arith.constant 0 : i32
    %c0_i32_1 = arith.constant 0 : i32
    return %c0_i32, %c0_i32_0 : i32, i32
  }
  func.func @transform_13(%arg0: i32) -> (i32, i32) {
    %c0_i32 = arith.constant 0 : i32
    %c0_i32_0 = arith.constant 0 : i32
    %c0_i32_1 = arith.constant 0 : i32
    return %c0_i32, %c0_i32_0 : i32, i32
  }
  func.func @transform_14(%arg0: i32) -> (i32, i32) {
    %c0_i32 = arith.constant 0 : i32
    %c0_i32_0 = arith.constant 0 : i32
    %c0_i32_1 = arith.constant 0 : i32
    return %c0_i32, %c0_i32_0 : i32, i32
  }
  func.func @transform_15(%arg0: i32) -> (i32, i32) {
    %c0_i32 = arith.constant 0 : i32
    %c0_i32_0 = arith.constant 0 : i32
    %c0_i32_1 = arith.constant 0 : i32
    return %c0_i32, %c0_i32_0 : i32, i32
  }
  func.func @transform_16(%arg0: i32) -> (i32, i32) {
    %c0_i32 = arith.constant 0 : i32
    %c0_i32_0 = arith.constant 0 : i32
    return %arg0, %c0_i32 : i32, i32
  }
}

</mosaic_0001>

<bundles_post_ra>
// kernel: tpu_custom_call.1
= control target key start
LH: loop header
LB: loop body
LE: loop exit
PB: predicated region body
PF: predicated region fallthrough
CT: control target
= control target key end

     0   :  { %s8612_s0 = inlined_call_operand.vmem [shape: f32[2,12,8], index: 0, kind: input, shape index: {}]   ;;  %s8613_s1 = inlined_call_operand.hbm [shape: f32[8,256], index: 1, kind: input, shape index: {}]   ;;  %s8614_s2 = inlined_call_operand.vmem [shape: f32[64,256], index: 2, kind: input, shape index: {}]   ;;  %s8615_s3 = inlined_call_operand.hbm [shape: f32[1,256], index: 3, kind: input, shape index: {}]   ;;  %s8616_s4 = inlined_call_operand.hbm [shape: f32[128,256], index: 4, kind: input, shape index: {}]   ;;  %s8617_s5 = inlined_call_operand.hbm [shape: f32[1,256], index: 5, kind: input, shape index: {}]   ;;  %s8618_s6 = inlined_call_operand.hbm [shape: f32[64,64], index: 6, kind: input, shape index: {}]   ;;  %s8619_s7 = inlined_call_operand.vmem [shape: f32[1,64], index: 7, kind: input, shape index: {}]   ;;  %s8620_s8 = inlined_call_operand.hbm [shape: f32[64,128], index: 8, kind: input, shape index: {}]   ;;  %s8621_s9 = inlined_call_operand.hbm [shape: f32[1,128], index: 9, kind: input, shape index: {}]   ;;  %s8622_s10 = inlined_call_operand.hbm [shape: f32[64,64], index: 10, kind: input, shape index: {}]   ;;  %s8623_s11 = inlined_call_operand.hbm [shape: f32[1,64], index: 11, kind: input, shape index: {}]   ;;  %s8624_s12 = inlined_call_operand.vmem [shape: f32[64,32], index: 12, kind: input, shape index: {}]   ;;  %s8625_s13 = inlined_call_operand.hbm [shape: f32[1,32], index: 13, kind: input, shape index: {}]   ;;  %s8626_s14 = inlined_call_operand.vmem [shape: f32[32,128], index: 14, kind: input, shape index: {}]   ;;  %s8627_s15 = inlined_call_operand.vmem [shape: f32[1,128], index: 15, kind: input, shape index: {}]   ;;  %s8628_s16 = inlined_call_operand.hbm [shape: f32[2,128], index: 16, kind: output, shape index: {}]  }
   0x1   :  { %8633 = sst [smem:[#allocation28_spill]] %s8612_s0 }
   0x2   :  { %21 = vsyncpa [#allocation4], 0 }
   0x3   :  { %22 = vsyncpa [#allocation7], 0 }
   0x4   :  { %23 = vsyncpa [#allocation10], 0 }
   0x5   :  { %24 = vsyncpa [#allocation13], 0 }
   0x6   :  { %25 = vsyncpa [#allocation16], 0 }
   0x7   :  { %26 = vsyncpa [#allocation19], 0 }
   0x8   :  { %27 = vsyncpa [#allocation5], 0  ;;  %s6951_s21 = smov [#allocation6]   ;;  %s6952_s23 = smov [#allocation9]  }
   0x9   :  { %s48_s22 = sshll.u32 %s6951_s21, 4  ;;  %s70_s24 = sshll.u32 %s6952_s23, 4  ;;  %s49_s22 = int_to_ptr.vmem [resolvable:$true] %s48_s22  ;;  %s71_s24 = int_to_ptr.vmem [resolvable:$true] %s70_s24 }
   0xa   :  { %s6695_s27 = scalar_lea.hbm %s8615_s3, 32 }
   0xb   :  { %p6696_p0 = scmp.ne.s32.totalorder %s8615_s3, %s6695_s27  ;;  %p6699_p1 = scmp.lt.u32.totalorder %s6695_s27, %s8615_s3 }
   0xd   :  { %p6701_p2 = pnand %p6699_p1, %p6696_p0 }
   0xf   :  { %6704 = shalt.err (!%p6701_p2)
}
  0x10   :  { %s6705_s17 = scalar_lea.vmem %s49_s22, 32  ;;  %p6710_p4 = scmp.lt.s32.totalorder %s49_s22, %s49_s22 }
  0x11   :  { %p6706_p3 = scmp.ne.s32.totalorder %s49_s22, %s6705_s17  ;;  %p6711_p5 = scmp.lt.s32.totalorder %s6705_s17, %s6705_s17 }
  0x13   :  { %p6712_p6 = por %p6711_p5, %p6710_p4 }
  0x15   :  { %p6713_p7 = pnand %p6712_p6, %p6706_p3 }
  0x17   :  { %6716 = shalt.err (!%p6713_p7)
}
  0x18   :  { %51 = dma.hbm_to_vmem [thread:$0]  %s8615_s3, 32, %s49_s22, [#allocation7]  }
  0x19   :  { %s6717_s23 = scalar_lea.hbm %s8617_s5, 32 }
  0x1a   :  { %p6718_p8 = scmp.ne.s32.totalorder %s8617_s5, %s6717_s23  ;;  %p6721_p9 = scmp.lt.u32.totalorder %s6717_s23, %s8617_s5 }
  0x1c   :  { %p6723_p10 = pnand %p6721_p9, %p6718_p8 }
  0x1e   :  { %6726 = shalt.err (!%p6723_p10)
}
  0x1f   :  { %s6727_s29 = scalar_lea.vmem %s71_s24, 32  ;;  %p6732_p12 = scmp.lt.s32.totalorder %s71_s24, %s71_s24 }
  0x20   :  { %p6728_p11 = scmp.ne.s32.totalorder %s71_s24, %s6727_s29  ;;  %p6733_p13 = scmp.lt.s32.totalorder %s6727_s29, %s6727_s29 }
  0x22   :  { %p6734_p0 = por %p6733_p13, %p6732_p12 }
  0x24   :  { %p6735_p1 = pnand %p6734_p0, %p6728_p11 }
  0x26   :  { %6738 = shalt.err (!%p6735_p1)
}
  0x27   :  { %73 = dma.hbm_to_vmem [thread:$0]  %s8617_s5, 32, %s71_s24, [#allocation10]  }
  0x28   :  { %s6953_s30 = smov [#allocation12]   ;;  %s6954_s17 = smov [#allocation15]  }
  0x29   :  { %s93_s0 = sshll.u32 %s6953_s30, 4  ;;  %s115_s18 = sshll.u32 %s6954_s17, 4  ;;  %s94_s0 = int_to_ptr.vmem [resolvable:$true] %s93_s0  ;;  %s7086_s18 = int_to_ptr.vmem [resolvable:$true] %s115_s18 }
  0x2a   :  { %s6739_s21 = scalar_lea.hbm %s8620_s8, 1024 }
  0x2b   :  { %p6740_p2 = scmp.ne.s32.totalorder %s8620_s8, %s6739_s21  ;;  %p6743_p3 = scmp.lt.u32.totalorder %s6739_s21, %s8620_s8 }
  0x2d   :  { %p6745_p4 = pnand %p6743_p3, %p6740_p2 }
  0x2f   :  { %6748 = shalt.err (!%p6745_p4)
}
  0x30   :  { %s6749_s5 = scalar_lea.vmem %s94_s0, 1024  ;;  %p6754_p6 = scmp.lt.s32.totalorder %s94_s0, %s94_s0 }
  0x31   :  { %p6750_p5 = scmp.ne.s32.totalorder %s94_s0, %s6749_s5  ;;  %p6755_p7 = scmp.lt.s32.totalorder %s6749_s5, %s6749_s5 }
  0x33   :  { %p6756_p8 = por %p6755_p7, %p6754_p6 }
  0x35   :  { %p6757_p9 = pnand %p6756_p8, %p6750_p5 }
  0x37   :  { %6760 = shalt.err (!%p6757_p9)
}
  0x38   :  { %s6955_s24 = smov 128   ;;  %s6956_s28 = smov 8  }
  0x39   :  { %99 = dma.hbm_to_vmem [thread:$0]  %s8620_s8, 1024, %s94_s0, [#allocation13], %s6955_s24, %s6955_s24, %s6956_s28  }
  0x3a   :  { %s6761_s17 = scalar_lea.hbm %s8622_s10, 1024 }
  0x3b   :  { %p6762_p10 = scmp.ne.s32.totalorder %s8622_s10, %s6761_s17  ;;  %p6765_p11 = scmp.lt.u32.totalorder %s6761_s17, %s8622_s10 }
  0x3d   :  { %p6767_p12 = pnand %p6765_p11, %p6762_p10 }
  0x3f   :  { %6770 = shalt.err (!%p6767_p12)
}
  0x40   :  { %s6771_s25 = scalar_lea.vmem %s7086_s18, 1024  ;;  %p6776_p0 = scmp.lt.s32.totalorder %s7086_s18, %s7086_s18 }
  0x41   :  { %p6772_p13 = scmp.ne.s32.totalorder %s7086_s18, %s6771_s25  ;;  %p6777_p1 = scmp.lt.s32.totalorder %s6771_s25, %s6771_s25 }
  0x43   :  { %p6778_p2 = por %p6777_p1, %p6776_p0 }
  0x45   :  { %p6779_p3 = pnand %p6778_p2, %p6772_p13 }
  0x47   :  { %6782 = shalt.err (!%p6779_p3)
}
  0x48   :  { %121 = dma.hbm_to_vmem [thread:$0]  %s8622_s10, 1024, %s7086_s18, [#allocation16], %s6955_s24, %s6955_s24, %s6956_s28  }
  0x49   :  { %s6957_s26 = smov [#allocation3]   ;;  %s6958_s5 = smov [#allocation8]  }
  0x4a   :  { %s36_s27 = sshll.u32 %s6957_s26, 4  ;;  %s57_s29 = sshll.u32 %s6958_s5, 4  ;;  %s37_s27 = int_to_ptr.vmem [resolvable:$true] %s36_s27  ;;  %s7123_s29 = int_to_ptr.vmem [resolvable:$true] %s57_s29 }
  0x4b   :  { %s6783_s30 = scalar_lea.hbm %s8613_s1, 256 }
  0x4c   :  { %p6784_p4 = scmp.ne.s32.totalorder %s8613_s1, %s6783_s30  ;;  %p6787_p5 = scmp.lt.u32.totalorder %s6783_s30, %s8613_s1 }
  0x4e   :  { %p6789_p6 = pnand %p6787_p5, %p6784_p4 }
  0x50   :  { %6792 = shalt.err (!%p6789_p6)
}
  0x51   :  { %s6793_s10 = scalar_lea.vmem %s37_s27, 256  ;;  %p6798_p8 = scmp.lt.s32.totalorder %s37_s27, %s37_s27 }
  0x52   :  { %p6794_p7 = scmp.ne.s32.totalorder %s37_s27, %s6793_s10  ;;  %p6799_p9 = scmp.lt.s32.totalorder %s6793_s10, %s6793_s10 }
  0x54   :  { %p6800_p10 = por %p6799_p9, %p6798_p8 }
  0x56   :  { %p6801_p11 = pnand %p6800_p10, %p6794_p7 }
  0x58   :  { %6804 = shalt.err (!%p6801_p11)
}
  0x59   :  { %39 = dma.hbm_to_vmem [thread:$0]  %s8613_s1, 256, %s37_s27, [#allocation4]  }
  0x5a   :  { %s6805_s0 = scalar_lea.hbm %s8616_s4, 4096 }
  0x5b   :  { %p6806_p12 = scmp.ne.s32.totalorder %s8616_s4, %s6805_s0  ;;  %p6809_p13 = scmp.lt.u32.totalorder %s6805_s0, %s8616_s4 }
  0x5d   :  { %p6811_p0 = pnand %p6809_p13, %p6806_p12 }
  0x5f   :  { %6814 = shalt.err (!%p6811_p0)
}
  0x60   :  { %s6815_s30 = scalar_lea.vmem %s7123_s29, 4096  ;;  %p6820_p2 = scmp.lt.s32.totalorder %s7123_s29, %s7123_s29 }
  0x61   :  { %p6816_p1 = scmp.ne.s32.totalorder %s7123_s29, %s6815_s30  ;;  %p6821_p3 = scmp.lt.s32.totalorder %s6815_s30, %s6815_s30 }
  0x63   :  { %p6822_p4 = por %p6821_p3, %p6820_p2 }
  0x65   :  { %p6823_p5 = pnand %p6822_p4, %p6816_p1 }
  0x67   :  { %6826 = shalt.err (!%p6823_p5)
}
  0x68   :  { %s6959_s1 = smov 256   ;;  %s6960_s27 = smov 16  }
  0x69   :  { %63 = dma.hbm_to_vmem [thread:$0]  %s8616_s4, 4096, %s7123_s29, [#allocation7], %s6959_s1, %s6959_s1, %s6960_s27  }
  0x6a   :  { %s6961_s20 = smov [#allocation11]   ;;  %s6962_s10 = smov [#allocation14]  }
  0x6b   :  { %s79_s21 = sshll.u32 %s6961_s20, 4  ;;  %s106_s18 = sshll.u32 %s6962_s10, 4  ;;  %s80_s21 = int_to_ptr.vmem [resolvable:$true] %s79_s21  ;;  %s107_s18 = int_to_ptr.vmem [resolvable:$true] %s106_s18 }
  0x6c   :  { %s6827_s8 = scalar_lea.hbm %s8618_s6, 1024 }
  0x6d   :  { %p6828_p6 = scmp.ne.s32.totalorder %s8618_s6, %s6827_s8  ;;  %p6831_p7 = scmp.lt.u32.totalorder %s6827_s8, %s8618_s6 }
  0x6f   :  { %p6833_p8 = pnand %p6831_p7, %p6828_p6 }
  0x71   :  { %6836 = shalt.err (!%p6833_p8)
}
  0x72   :  { %s6837_s4 = scalar_lea.vmem %s80_s21, 1024  ;;  %p6842_p10 = scmp.lt.s32.totalorder %s80_s21, %s80_s21 }
  0x73   :  { %p6838_p9 = scmp.ne.s32.totalorder %s80_s21, %s6837_s4  ;;  %p6843_p11 = scmp.lt.s32.totalorder %s6837_s4, %s6837_s4 }
  0x75   :  { %p6844_p12 = por %p6843_p11, %p6842_p10 }
  0x77   :  { %p6845_p13 = pnand %p6844_p12, %p6838_p9 }
  0x79   :  { %6848 = shalt.err (!%p6845_p13)
}
  0x7a   :  { %85 = dma.hbm_to_vmem [thread:$0]  %s8618_s6, 1024, %s80_s21, [#allocation10], %s6955_s24, %s6955_s24, %s6956_s28  }
  0x7b   :  { %s6849_s17 = scalar_lea.hbm %s8621_s9, 16 }
  0x7c   :  { %p6850_p0 = scmp.ne.s32.totalorder %s8621_s9, %s6849_s17  ;;  %p6853_p1 = scmp.lt.u32.totalorder %s6849_s17, %s8621_s9 }
  0x7e   :  { %p6855_p2 = pnand %p6853_p1, %p6850_p0 }
  0x80   :  { %6858 = shalt.err (!%p6855_p2)
}
  0x81   :  { %s6859_s25 = scalar_lea.vmem %s107_s18, 16  ;;  %s6863_s8 = scalar_lea.vmem %s107_s18, 32 }
  0x82   :  { %p6860_p3 = scmp.ne.s32.totalorder %s107_s18, %s6859_s25  ;;  %p6864_p4 = scmp.lt.s32.totalorder %s107_s18, %s107_s18 }
  0x83   :  { %p6865_p5 = scmp.lt.s32.totalorder %s6863_s8, %s6859_s25 }
  0x85   :  { %p6866_p6 = por %p6865_p5, %p6864_p4 }
  0x87   :  { %p6867_p7 = pnand %p6866_p6, %p6860_p3 }
  0x89   :  { %6870 = shalt.err (!%p6867_p7)
}
  0x8a   :  { %109 = dma.hbm_to_vmem [thread:$0]  %s8621_s9, 16, %s107_s18, [#allocation13]  }
  0x8b   :  { %s6963_s28 = smov [#allocation17]   ;;  %s6964_s0 = smov [#allocation18]  }
  0x8c   :  { %s128_s21 = sshll.u32 %s6963_s28, 4  ;;  %s140_s26 = sshll.u32 %s6964_s0, 4  ;;  %s129_s21 = int_to_ptr.vmem [resolvable:$true] %s128_s21  ;;  %s141_s26 = int_to_ptr.vmem [resolvable:$true] %s140_s26 }
  0x8d   :  { %s6871_s4 = scalar_lea.hbm %s8623_s11, 16 }
  0x8e   :  { %p6872_p8 = scmp.ne.s32.totalorder %s8623_s11, %s6871_s4  ;;  %p6875_p9 = scmp.lt.u32.totalorder %s6871_s4, %s8623_s11 }
  0x90   :  { %p6877_p10 = pnand %p6875_p9, %p6872_p8 }
  0x92   :  { %6880 = shalt.err (!%p6877_p10)
}
  0x93   :  { %s6881_s9 = scalar_lea.vmem %s129_s21, 16  ;;  %s6885_s18 = scalar_lea.vmem %s129_s21, 32 }
  0x94   :  { %p6882_p11 = scmp.ne.s32.totalorder %s129_s21, %s6881_s9  ;;  %p6886_p12 = scmp.lt.s32.totalorder %s129_s21, %s129_s21 }
  0x95   :  { %p6887_p13 = scmp.lt.s32.totalorder %s6885_s18, %s6881_s9 }
  0x97   :  { %p6888_p0 = por %p6887_p13, %p6886_p12 }
  0x99   :  { %p6889_p1 = pnand %p6888_p0, %p6882_p11 }
  0x9b   :  { %6892 = shalt.err (!%p6889_p1)
}
  0x9c   :  { %131 = dma.hbm_to_vmem [thread:$0]  %s8623_s11, 16, %s129_s21, [#allocation16]  }
  0x9d   :  { %s6893_s23 = scalar_lea.hbm %s8625_s13, 16 }
  0x9e   :  { %p6894_p2 = scmp.ne.s32.totalorder %s8625_s13, %s6893_s23  ;;  %p6897_p3 = scmp.lt.u32.totalorder %s6893_s23, %s8625_s13 }
  0xa0   :  { %p6899_p4 = pnand %p6897_p3, %p6894_p2 }
  0xa2   :  { %6902 = shalt.err (!%p6899_p4)
}
  0xa3   :  { %s6903_s28 = scalar_lea.vmem %s141_s26, 16  ;;  %s6907_s0 = scalar_lea.vmem %s141_s26, 32 }
  0xa4   :  { %p6904_p5 = scmp.ne.s32.totalorder %s141_s26, %s6903_s28  ;;  %p6908_p6 = scmp.lt.s32.totalorder %s141_s26, %s141_s26 }
  0xa5   :  { %p6909_p7 = scmp.lt.s32.totalorder %s6907_s0, %s6903_s28 }
  0xa7   :  { %p6910_p8 = por %p6909_p7, %p6908_p6 }
  0xa9   :  { %p6911_p9 = pnand %p6910_p8, %p6904_p5 }
  0xab   :  { %6914 = shalt.err (!%p6911_p9)
}
  0xac   :  { %143 = dma.hbm_to_vmem [thread:$0]  %s8625_s13, 16, %s141_s26, [#allocation19]  }
  0xad   :  { %6937 = dma.done.wait [#allocation4], 256  }
  0xae   :  { %6938 = vsyncadd [#allocation4], 4294967040 }
  0xaf   :  { %6939 = dma.done.wait [#allocation7], 4128  }
  0xb0   :  { %6940 = vsyncadd [#allocation7], 4294963168 }
  0xb1   :  { %6941 = dma.done.wait [#allocation10], 1056  }
  0xb2   :  { %6942 = vsyncadd [#allocation10], 4294966240 }
  0xb3   :  { %6943 = dma.done.wait [#allocation13], 1040  }
  0xb4   :  { %6944 = vsyncadd [#allocation13], 4294966256 }
  0xb5   :  { %6945 = dma.done.wait [#allocation16], 1040  }
  0xb6   :  { %6946 = vsyncadd [#allocation16], 4294966256 }
  0xb7   :  { %6947 = dma.done.wait [#allocation19], 16  }
  0xb8   :  { %6948 = vsyncadd [#allocation19], 4294967280  ;;  %v8631_v0 = vmov 0.0   ;;  %v183_v1 = vld [vmem:[%s8614_s2 + $0x8] sm:$0xff]  ;;  %v185_v2 = vld [vmem:[%s8614_s2 + $0x18] sm:$0xff]  ;;  %s8634_s11 = sld [smem:[#allocation28_spill]]  ;;  %v8630_v33 = vlaneseq }
  0xb9   :  { %324 = vmatprep.mubr.f32.mxu0 %v8631_v0  ;;  %441 = vmatprep.mubr.f32.mxu1 %v8631_v0  ;;  %v182_v3 = vld [vmem:[%s8614_s2] sm:$0xff]  ;;  %v7217_v4 = vpack.c.bf16 %v185_v2, %v183_v1  ;;  %v184_v5 = vld [vmem:[%s8614_s2 + $0x10] sm:$0xff]  ;;  %v187_v6 = vld [vmem:[%s8614_s2 + $0x28] sm:$0xff]  ;;  %vm253_vm0 = vcmask 64512   ;;  %vm532_vm1 = vcmask 1041409   ;;  %vm373_vm2 = vcmask 523264  }
  0xba   :  { %v189_v7 = vld [vmem:[%s8614_s2 + $0x38] sm:$0xff]  ;;  %v7228_v8 = vpack.c.bf16 %v184_v5, %v182_v3  ;;  %v186_v10 = vld [vmem:[%s8614_s2 + $0x20] sm:$0xff]  ;;  %v188_v11 = vld [vmem:[%s8614_s2 + $0x30] sm:$0xff]  ;;  %v7307_v34 = vshrl.u32 %v8630_v33, 7  ;;  %vm832_vm3 = vcmask 1042434   ;;  %vm1138_vm4 = vcmask 1043459  }
  0xbb   :  { %v7230_v9 = vpack.c.bf16 %v189_v7, %v187_v6  ;;  %v191_v12 = vld [vmem:[%s8614_s2 + $0x48] sm:$0xff]  ;;  %5560 = vmatprep.subr.bf16.mxu1 %v7217_v4  ;;  %v193_v13 = vld [vmem:[%s8614_s2 + $0x58] sm:$0xff]  ;;  %v7246_v14 = vpack.c.bf16 %v188_v11, %v186_v10  ;;  %v236_v16 = vld [vmem:[#allocation3] sm:$0xff]  ;;  %vm1444_vm5 = vcmask 1044484   ;;  %vm666_vm6 = vcmask 516096   ;;  %s6971_s24 = smov 96  }
  0xbc   :  { %5562 = vmatpush1.bf16.msra.mxu1 %v7228_v8  ;;  %v237_v15 = vld [vmem:[#allocation3 + $0x8] sm:$0xff]  ;;  %v7252_v18 = vpack.c.bf16 %v193_v13, %v191_v12  ;;  %v190_v19 = vld [vmem:[%s8614_s2 + $0x40] sm:$0xff]  ;;  %v192_v20 = vld [vmem:[%s8614_s2 + $0x50] sm:$0xff]  ;;  %v7310_v35 = vsub.s32 0, %v7307_v34  ;;  %v7313_v37 = vsub.s32 1, %v7307_v34  ;;  %vm6969_vm7 = vmmov 0  }
  0xbd   :  { %5564 = vmatprep.subr.bf16.mxu1 %v7230_v9  ;;  %260 = vmatprep.subr.mxu0 %v237_v15  ;;  %v195_v22 = vld [vmem:[%s8614_s2 + $0x68] sm:$0xff]  ;;  %v197_v23 = vld [vmem:[%s8614_s2 + $0x78] sm:$0xff]  ;;  %v7275_v27 = vpack.c.bf16 %v192_v20, %v190_v19  ;;  %v194_v29 = vld [vmem:[%s8614_s2 + $0x60] sm:$0xff]  ;;  %s6972_s28 = smov 80   ;;  %vm4268_vm8 = vcmask 125952   ;;  %vm4264_vm9 = vcmask 130048  }
  0xbe   :  { %v178_v17 = vld [vmem:[%s8634_s11] sm:$0xff]  ;;  %261 = vmatpush1.msra.mxu0 %v236_v16  ;;  %v179_v24 = vld [vmem:[%s8634_s11 + $0x8] sm:$0xf]  ;;  %v7272_v25 = vld [vmem:[%s8634_s11 + $0x10] sm:$0xff]  ;;  %v7279_v28 = vpack.c.bf16 %v197_v23, %v195_v22  ;;  %vm4297_vm10 = vcmask 130112   ;;  %vm4310_vm11 = vcmask 91136  }
  0xbf   :  { %v234_v21 = vcombine.high %v178_v17, %v178_v17  ;;  %v196_v30 = vld [vmem:[%s8614_s2 + $0x70] sm:$0xff]  ;;  %v251_v31 = vcombine.low %v179_v24, %v7272_v25  ;;  %s6966_s2 = smov 64   ;;  %v199_v12 = vld [vmem:[#allocation8 + $0x8] sm:$0xff]  ;;  %v204_v24 = vld [vmem:[#allocation8 + $0x30] sm:$0xff]  ;;  %s6974_s0 = smov 48   ;;  %vm5034_vm12 = vcmask 261120  }
  0xc0   :  { %5566 = vmatpush1.bf16.msra.mxu1 %v7246_v14  ;;  %v7290_v32 = vpack.c.bf16 %v196_v30, %v194_v29  ;;  %v238_v36 = vld [vmem:[#allocation6] sm:$0x3]  ;;  %v198_v15 = vld [vmem:[#allocation8] sm:$0xff]  ;;  %v203_v19 = vld [vmem:[#allocation8 + $0x28] sm:$0xff]  ;;  %vm5036_vm13 = vcmask 392192  }
  0xc1   :  { %v250_v26 = vcombine.low %v178_v17, %v234_v21  ;;  %5568 = vmatprep.subr.bf16.mxu1 %v7252_v18  ;;  %v7316_v38 = vrot.slane %v238_v36, %v7310_v35  ;;  %v7319_v39 = vrot.slane %v238_v36, %v7313_v37  ;;  %v201_v13 = vld [vmem:[#allocation8 + $0x18] sm:$0xff]  ;;  %v200_v17 = vld [vmem:[#allocation8 + $0x10] sm:$0xff]  ;;  %v202_v23 = vld [vmem:[#allocation8 + $0x20] sm:$0xff] }
  0xc2   :  { %v7342_v16 = vpack.c.bf16 %v201_v13, %v199_v12  ;;  %v205_v20 = vld [vmem:[#allocation8 + $0x38] sm:$0xff]  ;;  %v7344_v21 = vpack.c.bf16 %v200_v17, %v198_v15  ;;  %v7351_v30 = vpack.c.bf16 %v204_v24, %v202_v23  ;;  %v206_v36 = vld [vmem:[#allocation8 + $0x40] sm:$0xff]  ;;  %v224_v13 = vld [vmem:[#allocation8 + $0xd0] sm:$0xff] }
  0xc3   :  { %5320 = vmatmul.mubr.msk.f32.vlgmr.msra.gmra.mrb[0].mxu0 %vm253_vm0, %v250_v26  ;;  %v7346_v22 = vpack.c.bf16 %v205_v20, %v203_v19  ;;  %v207_v26 = vld [vmem:[#allocation8 + $0x48] sm:$0xff]  ;;  %v209_v29 = vld [vmem:[#allocation8 + $0x58] sm:$0xff]  ;;  %v222_v12 = vld [vmem:[#allocation8 + $0xc0] sm:$0xff] }
  0xc4   :  { %330 = vmatprep.mubr.f32.mxu0 %v8631_v0  ;;  %5570 = vmatpush1.bf16.msra.mxu1 %v7275_v27  ;;  %v7383_v15 = vpack.c.bf16 %v224_v13, %v222_v12  ;;  %v181_v20 = vld [vmem:[%s8634_s11 + $0x18] sm:$0xf]  ;;  %v229_v24 = vld [vmem:[#allocation8 + $0xf8] sm:$0xff]  ;;  %s6975_s11 = smov 32  }
  0xc5   :  { %5572 = vmatprep.subr.bf16.mxu1 %v7279_v28  ;;  %5576 = vmatprep.subr.bf16.mxu0 %v7342_v16  ;;  %v227_v23 = vld [vmem:[#allocation8 + $0xe8] sm:$0xff] }
  0xc6   :  { %5578 = vmatpush1.bf16.msra.mxu0 %v7344_v21 }
  0xc7   :  { %5321 = vmatmul.mubr.msk.f32.gmra.mrb[2].mxu0 %vm253_vm0, %v251_v31  ;;  %5580 = vmatprep.subr.bf16.mxu0 %v7346_v22  ;;  %v7354_v31 = vpack.c.bf16 %v209_v29, %v207_v26 }
  0xc8   :  { %336 = vmatprep.mubr.f32.mxu0 %v8631_v0  ;;  %5574 = vmatpush1.bf16.msra.mxu1 %v7290_v32 }
  0xc9   :  { %5608 = vmatprep.subr.bf16.mxu1 %v7217_v4 }
  0xca   :  { %5582 = vmatpush1.bf16.msra.mxu0 %v7351_v30 }
  0xcb   :  { %442 = vmatmul.mubr.f32.vlgmr.msra.gmra.mrb[0].mxu1 %v8631_v0  ;;  %5584 = vmatprep.subr.bf16.mxu0 %v7354_v31 }
  0xcc   :  { %5610 = vmatpush1.bf16.msra.mxu1 %v7228_v8  ;;  %735 = vmatprep.mubr.f32.mxu1 %v8631_v0 }
  0xcd   :  { %5612 = vmatprep.subr.bf16.mxu1 %v7230_v9 }
  0xd0   :  { %5614 = vmatpush1.bf16.msra.mxu1 %v7246_v14 }
  0xd1   :  { %5616 = vmatprep.subr.bf16.mxu1 %v7252_v18 }
  0xd4   :  { %5618 = vmatpush1.bf16.msra.mxu1 %v7275_v27 }
  0xd5   :  { %5620 = vmatprep.subr.bf16.mxu1 %v7279_v28 }
  0xd8   :  { %5622 = vmatpush1.bf16.msra.mxu1 %v7290_v32 }
  0xd9   :  { %5624 = vmatprep.subr.bf16.mxu1 %v7342_v16 }
 0x196   :  { %v326_v40 = vpop.f32.mrb[0].mxu0 }
 0x197   :  { %v327_v41 = vadd.f32 %v326_v40, %v7316_v38  ;;  %v328_v42 = vpop.f32.mrb[1].mxu0  ;;  %v208_v40 = vld [vmem:[#allocation8 + $0x50] sm:$0xff] }
 0x198   :  { %v329_v43 = vadd.f32 %v328_v42, %v7319_v39  ;;  %v213_v42 = vld [vmem:[#allocation8 + $0x78] sm:$0xff] }
 0x19a   :  { %v7323_v44 = vcombine.low %v327_v41, %v329_v43  ;;  %v7325_v45 = vcombine.high %v327_v41, %v329_v43  ;;  %v332_v46 = vpop.f32.mrb[2].mxu0  ;;  %v211_v41 = vld [vmem:[#allocation8 + $0x68] sm:$0xff]  ;;  %v7357_v43 = vpack.c.bf16 %v208_v40, %v206_v36  ;;  %v7396_v36 = vpack.c.bf16 %v229_v24, %v227_v23  ;;  %v228_v40 = vld [vmem:[#allocation8 + $0xf0] sm:$0xff] }
 0x19b   :  { %v333_v47 = vadd.f32 %v332_v46, %v7316_v38  ;;  %v334_v48 = vpop.f32.mrb[3].mxu0  ;;  %v7360_v46 = vpack.c.bf16 %v213_v42, %v211_v41 }
 0x19c   :  { %v335_v49 = vadd.f32 %v334_v48, %v7319_v39  ;;  %v212_v48 = vld [vmem:[#allocation8 + $0x70] sm:$0xff]  ;;  %5586 = vmatpush1.bf16.msra.mxu0 %v7357_v43 }
 0x19d   :  { %5588 = vmatprep.subr.bf16.mxu0 %v7360_v46 }
 0x19e   :  { %v7329_v50 = vcombine.low %v333_v47, %v335_v49  ;;  %v7331_v51 = vcombine.high %v333_v47, %v335_v49  ;;  %v443_v52 = vpop.f32.mrb[0].mxu1  ;;  %v210_v47 = vld [vmem:[#allocation8 + $0x60] sm:$0xff]  ;;  %v215_v49 = vld [vmem:[#allocation8 + $0x88] sm:$0xff] }
 0x19f   :  { %v445_v53 = vpop.f32.mrb[1].mxu1 }
 0x1a0   :  { %v450_v54 = vcombine.low %v443_v52, %v445_v53  ;;  %v217_v52 = vld [vmem:[#allocation8 + $0x98] sm:$0xff]  ;;  %v7363_v53 = vpack.c.bf16 %v212_v48, %v210_v47 }
 0x1a2   :  { %v451_v55 = vrot.slane %v450_v54, 1  ;;  %v454_v56 = vadd.f32 %v450_v54, %v7323_v44  ;;  %v7366_v54 = vpack.c.bf16 %v217_v52, %v215_v49  ;;  %5590 = vmatpush1.bf16.msra.mxu0 %v7363_v53 }
 0x1a4   :  { %v5323_v57 = vmul.f32 -1.442695, %v454_v56  ;;  %476 = vrot.lane.b32.xlu1 %v454_v56, %s6966_s2  ;;  %v455_v58 = vadd.f32 %v451_v55, %v7331_v51  ;;  %v470_v60 = vrot.slane %v454_v56, 4  ;;  %v214_v55 = vld [vmem:[#allocation8 + $0x80] sm:$0xff]  ;;  %v216_v56 = vld [vmem:[#allocation8 + $0x90] sm:$0xff]  ;;  %5592 = vmatprep.subr.bf16.mxu0 %v7366_v54 }
 0x1a6   :  { %6223 = vpow2.f32 %v5323_v57  ;;  %v5324_v59 = vmul.f32 -1.442695, %v455_v58  ;;  %v471_v2 = vrot.slane %v455_v58, 4  ;;  %v219_v57 = vld [vmem:[#allocation8 + $0xa8] sm:$0xff] }
 0x1a8   :  { %6225 = vpow2.f32 %v5324_v59  ;;  %478 = vrot.lane.b32.xlu1 %v455_v58, %s6966_s2  ;;  %v221_v58 = vld [vmem:[#allocation8 + $0xb8] sm:$0xff]  ;;  %v7369_v59 = vpack.c.bf16 %v216_v56, %v214_v55 }
 0x1a9   :  { %6227 = vtanh.f32 %v470_v60  ;;  %v7372_v60 = vpack.c.bf16 %v221_v58, %v219_v57 }
 0x1aa   :  { %5594 = vmatpush1.bf16.msra.mxu0 %v7369_v59 }
 0x1ab   :  { %5596 = vmatprep.subr.bf16.mxu0 %v7372_v60 }
 0x1b0   :  { %v6224_v61 = vpop.eup %6223 }
 0x1b1   :  { %v462_v62 = vadd.f32 1.0, %v6224_v61  ;;  %v218_v61 = vld [vmem:[#allocation8 + $0xa0] sm:$0xff] }
 0x1b2   :  { %v6226_v63 = vpop.eup %6225 }
 0x1b3   :  { %6229 = vrcp.f32 %v462_v62  ;;  %v463_v1 = vadd.f32 1.0, %v6226_v63  ;;  %v6228_v3 = vpop.eup %6227  ;;  %v220_v62 = vld [vmem:[#allocation8 + $0xb0] sm:$0xff] }
 0x1b4   :  { %v7375_v63 = vpack.c.bf16 %v220_v62, %v218_v61 }
 0x1b5   :  { %6231 = vrcp.f32 %v463_v1 }
 0x1b6   :  { %6233 = vtanh.f32 %v471_v2  ;;  %5598 = vmatpush1.bf16.msra.mxu0 %v7375_v63 }
 0x1bd   :  { %v6230_v5 = vpop.eup %6229 }
 0x1be   :  { %v498_v6 = vmul.f32 %v6230_v5, %v6228_v3  ;;  %v496_v1 = vmul.f32 0.0, %v6230_v5  ;;  %v223_v3 = vld [vmem:[#allocation8 + $0xc8] sm:$0xff]  ;;  %v235_v5 = vcombine.high %v7272_v25, %v7272_v25 }
 0x1bf   :  { %v7337_v7 = vpop.eup %6231 }
 0x1c0   :  { %502 = vrot.lane.b32.xlu0 %v498_v6, %s6966_s2  ;;  %v6234_v10 = vpop.eup %6233  ;;  %v225_v6 = vld [vmem:[#allocation8 + $0xd8] sm:$0xff]  ;;  %v497_v17 = vmul.f32 0.0, %v7337_v7  ;;  %v252_v29 = vcombine.low %v235_v5, %v181_v20 }
 0x1c1   :  { %v499_v11 = vmul.f32 %v6234_v10, %v7337_v7  ;;  %v226_v7 = vld [vmem:[#allocation8 + $0xe0] sm:$0xff] }
 0x1c2   :  { %v7398_v41 = vpack.c.bf16 %v228_v40, %v226_v7  ;;  %5322 = vmatmul.mubr.msk.f32.gmra.mrb[4].mxu0 %vm253_vm0, %v252_v29 }
 0x1c3   :  { %600 = vmatprep.mubr.f32.mxu0 %v8631_v0 }
 0x1c4   :  { %504 = vrot.lane.b32.xlu0 %v499_v11, %s6966_s2  ;;  %v7381_v11 = vpack.c.bf16 %v225_v6, %v223_v3 }
 0x1c6   :  { %5600 = vmatprep.subr.bf16.mxu0 %v7381_v11 }
 0x1c7   :  { %5602 = vmatpush1.bf16.msra.mxu0 %v7383_v15 }
 0x1c8   :  { %5604 = vmatprep.subr.bf16.mxu0 %v7396_v36 }
 0x1cb   :  { %5606 = vmatpush1.bf16.msra.mxu0 %v7398_v41 }
 0x1cc   :  { %5656 = vmatprep.subr.bf16.mxu0 %v7217_v4 }
 0x216   :  { %v477_v47 = vpop.permute.xlu1 %476 }
 0x217   :  { %v480_v49 = vrot.slane %v477_v47, 4 }
 0x219   :  { %v5325_v55 = vmul.f32 -1.442695, %v480_v49 }
 0x21a   :  { %v479_v48 = vpop.permute.xlu1 %478 }
 0x21b   :  { %v481_v52 = vrot.slane %v479_v48, 4 }
 0x21d   :  { %v5326_v56 = vmul.f32 -1.442695, %v481_v52 }
 0x232   :  { %v503_v2 = vpop.permute.xlu0 %502 }
 0x233   :  { %v7379_v10 = vadd.f32 %v503_v2, %v496_v1 }
 0x235   :  { %6235 = vtanh.f32 %v7379_v10 }
 0x236   :  { %v505_v19 = vpop.permute.xlu0 %504 }
 0x237   :  { %v7394_v26 = vadd.f32 %v505_v19, %v497_v17 }
 0x239   :  { %6237 = vtanh.f32 %v7394_v26 }
 0x23a   :  { %6239 = vpow2.f32 %v5325_v55 }
 0x23b   :  { %6241 = vpow2.f32 %v5326_v56 }
 0x23f   :  { %v6236_v25 = vpop.eup %6235 }
 0x240   :  { %514 = vrot.lane.b32.xlu0 %v6236_v25, %s6966_s2  ;;  %v361_v25 = vld [vmem:[#allocation9] sm:$0x3] }
 0x243   :  { %v6238_v42 = vpop.eup %6237 }
 0x244   :  { %516 = vrot.lane.b32.xlu1 %v6238_v42, %s6966_s2  ;;  %v6240_v57 = vpop.eup %6239  ;;  %v7446_v42 = vrot.slane %v361_v25, %v7310_v35 }
 0x245   :  { %v6242_v58 = vpop.eup %6241  ;;  %v490_v61 = vadd.f32 1.0, %v6240_v57 }
 0x246   :  { %v491_v62 = vadd.f32 1.0, %v6242_v58 }
 0x247   :  { %6243 = vrcp.f32 %v490_v61 }
 0x248   :  { %6245 = vrcp.f32 %v491_v62 }
 0x251   :  { %v6244_v2 = vpop.eup %6243 }
 0x252   :  { %v6246_v6 = vpop.eup %6245 }
 0x295   :  { %v338_v20 = vpop.f32.mrb[4].mxu0 }
 0x296   :  { %v339_v23 = vadd.f32 %v338_v20, %v7316_v38  ;;  %v340_v24 = vpop.f32.mrb[5].mxu0 }
 0x297   :  { %v341_v29 = vadd.f32 %v340_v24, %v7319_v39 }
 0x299   :  { %v7441_v7 = vcombine.low %v339_v23, %v341_v29  ;;  %v7443_v40 = vcombine.high %v339_v23, %v341_v29 }
 0x2b2   :  { %v515_v1 = vpop.permute.xlu0 %514 }
 0x2b3   :  { %v520_v3 = vmul.f32 %v6244_v2, %v515_v1  ;;  %v7452_v1 = vrot.slane %v361_v25, %v7313_v37 }
 0x2b5   :  { %v527_v17 = vrot.slane %v520_v3, %v7310_v35 }
 0x2b6   :  { %v517_v12 = vpop.permute.xlu1 %516 }
 0x2b7   :  { %v521_v13 = vmul.f32 %v6246_v6, %v517_v12 }
 0x2b9   :  { %v531_v5 = vrot.slane %v521_v13, %v7310_v35 }
 0x2bb   :  { %v533_v19 = vsel %vm532_vm1, %v531_v5, %v527_v17 }
 0x2bc   :  { %5327 = vmatmul.mubr.msk.f32.vlgmr.msra.gmra.mrb[6].mxu0 %vm373_vm2, %v533_v19  ;;  %5330 = vmatmul.mubr.msk.f32.vlgmr.msra.gmra.mrb[2].mxu1 %vm373_vm2, %v533_v19 }
 0x2bd   :  { %5658 = vmatpush1.bf16.msra.mxu0 %v7228_v8  ;;  %1040 = vmatprep.mubr.f32.mxu0 %v8631_v0 }
 0x2be   :  { %5660 = vmatprep.subr.bf16.mxu0 %v7230_v9  ;;  %5626 = vmatpush1.bf16.msra.mxu1 %v7344_v21 }
 0x2bf   :  { %5628 = vmatprep.subr.bf16.mxu1 %v7346_v22  ;;  %905 = vmatprep.mubr.f32.mxu1 %v8631_v0 }
 0x2c1   :  { %5662 = vmatpush1.bf16.msra.mxu0 %v7246_v14 }
 0x2c2   :  { %5664 = vmatprep.subr.bf16.mxu0 %v7252_v18  ;;  %5630 = vmatpush1.bf16.msra.mxu1 %v7351_v30 }
 0x2c3   :  { %5632 = vmatprep.subr.bf16.mxu1 %v7354_v31 }
 0x2c5   :  { %5666 = vmatpush1.bf16.msra.mxu0 %v7275_v27 }
 0x2c6   :  { %5668 = vmatprep.subr.bf16.mxu0 %v7279_v28  ;;  %5634 = vmatpush1.bf16.msra.mxu1 %v7357_v43 }
 0x2c7   :  { %5636 = vmatprep.subr.bf16.mxu1 %v7360_v46 }
 0x2c9   :  { %5670 = vmatpush1.bf16.msra.mxu0 %v7290_v32 }
 0x2ca   :  { %5638 = vmatpush1.bf16.msra.mxu1 %v7363_v53  ;;  %5672 = vmatprep.subr.bf16.mxu0 %v7342_v16 }
 0x2cb   :  { %5640 = vmatprep.subr.bf16.mxu1 %v7366_v54 }
 0x2ce   :  { %5642 = vmatpush1.bf16.msra.mxu1 %v7369_v59 }
 0x2cf   :  { %5644 = vmatprep.subr.bf16.mxu1 %v7372_v60 }
 0x2d2   :  { %5646 = vmatpush1.bf16.msra.mxu1 %v7375_v63 }
 0x2d3   :  { %5648 = vmatprep.subr.bf16.mxu1 %v7381_v11 }
 0x2d6   :  { %5650 = vmatpush1.bf16.msra.mxu1 %v7383_v15 }
 0x2d7   :  { %5652 = vmatprep.subr.bf16.mxu1 %v7396_v36 }
 0x2da   :  { %5654 = vmatpush1.bf16.msra.mxu1 %v7398_v41 }
 0x2db   :  { %5704 = vmatprep.subr.bf16.mxu1 %v7217_v4 }
 0x38f   :  { %v602_v47 = vpop.f32.mrb[6].mxu0  ;;  %v737_v48 = vpop.f32.mrb[2].mxu1 }
 0x390   :  { %v603_v49 = vadd.f32 %v602_v47, %v7446_v42  ;;  %v604_v52 = vpop.f32.mrb[7].mxu0  ;;  %v739_v55 = vpop.f32.mrb[3].mxu1  ;;  %v793_v47 = vrot.slane %v7394_v26, 7 }
 0x391   :  { %v744_v56 = vcombine.low %v737_v48, %v739_v55  ;;  %v7455_v2 = vadd.f32 %v604_v52, %v7452_v1  ;;  %v792_v52 = vrot.slane %v7379_v10, 7 }
 0x392   :  { %v5328_v57 = vmul.f32 -1.442695, %v603_v49 }
 0x393   :  { %v745_v38 = vrot.slane %v744_v56, 7  ;;  %v749_v58 = vadd.f32 %v744_v56, %v7331_v51 }
 0x394   :  { %6247 = vpow2.f32 %v5328_v57 }
 0x395   :  { %v748_v39 = vadd.f32 %v745_v38, %v7323_v44  ;;  %v5332_v61 = vmul.f32 -1.442695, %v749_v58  ;;  %v765_v12 = vrot.slane %v749_v58, 4 }
 0x397   :  { %v5331_v62 = vmul.f32 -1.442695, %v748_v39  ;;  %6249 = vpow2.f32 %v5332_v61  ;;  %v764_v17 = vrot.slane %v748_v39, 4 }
 0x399   :  { %6251 = vpow2.f32 %v5331_v62 }
 0x39a   :  { %6253 = vtanh.f32 %v7455_v2 }
 0x39e   :  { %v6248_v3 = vpop.eup %6247 }
 0x39f   :  { %v610_v6 = vadd.f32 1.0, %v6248_v3 }
 0x3a1   :  { %v6250_v13 = vpop.eup %6249  ;;  %6255 = vrcp.f32 %v610_v6 }
 0x3a2   :  { %v757_v5 = vadd.f32 1.0, %v6250_v13  ;;  %6257 = vtanh.f32 %v765_v12 }
 0x3a3   :  { %v6252_v19 = vpop.eup %6251 }
 0x3a4   :  { %v756_v20 = vadd.f32 1.0, %v6252_v19  ;;  %6259 = vrcp.f32 %v757_v5  ;;  %v6254_v23 = vpop.eup %6253 }
 0x3a5   :  { %6261 = vtanh.f32 %v764_v17 }
 0x3a6   :  { %6263 = vrcp.f32 %v756_v20 }
 0x3ab   :  { %v7458_v24 = vpop.eup %6255 }
 0x3ac   :  { %v7461_v29 = vmul.f32 %v7458_v24, %v6254_v23  ;;  %v6258_v25 = vpop.eup %6257 }
 0x3ae   :  { %v6260_v48 = vpop.eup %6259 }
 0x3af   :  { %v6262_v49 = vpop.eup %6261  ;;  %v799_v55 = vmul.f32 %v6260_v48, %v6258_v25  ;;  %v797_v56 = vmul.f32 %v6260_v48, %v793_v47 }
 0x3b0   :  { %v6264_v57 = vpop.eup %6263 }
 0x3b1   :  { %804 = vrot.lane.b32.xlu1 %v799_v55, %s6966_s2  ;;  %v798_v38 = vmul.f32 %v6264_v57, %v6262_v49  ;;  %v796_v61 = vmul.f32 %v6264_v57, %v792_v52 }
 0x3b3   :  { %802 = vrot.lane.b32.xlu0 %v798_v38, %s6966_s2 }
 0x3b5   :  { %772 = vrot.lane.b32.xlu1 %v749_v58, %s6966_s2 }
 0x3b7   :  { %770 = vrot.lane.b32.xlu0 %v748_v39, %s6966_s2 }
 0x423   :  { %v805_v62 = vpop.permute.xlu1 %804 }
 0x424   :  { %v7469_v3 = vadd.f32 %v805_v62, %v797_v56 }
 0x425   :  { %v803_v26 = vpop.permute.xlu0 %802 }
 0x426   :  { %6265 = vtanh.f32 %v7469_v3  ;;  %v7472_v10 = vadd.f32 %v803_v26, %v796_v61 }
 0x427   :  { %v773_v13 = vpop.permute.xlu1 %772 }
 0x428   :  { %6267 = vtanh.f32 %v7472_v10  ;;  %v775_v17 = vrot.slane %v773_v13, 4 }
 0x429   :  { %v771_v58 = vpop.permute.xlu0 %770 }
 0x42a   :  { %v774_v39 = vrot.slane %v771_v58, 4  ;;  %v5334_v5 = vmul.f32 -1.442695, %v775_v17 }
 0x42c   :  { %v5333_v19 = vmul.f32 -1.442695, %v774_v39  ;;  %6269 = vpow2.f32 %v5334_v5 }
 0x42e   :  { %6271 = vpow2.f32 %v5333_v19 }
 0x430   :  { %v6266_v6 = vpop.eup %6265 }
 0x431   :  { %816 = vrot.lane.b32.xlu1 %v6266_v6, %s6966_s2 }
 0x432   :  { %v6268_v12 = vpop.eup %6267 }
 0x433   :  { %814 = vrot.lane.b32.xlu0 %v6268_v12, %s6966_s2 }
 0x436   :  { %v6270_v20 = vpop.eup %6269 }
 0x437   :  { %v785_v25 = vadd.f32 1.0, %v6270_v20 }
 0x438   :  { %v6272_v23 = vpop.eup %6271 }
 0x439   :  { %v784_v47 = vadd.f32 1.0, %v6272_v23  ;;  %6273 = vrcp.f32 %v785_v25 }
 0x43b   :  { %6275 = vrcp.f32 %v784_v47 }
 0x443   :  { %v6274_v48 = vpop.eup %6273 }
 0x445   :  { %v6276_v55 = vpop.eup %6275 }
 0x4a3   :  { %v817_v49 = vpop.permute.xlu1 %816 }
 0x4a4   :  { %v821_v52 = vmul.f32 %v6274_v48, %v817_v49 }
 0x4a5   :  { %v815_v56 = vpop.permute.xlu0 %814 }
 0x4a6   :  { %v820_v57 = vmul.f32 %v6276_v55, %v815_v56  ;;  %v831_v38 = vrot.slane %v821_v52, %v7313_v37 }
 0x4a8   :  { %v827_v61 = vrot.slane %v820_v57, %v7313_v37  ;;  %v1098_v57 = vrot.slane %v7472_v10, 7  ;;  %v5329_v10 = vmul.f32 -1.442695, %v7455_v2 }
 0x4aa   :  { %v7480_v62 = vsel %vm832_vm3, %v831_v38, %v827_v61  ;;  %v973_v26 = vsel %vm532_vm1, %v831_v38, %v827_v61  ;;  %v1099_v61 = vrot.slane %v7469_v3, 7 }
 0x4ab   :  { %5337 = vmatmul.mubr.msk.f32.vlgmr.msra.gmra.mrb[8].mxu0 %vm373_vm2, %v973_v26 }
 0x4ac   :  { %5674 = vmatpush1.bf16.msra.mxu0 %v7344_v21  ;;  %1211 = vmatprep.mubr.f32.mxu0 %v8631_v0 }
 0x4ad   :  { %5676 = vmatprep.subr.bf16.mxu0 %v7346_v22 }
 0x4b0   :  { %5678 = vmatpush1.bf16.msra.mxu0 %v7351_v30 }
 0x4b1   :  { %5680 = vmatprep.subr.bf16.mxu0 %v7354_v31 }
 0x4b4   :  { %5682 = vmatpush1.bf16.msra.mxu0 %v7357_v43 }
 0x4b5   :  { %5684 = vmatprep.subr.bf16.mxu0 %v7360_v46 }
 0x4b8   :  { %5686 = vmatpush1.bf16.msra.mxu0 %v7363_v53 }
 0x4b9   :  { %5688 = vmatprep.subr.bf16.mxu0 %v7366_v54 }
 0x4bc   :  { %5690 = vmatpush1.bf16.msra.mxu0 %v7369_v59 }
 0x4bd   :  { %5692 = vmatprep.subr.bf16.mxu0 %v7372_v60 }
 0x4c0   :  { %5694 = vmatpush1.bf16.msra.mxu0 %v7375_v63 }
 0x4c1   :  { %5696 = vmatprep.subr.bf16.mxu0 %v7381_v11 }
 0x4c4   :  { %5698 = vmatpush1.bf16.msra.mxu0 %v7383_v15 }
 0x4c5   :  { %5700 = vmatprep.subr.bf16.mxu0 %v7396_v36 }
 0x4c8   :  { %5702 = vmatpush1.bf16.msra.mxu0 %v7398_v41 }
 0x4c9   :  { %5752 = vmatprep.subr.bf16.mxu0 %v7217_v4 }
 0x57e   :  { %v1042_v6 = vpop.f32.mrb[8].mxu0 }
 0x57f   :  { %v1044_v12 = vpop.f32.mrb[9].mxu0 }
 0x580   :  { %v1049_v13 = vcombine.low %v1042_v6, %v1044_v12 }
 0x582   :  { %v1050_v58 = vrot.slane %v1049_v13, 6  ;;  %v1051_v17 = vrot.slane %v1049_v13, 7 }
 0x584   :  { %v1054_v39 = vadd.f32 %v1050_v58, %v7323_v44  ;;  %v1055_v5 = vadd.f32 %v1051_v17, %v7331_v51 }
 0x586   :  { %v5338_v19 = vmul.f32 -1.442695, %v1054_v39  ;;  %v5339_v20 = vmul.f32 -1.442695, %v1055_v5  ;;  %v1070_v23 = vrot.slane %v1054_v39, 4  ;;  %v1071_v25 = vrot.slane %v1055_v5, 4 }
 0x588   :  { %6277 = vpow2.f32 %v5338_v19 }
 0x589   :  { %6279 = vpow2.f32 %v5339_v20 }
 0x58a   :  { %6281 = vtanh.f32 %v1070_v23 }
 0x58b   :  { %6283 = vtanh.f32 %v1071_v25 }
 0x592   :  { %v6278_v47 = vpop.eup %6277 }
 0x593   :  { %v6280_v48 = vpop.eup %6279  ;;  %v1062_v49 = vadd.f32 1.0, %v6278_v47  ;;  %v620_v47 = vmul.f32 0.0, %v7458_v24 }
 0x594   :  { %v1063_v52 = vadd.f32 1.0, %v6280_v48  ;;  %v6282_v55 = vpop.eup %6281 }
 0x595   :  { %6285 = vrcp.f32 %v1062_v49  ;;  %v6284_v56 = vpop.eup %6283 }
 0x596   :  { %6287 = vrcp.f32 %v1063_v52 }
 0x597   :  { %6289 = vpow2.f32 %v5329_v10 }
 0x59f   :  { %v6286_v38 = vpop.eup %6285 }
 0x5a0   :  { %v6288_v26 = vpop.eup %6287  ;;  %v1104_v6 = vmul.f32 %v6286_v38, %v6282_v55  ;;  %v1102_v12 = vmul.f32 %v6286_v38, %v1098_v57 }
 0x5a1   :  { %v1105_v13 = vmul.f32 %v6288_v26, %v6284_v56  ;;  %v1103_v58 = vmul.f32 %v6288_v26, %v1099_v61  ;;  %v6290_v3 = vpop.eup %6289 }
 0x5a2   :  { %1108 = vrot.lane.b32.xlu0 %v1104_v6, %s6966_s2  ;;  %v617_v23 = vadd.f32 1.0, %v6290_v3  ;;  %v7539_v3 = vsub.s32 2, %v7307_v34 }
 0x5a3   :  { %1110 = vrot.lane.b32.xlu1 %v1105_v13, %s6966_s2 }
 0x5a6   :  { %623 = vrot.lane.b32.xlu0 %v7461_v29, %s6966_s2 }
 0x5a7   :  { %1076 = vrot.lane.b32.xlu1 %v1054_v39, %s6966_s2 }
 0x5aa   :  { %1078 = vrot.lane.b32.xlu0 %v1055_v5, %s6966_s2 }
 0x614   :  { %v1109_v17 = vpop.permute.xlu0 %1108 }
 0x615   :  { %v1111_v19 = vpop.permute.xlu1 %1110  ;;  %v7512_v20 = vadd.f32 %v1109_v17, %v1102_v12 }
 0x616   :  { %v7514_v25 = vadd.f32 %v1111_v19, %v1103_v58 }
 0x617   :  { %6291 = vtanh.f32 %v7512_v20 }
 0x618   :  { %6293 = vtanh.f32 %v7514_v25  ;;  %v624_v29 = vpop.permute.xlu0 %623 }
 0x619   :  { %v7519_v39 = vadd.f32 %v624_v29, %v620_v47  ;;  %6295 = vrcp.f32 %v617_v23 }
 0x61b   :  { %6297 = vtanh.f32 %v7519_v39 }
 0x61c   :  { %v1079_v57 = vpop.permute.xlu0 %1078 }
 0x61d   :  { %v1081_v61 = vrot.slane %v1079_v57, 4 }
 0x61f   :  { %v5341_v6 = vmul.f32 -1.442695, %v1081_v61 }
 0x621   :  { %v6292_v2 = vpop.eup %6291 }
 0x622   :  { %v6294_v5 = vpop.eup %6293  ;;  %1120 = vrot.lane.b32.xlu1 %v6292_v2, %s6966_s2 }
 0x623   :  { %1122 = vrot.lane.b32.xlu0 %v6294_v5, %s6966_s2  ;;  %v6296_v48 = vpop.eup %6295 }
 0x625   :  { %v6298_v49 = vpop.eup %6297 }
 0x626   :  { %v7524_v52 = vmul.f32 %v6298_v49, %v6296_v48 }
 0x628   :  { %v835_v24 = vrot.slane %v7524_v52, 7 }
 0x62a   :  { %v837_v55 = vsel %vm373_vm2, %v7480_v62, %v835_v24  ;;  %v1077_v62 = vpop.permute.xlu1 %1076 }
 0x62b   :  { %v839_v56 = vrot.slane %v837_v55, 1  ;;  %v1080_v38 = vrot.slane %v1077_v62, 4 }
 0x62d   :  { %906 = vmatmul.mubr.f32.vlgmr.msra.gmra.mrb[4].mxu1 %v839_v56  ;;  %v5340_v26 = vmul.f32 -1.442695, %v1080_v38 }
 0x62e   :  { %5706 = vmatpush1.bf16.msra.mxu1 %v7228_v8  ;;  %1346 = vmatprep.mubr.f32.mxu1 %v8631_v0 }
 0x62f   :  { %5708 = vmatprep.subr.bf16.mxu1 %v7230_v9  ;;  %6299 = vpow2.f32 %v5340_v26 }
 0x630   :  { %6301 = vpow2.f32 %v5341_v6 }
 0x632   :  { %5710 = vmatpush1.bf16.msra.mxu1 %v7246_v14 }
 0x633   :  { %5712 = vmatprep.subr.bf16.mxu1 %v7252_v18 }
 0x636   :  { %5714 = vmatpush1.bf16.msra.mxu1 %v7275_v27 }
 0x637   :  { %5716 = vmatprep.subr.bf16.mxu1 %v7279_v28 }
 0x639   :  { %v6300_v12 = vpop.eup %6299 }
 0x63a   :  { %5718 = vmatpush1.bf16.msra.mxu1 %v7290_v32  ;;  %v6302_v13 = vpop.eup %6301  ;;  %v1090_v58 = vadd.f32 1.0, %v6300_v12 }
 0x63b   :  { %5720 = vmatprep.subr.bf16.mxu1 %v7342_v16  ;;  %v1091_v10 = vadd.f32 1.0, %v6302_v13 }
 0x63c   :  { %6303 = vrcp.f32 %v1090_v58 }
 0x63d   :  { %6305 = vrcp.f32 %v1091_v10 }
 0x646   :  { %v6304_v17 = vpop.eup %6303 }
 0x647   :  { %v6306_v23 = vpop.eup %6305 }
 0x694   :  { %v1121_v19 = vpop.permute.xlu1 %1120 }
 0x695   :  { %v1126_v47 = vmul.f32 %v6304_v17, %v1121_v19  ;;  %v1123_v29 = vpop.permute.xlu0 %1122 }
 0x696   :  { %v1127_v2 = vmul.f32 %v6306_v23, %v1123_v29 }
 0x697   :  { %v1133_v5 = vrot.slane %v1126_v47, %v7539_v3 }
 0x698   :  { %v1137_v48 = vrot.slane %v1127_v2, %v7539_v3 }
 0x69a   :  { %v7544_v49 = vsel %vm1138_vm4, %v1137_v48, %v1133_v5  ;;  %v1279_v24 = vsel %vm532_vm1, %v1137_v48, %v1133_v5 }
 0x69b   :  { %5344 = vmatmul.mubr.msk.f32.vlgmr.msra.gmra.mrb[6].mxu1 %vm373_vm2, %v1279_v24 }
 0x69c   :  { %5722 = vmatpush1.bf16.msra.mxu1 %v7344_v21  ;;  %1517 = vmatprep.mubr.f32.mxu1 %v8631_v0 }
 0x69d   :  { %5724 = vmatprep.subr.bf16.mxu1 %v7346_v22 }
 0x6a0   :  { %5726 = vmatpush1.bf16.msra.mxu1 %v7351_v30 }
 0x6a1   :  { %5728 = vmatprep.subr.bf16.mxu1 %v7354_v31 }
 0x6a4   :  { %5730 = vmatpush1.bf16.msra.mxu1 %v7357_v43 }
 0x6a5   :  { %5732 = vmatprep.subr.bf16.mxu1 %v7360_v46 }
 0x6a8   :  { %5734 = vmatpush1.bf16.msra.mxu1 %v7363_v53 }
 0x6a9   :  { %5736 = vmatprep.subr.bf16.mxu1 %v7366_v54 }
 0x6ac   :  { %5738 = vmatpush1.bf16.msra.mxu1 %v7369_v59 }
 0x6ad   :  { %5740 = vmatprep.subr.bf16.mxu1 %v7372_v60 }
 0x6b0   :  { %5742 = vmatpush1.bf16.msra.mxu1 %v7375_v63 }
 0x6b1   :  { %5744 = vmatprep.subr.bf16.mxu1 %v7381_v11 }
 0x6b4   :  { %5746 = vmatpush1.bf16.msra.mxu1 %v7383_v15 }
 0x6b5   :  { %5748 = vmatprep.subr.bf16.mxu1 %v7396_v36 }
 0x6b8   :  { %5750 = vmatpush1.bf16.msra.mxu1 %v7398_v41 }
 0x6b9   :  { %5800 = vmatprep.subr.bf16.mxu1 %v7217_v4 }
 0x700   :  { %v907_v55 = vpop.f32.mrb[4].mxu1 }
 0x701   :  { %v908_v56 = vadd.f32 %v907_v55, %v7446_v42  ;;  %v909_v62 = vpop.f32.mrb[5].mxu1 }
 0x702   :  { %v910_v38 = vadd.f32 %v909_v62, %v7452_v1 }
 0x703   :  { %v5335_v57 = vmul.f32 -1.442695, %v908_v56 }
 0x705   :  { %6307 = vpow2.f32 %v5335_v57 }
 0x706   :  { %6309 = vtanh.f32 %v910_v38 }
 0x70f   :  { %v6308_v61 = vpop.eup %6307 }
 0x710   :  { %v915_v26 = vadd.f32 1.0, %v6308_v61  ;;  %v6310_v6 = vpop.eup %6309 }
 0x712   :  { %6311 = vrcp.f32 %v915_v26 }
 0x71c   :  { %v6312_v12 = vpop.eup %6311 }
 0x71d   :  { %v926_v13 = vmul.f32 %v6312_v12, %v6310_v6 }
 0x76e   :  { %v1348_v58 = vpop.f32.mrb[6].mxu1 }
 0x76f   :  { %v1350_v10 = vpop.f32.mrb[7].mxu1 }
 0x770   :  { %v1355_v17 = vcombine.low %v1348_v58, %v1350_v10 }
 0x772   :  { %v1356_v19 = vrot.slane %v1355_v17, 5  ;;  %v1357_v23 = vrot.slane %v1355_v17, 6 }
 0x774   :  { %v1360_v47 = vadd.f32 %v1356_v19, %v7323_v44  ;;  %v1361_v29 = vadd.f32 %v1357_v23, %v7331_v51  ;;  %v1404_v44 = vrot.slane %v7512_v20, 7  ;;  %v1405_v51 = vrot.slane %v7514_v25, 7 }
 0x776   :  { %v5345_v2 = vmul.f32 -1.442695, %v1360_v47  ;;  %v5346_v5 = vmul.f32 -1.442695, %v1361_v29  ;;  %v1376_v48 = vrot.slane %v1360_v47, 4  ;;  %v1377_v24 = vrot.slane %v1361_v29, 4 }
 0x778   :  { %6313 = vpow2.f32 %v5345_v2  ;;  %v5336_v2 = vmul.f32 -1.442695, %v910_v38 }
 0x779   :  { %6315 = vpow2.f32 %v5346_v5 }
 0x77a   :  { %6317 = vtanh.f32 %v1376_v48 }
 0x77b   :  { %6319 = vtanh.f32 %v1377_v24 }
 0x782   :  { %v6314_v55 = vpop.eup %6313 }
 0x783   :  { %v6316_v56 = vpop.eup %6315  ;;  %v1368_v62 = vadd.f32 1.0, %v6314_v55 }
 0x784   :  { %v1369_v57 = vadd.f32 1.0, %v6316_v56  ;;  %v6318_v61 = vpop.eup %6317  ;;  %v925_v56 = vmul.f32 %v6312_v12, %v7519_v39 }
 0x785   :  { %6321 = vrcp.f32 %v1368_v62  ;;  %v6320_v26 = vpop.eup %6319 }
 0x786   :  { %6323 = vrcp.f32 %v1369_v57 }
 0x787   :  { %6325 = vpow2.f32 %v5336_v2 }
 0x78f   :  { %v6322_v6 = vpop.eup %6321 }
 0x790   :  { %v6324_v58 = vpop.eup %6323  ;;  %v1410_v10 = vmul.f32 %v6322_v6, %v6318_v61  ;;  %v1408_v17 = vmul.f32 %v6322_v6, %v1404_v44 }
 0x791   :  { %v1411_v19 = vmul.f32 %v6324_v58, %v6320_v26  ;;  %v1409_v23 = vmul.f32 %v6324_v58, %v1405_v51  ;;  %v6326_v20 = vpop.eup %6325 }
 0x792   :  { %1414 = vrot.lane.b32.xlu1 %v1410_v10, %s6966_s2  ;;  %v922_v24 = vadd.f32 1.0, %v6326_v20  ;;  %v7603_v20 = vsub.s32 3, %v7307_v34 }
 0x793   :  { %1416 = vrot.lane.b32.xlu0 %v1411_v19, %s6966_s2 }
 0x796   :  { %928 = vrot.lane.b32.xlu1 %v926_v13, %s6966_s2 }
 0x797   :  { %1382 = vrot.lane.b32.xlu0 %v1360_v47, %s6966_s2 }
 0x79a   :  { %1384 = vrot.lane.b32.xlu1 %v1361_v29, %s6966_s2 }
 0x804   :  { %v1415_v5 = vpop.permute.xlu1 %1414 }
 0x805   :  { %v1417_v25 = vpop.permute.xlu0 %1416  ;;  %v7576_v48 = vadd.f32 %v1415_v5, %v1408_v17 }
 0x806   :  { %v7578_v55 = vadd.f32 %v1417_v25, %v1409_v23 }
 0x807   :  { %6327 = vtanh.f32 %v7576_v48 }
 0x808   :  { %6329 = vtanh.f32 %v7578_v55  ;;  %v929_v13 = vpop.permute.xlu1 %928 }
 0x809   :  { %v7583_v47 = vadd.f32 %v929_v13, %v925_v56  ;;  %6331 = vrcp.f32 %v922_v24 }
 0x80b   :  { %6333 = vtanh.f32 %v7583_v47 }
 0x80c   :  { %v1385_v44 = vpop.permute.xlu1 %1384 }
 0x80d   :  { %v1387_v51 = vrot.slane %v1385_v44, 4 }
 0x80f   :  { %v5348_v10 = vmul.f32 -1.442695, %v1387_v51 }
 0x811   :  { %v6328_v38 = vpop.eup %6327 }
 0x812   :  { %v6330_v29 = vpop.eup %6329  ;;  %1426 = vrot.lane.b32.xlu0 %v6328_v38, %s6966_s2 }
 0x813   :  { %1428 = vrot.lane.b32.xlu1 %v6330_v29, %s6966_s2  ;;  %v6332_v62 = vpop.eup %6331 }
 0x815   :  { %v6334_v57 = vpop.eup %6333 }
 0x816   :  { %v7588_v61 = vmul.f32 %v6334_v57, %v6332_v62 }
 0x818   :  { %v1141_v39 = vrot.slane %v7588_v61, 6 }
 0x81a   :  { %v1143_v12 = vsel %vm373_vm2, %v7544_v49, %v1141_v39  ;;  %v1383_v49 = vpop.permute.xlu0 %1382 }
 0x81b   :  { %v1145_v26 = vrot.slane %v1143_v12, 2  ;;  %v1386_v6 = vrot.slane %v1383_v49, 4 }
 0x81d   :  { %1212 = vmatmul.mubr.f32.vlgmr.msra.gmra.mrb[10].mxu0 %v1145_v26  ;;  %v5347_v58 = vmul.f32 -1.442695, %v1386_v6 }
 0x81e   :  { %5754 = vmatpush1.bf16.msra.mxu0 %v7228_v8  ;;  %1652 = vmatprep.mubr.f32.mxu0 %v8631_v0 }
 0x81f   :  { %5756 = vmatprep.subr.bf16.mxu0 %v7230_v9  ;;  %6335 = vpow2.f32 %v5347_v58 }
 0x820   :  { %6337 = vpow2.f32 %v5348_v10 }
 0x822   :  { %5758 = vmatpush1.bf16.msra.mxu0 %v7246_v14 }
 0x823   :  { %5760 = vmatprep.subr.bf16.mxu0 %v7252_v18 }
 0x826   :  { %5762 = vmatpush1.bf16.msra.mxu0 %v7275_v27 }
 0x827   :  { %5764 = vmatprep.subr.bf16.mxu0 %v7279_v28 }
 0x829   :  { %v6336_v17 = vpop.eup %6335 }
 0x82a   :  { %5766 = vmatpush1.bf16.msra.mxu0 %v7290_v32  ;;  %v6338_v19 = vpop.eup %6337  ;;  %v1396_v23 = vadd.f32 1.0, %v6336_v17 }
 0x82b   :  { %5768 = vmatprep.subr.bf16.mxu0 %v7342_v16  ;;  %v1397_v2 = vadd.f32 1.0, %v6338_v19 }
 0x82c   :  { %6339 = vrcp.f32 %v1396_v23 }
 0x82d   :  { %6341 = vrcp.f32 %v1397_v2 }
 0x836   :  { %v6340_v5 = vpop.eup %6339 }
 0x837   :  { %v6342_v24 = vpop.eup %6341 }
 0x884   :  { %v1427_v25 = vpop.permute.xlu0 %1426 }
 0x885   :  { %v1432_v56 = vmul.f32 %v6340_v5, %v1427_v25  ;;  %v1429_v13 = vpop.permute.xlu1 %1428 }
 0x886   :  { %v1433_v38 = vmul.f32 %v6342_v24, %v1429_v13 }
 0x887   :  { %v1439_v29 = vrot.slane %v1432_v56, %v7603_v20 }
 0x888   :  { %v1443_v62 = vrot.slane %v1433_v38, %v7603_v20 }
 0x88a   :  { %v7608_v57 = vsel %vm1444_vm5, %v1443_v62, %v1439_v29  ;;  %v1585_v39 = vsel %vm532_vm1, %v1443_v62, %v1439_v29 }
 0x88b   :  { %5351 = vmatmul.mubr.msk.f32.vlgmr.msra.gmra.mrb[12].mxu0 %vm373_vm2, %v1585_v39 }
 0x88c   :  { %5770 = vmatpush1.bf16.msra.mxu0 %v7344_v21  ;;  %1818 = vmatprep.mubr.f32.mxu0 %v8631_v0 }
 0x88d   :  { %5772 = vmatprep.subr.bf16.mxu0 %v7346_v22 }
 0x890   :  { %5774 = vmatpush1.bf16.msra.mxu0 %v7351_v30 }
 0x891   :  { %5776 = vmatprep.subr.bf16.mxu0 %v7354_v31 }
 0x894   :  { %5778 = vmatpush1.bf16.msra.mxu0 %v7357_v43 }
 0x895   :  { %5780 = vmatprep.subr.bf16.mxu0 %v7360_v46 }
 0x898   :  { %5782 = vmatpush1.bf16.msra.mxu0 %v7363_v53 }
 0x899   :  { %5784 = vmatprep.subr.bf16.mxu0 %v7366_v54 }
 0x89c   :  { %5786 = vmatpush1.bf16.msra.mxu0 %v7369_v59 }
 0x89d   :  { %5788 = vmatprep.subr.bf16.mxu0 %v7372_v60 }
 0x8a0   :  { %5790 = vmatpush1.bf16.msra.mxu0 %v7375_v63 }
 0x8a1   :  { %5792 = vmatprep.subr.bf16.mxu0 %v7381_v11 }
 0x8a4   :  { %5794 = vmatpush1.bf16.msra.mxu0 %v7383_v15 }
 0x8a5   :  { %5796 = vmatprep.subr.bf16.mxu0 %v7396_v36 }
 0x8a8   :  { %5798 = vmatpush1.bf16.msra.mxu0 %v7398_v41 }
 0x8a9   :  { %5848 = vmatprep.subr.bf16.mxu0 %v7217_v4 }
 0x8f0   :  { %v1213_v12 = vpop.f32.mrb[10].mxu0 }
 0x8f1   :  { %v1214_v26 = vadd.f32 %v1213_v12, %v7446_v42  ;;  %v1215_v49 = vpop.f32.mrb[11].mxu0 }
 0x8f2   :  { %v1216_v6 = vadd.f32 %v1215_v49, %v7452_v1 }
 0x8f3   :  { %v5342_v44 = vmul.f32 -1.442695, %v1214_v26 }
 0x8f5   :  { %6343 = vpow2.f32 %v5342_v44 }
 0x8f6   :  { %6345 = vtanh.f32 %v1216_v6 }
 0x8ff   :  { %v6344_v51 = vpop.eup %6343 }
 0x900   :  { %v1221_v58 = vadd.f32 1.0, %v6344_v51  ;;  %v6346_v10 = vpop.eup %6345  ;;  %v5356_v51 = vrot.slane %v7576_v48, 11  ;;  %v5343_v48 = vmul.f32 -1.442695, %v1216_v6 }
 0x902   :  { %6347 = vrcp.f32 %v1221_v58 }
 0x90c   :  { %v6348_v17 = vpop.eup %6347 }
 0x90d   :  { %v1232_v19 = vmul.f32 %v6348_v17, %v6346_v10 }
 0x95e   :  { %v1654_v23 = vpop.f32.mrb[12].mxu0 }
 0x95f   :  { %v1656_v2 = vpop.f32.mrb[13].mxu0 }
 0x960   :  { %v1661_v5 = vcombine.low %v1654_v23, %v1656_v2  ;;  %v5357_v23 = vrot.slane %v7578_v55, 11 }
 0x962   :  { %v1662_v25 = vrot.slane %v1661_v5, 1  ;;  %v1665_v24 = vadd.f32 %v1661_v5, %v7325_v45 }
 0x964   :  { %v1666_v56 = vadd.f32 %v1662_v25, %v7441_v7  ;;  %v5352_v13 = vmul.f32 -1.442695, %v1665_v24  ;;  %v1681_v29 = vrot.slane %v1665_v24, 4 }
 0x966   :  { %6349 = vpow2.f32 %v5352_v13  ;;  %v5353_v38 = vmul.f32 -1.442695, %v1666_v56  ;;  %v1682_v39 = vrot.slane %v1666_v56, 4 }
 0x968   :  { %6351 = vpow2.f32 %v5353_v38 }
 0x969   :  { %6353 = vtanh.f32 %v1681_v29 }
 0x970   :  { %v6350_v62 = vpop.eup %6349 }
 0x971   :  { %v1673_v12 = vadd.f32 1.0, %v6350_v62 }
 0x972   :  { %v6352_v26 = vpop.eup %6351 }
 0x973   :  { %v1674_v49 = vadd.f32 1.0, %v6352_v26  ;;  %6355 = vrcp.f32 %v1673_v12  ;;  %v6354_v44 = vpop.eup %6353 }
 0x974   :  { %6357 = vtanh.f32 %v1682_v39 }
 0x975   :  { %6359 = vrcp.f32 %v1674_v49  ;;  %v1231_v49 = vmul.f32 %v6348_v17, %v7583_v47 }
 0x976   :  { %6361 = vpow2.f32 %v5343_v48 }
 0x97d   :  { %v6356_v58 = vpop.eup %6355 }
 0x97e   :  { %v6358_v10 = vpop.eup %6357  ;;  %v1717_v2 = vmul.f32 %v6356_v58, %v6354_v44  ;;  %v1715_v5 = vmul.f32 %v6356_v58, %v5356_v51 }
 0x97f   :  { %v6360_v25 = vpop.eup %6359 }
 0x980   :  { %1721 = vrot.lane.b32.xlu0 %v1717_v2, %s6966_s2  ;;  %v1718_v13 = vmul.f32 %v6360_v25, %v6358_v10  ;;  %v1716_v38 = vmul.f32 %v6360_v25, %v5357_v23  ;;  %v6362_v29 = vpop.eup %6361 }
 0x981   :  { %v1228_v39 = vadd.f32 1.0, %v6362_v29 }
 0x982   :  { %1723 = vrot.lane.b32.xlu1 %v1718_v13, %s6966_s2 }
 0x984   :  { %1234 = vrot.lane.b32.xlu0 %v1232_v19, %s6966_s2 }
 0x986   :  { %1687 = vrot.lane.b32.xlu1 %v1665_v24, %s6966_s2 }
 0x988   :  { %1689 = vrot.lane.b32.xlu0 %v1666_v56, %s6966_s2 }
 0x9f2   :  { %v1722_v62 = vpop.permute.xlu0 %1721 }
 0x9f3   :  { %v7640_v55 = vadd.f32 %v1722_v62, %v1715_v5 }
 0x9f4   :  { %v1724_v12 = vpop.permute.xlu1 %1723 }
 0x9f5   :  { %6363 = vtanh.f32 %v7640_v55  ;;  %v7643_v26 = vadd.f32 %v1724_v12, %v1716_v38 }
 0x9f6   :  { %v1235_v44 = vpop.permute.xlu0 %1234 }
 0x9f7   :  { %6365 = vtanh.f32 %v7643_v26  ;;  %v7647_v19 = vadd.f32 %v1235_v44, %v1231_v49 }
 0x9f8   :  { %6367 = vrcp.f32 %v1228_v39 }
 0x9f9   :  { %6369 = vtanh.f32 %v7647_v19 }
 0x9fa   :  { %v1690_v23 = vpop.permute.xlu0 %1689 }
 0x9fb   :  { %v1692_v5 = vrot.slane %v1690_v23, 4 }
 0x9fd   :  { %v5355_v13 = vmul.f32 -1.442695, %v1692_v5 }
 0x9ff   :  { %v6364_v6 = vpop.eup %6363 }
 0xa00   :  { %1733 = vrot.lane.b32.xlu1 %v6364_v6, %s6966_s2 }
 0xa01   :  { %v6366_v24 = vpop.eup %6365 }
 0xa02   :  { %v6368_v56 = vpop.eup %6367  ;;  %1735 = vrot.lane.b32.xlu0 %v6366_v24, %s6966_s2 }
 0xa03   :  { %v6370_v51 = vpop.eup %6369 }
 0xa04   :  { %v7652_v58 = vmul.f32 %v6370_v51, %v6368_v56 }
 0xa06   :  { %v1447_v47 = vrot.slane %v7652_v58, 5 }
 0xa08   :  { %v1449_v17 = vsel %vm373_vm2, %v7608_v57, %v1447_v47  ;;  %v1688_v57 = vpop.permute.xlu1 %1687 }
 0xa09   :  { %v1451_v10 = vrot.slane %v1449_v17, 3  ;;  %v1691_v2 = vrot.slane %v1688_v57, 4 }
 0xa0b   :  { %1518 = vmatmul.mubr.f32.vlgmr.msra.gmra.mrb[8].mxu1 %v1451_v10  ;;  %v5354_v25 = vmul.f32 -1.442695, %v1691_v2 }
 0xa0c   :  { %5802 = vmatpush1.bf16.msra.mxu1 %v7228_v8  ;;  %1952 = vmatprep.mubr.f32.mxu1 %v8631_v0 }
 0xa0d   :  { %5804 = vmatprep.subr.bf16.mxu1 %v7230_v9  ;;  %6371 = vpow2.f32 %v5354_v25 }
 0xa0e   :  { %6373 = vpow2.f32 %v5355_v13 }
 0xa10   :  { %5806 = vmatpush1.bf16.msra.mxu1 %v7246_v14 }
 0xa11   :  { %5808 = vmatprep.subr.bf16.mxu1 %v7252_v18 }
 0xa14   :  { %5810 = vmatpush1.bf16.msra.mxu1 %v7275_v27 }
 0xa15   :  { %5812 = vmatprep.subr.bf16.mxu1 %v7279_v28 }
 0xa17   :  { %v6372_v38 = vpop.eup %6371 }
 0xa18   :  { %5814 = vmatpush1.bf16.msra.mxu1 %v7290_v32  ;;  %v6374_v48 = vpop.eup %6373  ;;  %v1701_v29 = vadd.f32 1.0, %v6372_v38 }
 0xa19   :  { %5816 = vmatprep.subr.bf16.mxu1 %v7342_v16  ;;  %v1702_v62 = vadd.f32 1.0, %v6374_v48 }
 0xa1a   :  { %6375 = vrcp.f32 %v1701_v29 }
 0xa1b   :  { %6377 = vrcp.f32 %v1702_v62 }
 0xa24   :  { %v6376_v39 = vpop.eup %6375 }
 0xa25   :  { %v6378_v44 = vpop.eup %6377 }
 0xa72   :  { %v1734_v12 = vpop.permute.xlu1 %1733 }
 0xa73   :  { %v1739_v49 = vmul.f32 %v6376_v39, %v1734_v12 }
 0xa74   :  { %v1736_v6 = vpop.permute.xlu0 %1735 }
 0xa75   :  { %v1740_v24 = vmul.f32 %v6378_v44, %v1736_v6  ;;  %v1746_v56 = vrot.slane %v1739_v49, %v7310_v35 }
 0xa77   :  { %v1750_v51 = vrot.slane %v1740_v24, %v7310_v35 }
 0xa79   :  { %v7669_v47 = vsel %vm532_vm1, %v1750_v51, %v1746_v56 }
 0xa7a   :  { %5360 = vmatmul.mubr.msk.f32.vlgmr.msra.gmra.mrb[10].mxu1 %vm373_vm2, %v7669_v47 }
 0xa7b   :  { %5818 = vmatpush1.bf16.msra.mxu1 %v7344_v21  ;;  %2121 = vmatprep.mubr.f32.mxu1 %v8631_v0 }
 0xa7c   :  { %5820 = vmatprep.subr.bf16.mxu1 %v7346_v22 }
 0xa7f   :  { %5822 = vmatpush1.bf16.msra.mxu1 %v7351_v30 }
 0xa80   :  { %5824 = vmatprep.subr.bf16.mxu1 %v7354_v31 }
 0xa83   :  { %5826 = vmatpush1.bf16.msra.mxu1 %v7357_v43 }
 0xa84   :  { %5828 = vmatprep.subr.bf16.mxu1 %v7360_v46 }
 0xa87   :  { %5830 = vmatpush1.bf16.msra.mxu1 %v7363_v53 }
 0xa88   :  { %5832 = vmatprep.subr.bf16.mxu1 %v7366_v54 }
 0xa8b   :  { %5834 = vmatpush1.bf16.msra.mxu1 %v7369_v59 }
 0xa8c   :  { %5836 = vmatprep.subr.bf16.mxu1 %v7372_v60 }
 0xa8f   :  { %5838 = vmatpush1.bf16.msra.mxu1 %v7375_v63 }
 0xa90   :  { %5840 = vmatprep.subr.bf16.mxu1 %v7381_v11 }
 0xa93   :  { %5842 = vmatpush1.bf16.msra.mxu1 %v7383_v15 }
 0xa94   :  { %5844 = vmatprep.subr.bf16.mxu1 %v7396_v36 }
 0xa97   :  { %5846 = vmatpush1.bf16.msra.mxu1 %v7398_v41 }
 0xa98   :  { %5896 = vmatprep.subr.bf16.mxu1 %v7217_v4 }
 0xade   :  { %v1519_v17 = vpop.f32.mrb[8].mxu1 }
 0xadf   :  { %v1520_v10 = vadd.f32 %v1519_v17, %v7446_v42  ;;  %v1521_v57 = vpop.f32.mrb[9].mxu1 }
 0xae0   :  { %v1522_v2 = vadd.f32 %v1521_v57, %v7452_v1 }
 0xae1   :  { %v5349_v23 = vmul.f32 -1.442695, %v1520_v10 }
 0xae3   :  { %6379 = vpow2.f32 %v5349_v23 }
 0xae4   :  { %6381 = vtanh.f32 %v1522_v2 }
 0xaed   :  { %v6380_v5 = vpop.eup %6379 }
 0xaee   :  { %v1527_v25 = vadd.f32 1.0, %v6380_v5  ;;  %v6382_v13 = vpop.eup %6381 }
 0xaf0   :  { %6383 = vrcp.f32 %v1527_v25  ;;  %v2010_v25 = vrot.slane %v7643_v26, 7  ;;  %v5350_v26 = vmul.f32 -1.442695, %v1522_v2 }
 0xafa   :  { %v6384_v38 = vpop.eup %6383 }
 0xafb   :  { %v1538_v48 = vmul.f32 %v6384_v38, %v6382_v13 }
 0xb4d   :  { %v1954_v29 = vpop.f32.mrb[10].mxu1 }
 0xb4e   :  { %v1956_v62 = vpop.f32.mrb[11].mxu1 }
 0xb4f   :  { %v1961_v39 = vcombine.low %v1954_v29, %v1956_v62  ;;  %v2009_v62 = vrot.slane %v7640_v55, 7 }
 0xb51   :  { %v1962_v12 = vrot.slane %v1961_v39, 7  ;;  %v1966_v49 = vadd.f32 %v1961_v39, %v7441_v7 }
 0xb53   :  { %v1965_v44 = vadd.f32 %v1962_v12, %v7325_v45  ;;  %v5362_v6 = vmul.f32 -1.442695, %v1966_v49  ;;  %v1982_v56 = vrot.slane %v1966_v49, 4 }
 0xb55   :  { %v5361_v24 = vmul.f32 -1.442695, %v1965_v44  ;;  %6385 = vpow2.f32 %v5362_v6  ;;  %v1981_v17 = vrot.slane %v1965_v44, 4 }
 0xb57   :  { %6387 = vpow2.f32 %v5361_v24 }
 0xb58   :  { %6389 = vtanh.f32 %v1982_v56 }
 0xb5f   :  { %v6386_v51 = vpop.eup %6385 }
 0xb60   :  { %v1974_v10 = vadd.f32 1.0, %v6386_v51 }
 0xb61   :  { %v6388_v57 = vpop.eup %6387 }
 0xb62   :  { %v1973_v23 = vadd.f32 1.0, %v6388_v57  ;;  %6391 = vrcp.f32 %v1974_v10  ;;  %v6390_v5 = vpop.eup %6389 }
 0xb63   :  { %6393 = vtanh.f32 %v1981_v17 }
 0xb64   :  { %6395 = vrcp.f32 %v1973_v23 }
 0xb65   :  { %6397 = vpow2.f32 %v5350_v26 }
 0xb6c   :  { %v6392_v13 = vpop.eup %6391 }
 0xb6d   :  { %v6394_v29 = vpop.eup %6393  ;;  %v2016_v39 = vmul.f32 %v6392_v13, %v6390_v5  ;;  %v2014_v12 = vmul.f32 %v6392_v13, %v2010_v25 }
 0xb6e   :  { %v6396_v6 = vpop.eup %6395 }
 0xb6f   :  { %2021 = vrot.lane.b32.xlu0 %v2016_v39, %s6966_s2  ;;  %v2015_v24 = vmul.f32 %v6396_v6, %v6394_v29  ;;  %v2013_v51 = vmul.f32 %v6396_v6, %v2009_v62  ;;  %v6398_v57 = vpop.eup %6397 }
 0xb70   :  { %v1534_v5 = vadd.f32 1.0, %v6398_v57 }
 0xb71   :  { %2019 = vrot.lane.b32.xlu1 %v2015_v24, %s6966_s2 }
 0xb73   :  { %1989 = vrot.lane.b32.xlu0 %v1966_v49, %s6966_s2  ;;  %v1537_v49 = vmul.f32 %v6384_v38, %v7647_v19 }
 0xb75   :  { %1987 = vrot.lane.b32.xlu1 %v1965_v44, %s6966_s2 }
 0xb79   :  { %1540 = vrot.lane.b32.xlu1 %v1538_v48, %s6966_s2 }
 0xbe1   :  { %v2022_v56 = vpop.permute.xlu0 %2021 }
 0xbe2   :  { %v7701_v17 = vadd.f32 %v2022_v56, %v2014_v12 }
 0xbe3   :  { %v2020_v55 = vpop.permute.xlu1 %2019 }
 0xbe4   :  { %6399 = vtanh.f32 %v7701_v17  ;;  %v7704_v10 = vadd.f32 %v2020_v55, %v2013_v51 }
 0xbe6   :  { %6401 = vtanh.f32 %v7704_v10 }
 0xbe7   :  { %v1988_v23 = vpop.permute.xlu1 %1987  ;;  %6403 = vrcp.f32 %v1534_v5 }
 0xbe8   :  { %v1991_v39 = vrot.slane %v1988_v23, 4 }
 0xbea   :  { %v5363_v6 = vmul.f32 -1.442695, %v1991_v39 }
 0xbeb   :  { %v1541_v44 = vpop.permute.xlu1 %1540 }
 0xbec   :  { %v7708_v25 = vadd.f32 %v1541_v44, %v1537_v49 }
 0xbee   :  { %v6400_v2 = vpop.eup %6399  ;;  %6405 = vtanh.f32 %v7708_v25 }
 0xbef   :  { %2033 = vrot.lane.b32.xlu1 %v6400_v2, %s6966_s2 }
 0xbf0   :  { %v6402_v48 = vpop.eup %6401 }
 0xbf1   :  { %2031 = vrot.lane.b32.xlu0 %v6402_v48, %s6966_s2  ;;  %v6404_v13 = vpop.eup %6403 }
 0xbf8   :  { %v6406_v29 = vpop.eup %6405 }
 0xbf9   :  { %v7713_v62 = vmul.f32 %v6406_v29, %v6404_v13 }
 0xbfb   :  { %v1753_v19 = vsel %vm373_vm2, %v7669_v47, %v7713_v62  ;;  %v1990_v47 = vpop.permute.xlu0 %1989 }
 0xbfc   :  { %1819 = vmatmul.mubr.f32.vlgmr.msra.gmra.mrb[14].mxu0 %v1753_v19  ;;  %v1992_v38 = vrot.slane %v1990_v47, 4 }
 0xbfd   :  { %5850 = vmatpush1.bf16.msra.mxu0 %v7228_v8  ;;  %2256 = vmatprep.mubr.f32.mxu0 %v8631_v0 }
 0xbfe   :  { %5852 = vmatprep.subr.bf16.mxu0 %v7230_v9  ;;  %v5364_v12 = vmul.f32 -1.442695, %v1992_v38 }
 0xc00   :  { %6407 = vpow2.f32 %v5364_v12 }
 0xc01   :  { %5854 = vmatpush1.bf16.msra.mxu0 %v7246_v14  ;;  %6409 = vpow2.f32 %v5363_v6 }
 0xc02   :  { %5856 = vmatprep.subr.bf16.mxu0 %v7252_v18 }
 0xc05   :  { %5858 = vmatpush1.bf16.msra.mxu0 %v7275_v27 }
 0xc06   :  { %5860 = vmatprep.subr.bf16.mxu0 %v7279_v28 }
 0xc09   :  { %5862 = vmatpush1.bf16.msra.mxu0 %v7290_v32 }
 0xc0a   :  { %5864 = vmatprep.subr.bf16.mxu0 %v7342_v16  ;;  %v6408_v24 = vpop.eup %6407 }
 0xc0b   :  { %v6410_v51 = vpop.eup %6409  ;;  %v2002_v26 = vadd.f32 1.0, %v6408_v24 }
 0xc0c   :  { %v2001_v56 = vadd.f32 1.0, %v6410_v51 }
 0xc0d   :  { %6411 = vrcp.f32 %v2002_v26 }
 0xc0e   :  { %6413 = vrcp.f32 %v2001_v56 }
 0xc17   :  { %v6412_v55 = vpop.eup %6411 }
 0xc18   :  { %v6414_v49 = vpop.eup %6413 }
 0xc61   :  { %v2034_v57 = vpop.permute.xlu1 %2033 }
 0xc62   :  { %v2038_v5 = vmul.f32 %v6412_v55, %v2034_v57 }
 0xc63   :  { %v2032_v44 = vpop.permute.xlu0 %2031 }
 0xc64   :  { %v2037_v2 = vmul.f32 %v6414_v49, %v2032_v44  ;;  %v2048_v48 = vrot.slane %v2038_v5, %v7313_v37 }
 0xc66   :  { %v2044_v23 = vrot.slane %v2037_v2, %v7313_v37 }
 0xc68   :  { %v7730_v13 = vsel %vm832_vm3, %v2048_v48, %v2044_v23  ;;  %v2189_v29 = vsel %vm532_vm1, %v2048_v48, %v2044_v23 }
 0xc69   :  { %5367 = vmatmul.mubr.msk.f32.vlgmr.msra.gmra.mrb[16].mxu0 %vm373_vm2, %v2189_v29 }
 0xc6a   :  { %5866 = vmatpush1.bf16.msra.mxu0 %v7344_v21  ;;  %2426 = vmatprep.mubr.f32.mxu0 %v8631_v0 }
 0xc6b   :  { %5868 = vmatprep.subr.bf16.mxu0 %v7346_v22 }
 0xc6e   :  { %5870 = vmatpush1.bf16.msra.mxu0 %v7351_v30 }
 0xc6f   :  { %5872 = vmatprep.subr.bf16.mxu0 %v7354_v31 }
 0xc72   :  { %5874 = vmatpush1.bf16.msra.mxu0 %v7357_v43 }
 0xc73   :  { %5876 = vmatprep.subr.bf16.mxu0 %v7360_v46 }
 0xc76   :  { %5878 = vmatpush1.bf16.msra.mxu0 %v7363_v53 }
 0xc77   :  { %5880 = vmatprep.subr.bf16.mxu0 %v7366_v54 }
 0xc7a   :  { %5882 = vmatpush1.bf16.msra.mxu0 %v7369_v59 }
 0xc7b   :  { %5884 = vmatprep.subr.bf16.mxu0 %v7372_v60 }
 0xc7e   :  { %5886 = vmatpush1.bf16.msra.mxu0 %v7375_v63 }
 0xc7f   :  { %5888 = vmatprep.subr.bf16.mxu0 %v7381_v11 }
 0xc82   :  { %5890 = vmatpush1.bf16.msra.mxu0 %v7383_v15 }
 0xc83   :  { %5892 = vmatprep.subr.bf16.mxu0 %v7396_v36 }
 0xc86   :  { %5894 = vmatpush1.bf16.msra.mxu0 %v7398_v41 }
 0xc87   :  { %5944 = vmatprep.subr.bf16.mxu0 %v7217_v4 }
 0xccf   :  { %v1820_v19 = vpop.f32.mrb[14].mxu0 }
 0xcd0   :  { %v1821_v47 = vadd.f32 %v1820_v19, %v7446_v42  ;;  %v1822_v38 = vpop.f32.mrb[15].mxu0 }
 0xcd1   :  { %v1823_v12 = vadd.f32 %v1822_v38, %v7452_v1 }
 0xcd2   :  { %v5358_v39 = vmul.f32 -1.442695, %v1821_v47 }
 0xcd4   :  { %6415 = vpow2.f32 %v5358_v39 }
 0xcd5   :  { %6417 = vtanh.f32 %v1823_v12 }
 0xcde   :  { %v6416_v6 = vpop.eup %6415 }
 0xcdf   :  { %v1828_v24 = vadd.f32 1.0, %v6416_v6  ;;  %v6418_v51 = vpop.eup %6417 }
 0xce1   :  { %6419 = vrcp.f32 %v1828_v24 }
 0xceb   :  { %v6420_v26 = vpop.eup %6419 }
 0xcec   :  { %v1839_v56 = vmul.f32 %v6420_v26, %v6418_v51 }
 0xd3c   :  { %v2258_v55 = vpop.f32.mrb[16].mxu0 }
 0xd3d   :  { %v2260_v57 = vpop.f32.mrb[17].mxu0 }
 0xd3e   :  { %v2265_v5 = vcombine.low %v2258_v55, %v2260_v57  ;;  %v2314_v57 = vrot.slane %v7704_v10, 7 }
 0xd40   :  { %v2266_v49 = vrot.slane %v2265_v5, 6  ;;  %v2267_v44 = vrot.slane %v2265_v5, 7 }
 0xd42   :  { %v2270_v2 = vadd.f32 %v2266_v49, %v7325_v45  ;;  %v2271_v48 = vadd.f32 %v2267_v44, %v7441_v7  ;;  %v2315_v49 = vrot.slane %v7701_v17, 7 }
 0xd44   :  { %v5368_v23 = vmul.f32 -1.442695, %v2270_v2  ;;  %v5369_v29 = vmul.f32 -1.442695, %v2271_v48  ;;  %v2286_v19 = vrot.slane %v2270_v2, 4  ;;  %v2287_v47 = vrot.slane %v2271_v48, 4 }
 0xd46   :  { %6421 = vpow2.f32 %v5368_v23 }
 0xd47   :  { %6423 = vpow2.f32 %v5369_v29 }
 0xd48   :  { %6425 = vtanh.f32 %v2286_v19  ;;  %v5359_v19 = vmul.f32 -1.442695, %v1823_v12 }
 0xd49   :  { %6427 = vtanh.f32 %v2287_v47 }
 0xd50   :  { %v6422_v38 = vpop.eup %6421 }
 0xd51   :  { %v6424_v39 = vpop.eup %6423  ;;  %v2278_v6 = vadd.f32 1.0, %v6422_v38 }
 0xd52   :  { %v2279_v24 = vadd.f32 1.0, %v6424_v39  ;;  %v6426_v51 = vpop.eup %6425 }
 0xd53   :  { %6429 = vrcp.f32 %v2278_v6  ;;  %v6428_v55 = vpop.eup %6427 }
 0xd54   :  { %6431 = vrcp.f32 %v2279_v24 }
 0xd55   :  { %6433 = vpow2.f32 %v5359_v19 }
 0xd5d   :  { %v6430_v5 = vpop.eup %6429 }
 0xd5e   :  { %v6432_v44 = vpop.eup %6431  ;;  %v2320_v23 = vmul.f32 %v6430_v5, %v6426_v51  ;;  %v2318_v29 = vmul.f32 %v6430_v5, %v2314_v57  ;;  %v8635_v57 = vmov 0.0  }
 0xd5f   :  { %v2321_v33 = vmul.f32 %v6432_v44, %v6428_v55  ;;  %v2319_v0 = vmul.f32 %v6432_v44, %v2315_v49  ;;  %v6434_v10 = vpop.eup %6433 }
 0xd60   :  { %2324 = vrot.lane.b32.xlu0 %v2320_v23, %s6966_s2  ;;  %v1835_v39 = vadd.f32 1.0, %v6434_v10 }
 0xd61   :  { %2326 = vrot.lane.b32.xlu1 %v2321_v33, %s6966_s2  ;;  %v1838_v33 = vmul.f32 %v6420_v26, %v7708_v25 }
 0xd64   :  { %1841 = vrot.lane.b32.xlu0 %v1839_v56, %s6966_s2 }
 0xd65   :  { %2292 = vrot.lane.b32.xlu1 %v2270_v2, %s6966_s2 }
 0xd68   :  { %2294 = vrot.lane.b32.xlu0 %v2271_v48, %s6966_s2 }
 0xdd2   :  { %v2325_v47 = vpop.permute.xlu0 %2324 }
 0xdd3   :  { %v2327_v17 = vpop.permute.xlu1 %2326  ;;  %v7762_v38 = vadd.f32 %v2325_v47, %v2318_v29 }
 0xdd4   :  { %v7764_v6 = vadd.f32 %v2327_v17, %v2319_v0 }
 0xdd5   :  { %6435 = vtanh.f32 %v7762_v38 }
 0xdd6   :  { %6437 = vtanh.f32 %v7764_v6  ;;  %v1842_v56 = vpop.permute.xlu0 %1841 }
 0xdd7   :  { %v7769_v2 = vadd.f32 %v1842_v56, %v1838_v33  ;;  %6439 = vrcp.f32 %v1835_v39 }
 0xdd9   :  { %6441 = vtanh.f32 %v7769_v2 }
 0xdda   :  { %v2295_v5 = vpop.permute.xlu0 %2294 }
 0xddb   :  { %v2297_v44 = vrot.slane %v2295_v5, 4 }
 0xddd   :  { %v5371_v29 = vmul.f32 -1.442695, %v2297_v44 }
 0xddf   :  { %v6436_v12 = vpop.eup %6435 }
 0xde0   :  { %v6438_v48 = vpop.eup %6437  ;;  %2336 = vrot.lane.b32.xlu1 %v6436_v12, %s6966_s2 }
 0xde1   :  { %2338 = vrot.lane.b32.xlu0 %v6438_v48, %s6966_s2  ;;  %v6440_v0 = vpop.eup %6439 }
 0xde3   :  { %v6442_v24 = vpop.eup %6441 }
 0xde4   :  { %v7774_v51 = vmul.f32 %v6442_v24, %v6440_v0 }
 0xde6   :  { %v2051_v25 = vrot.slane %v7774_v51, 7 }
 0xde8   :  { %v2053_v26 = vsel %vm373_vm2, %v7730_v13, %v2051_v25  ;;  %v2293_v13 = vpop.permute.xlu1 %2292 }
 0xde9   :  { %v2055_v55 = vrot.slane %v2053_v26, 1  ;;  %v2296_v49 = vrot.slane %v2293_v13, 4 }
 0xdeb   :  { %2122 = vmatmul.mubr.f32.vlgmr.msra.gmra.mrb[12].mxu1 %v2055_v55  ;;  %v5370_v23 = vmul.f32 -1.442695, %v2296_v49 }
 0xdec   :  { %5898 = vmatpush1.bf16.msra.mxu1 %v7228_v8  ;;  %2561 = vmatprep.mubr.f32.mxu1 %v8635_v57 }
 0xded   :  { %5900 = vmatprep.subr.bf16.mxu1 %v7230_v9  ;;  %6443 = vpow2.f32 %v5370_v23 }
 0xdee   :  { %6445 = vpow2.f32 %v5371_v29 }
 0xdf0   :  { %5902 = vmatpush1.bf16.msra.mxu1 %v7246_v14 }
 0xdf1   :  { %5904 = vmatprep.subr.bf16.mxu1 %v7252_v18 }
 0xdf4   :  { %5906 = vmatpush1.bf16.msra.mxu1 %v7275_v27 }
 0xdf5   :  { %5908 = vmatprep.subr.bf16.mxu1 %v7279_v28 }
 0xdf7   :  { %v6444_v19 = vpop.eup %6443 }
 0xdf8   :  { %5910 = vmatpush1.bf16.msra.mxu1 %v7290_v32  ;;  %v6446_v10 = vpop.eup %6445  ;;  %v2306_v47 = vadd.f32 1.0, %v6444_v19 }
 0xdf9   :  { %5912 = vmatprep.subr.bf16.mxu1 %v7342_v16  ;;  %v2307_v17 = vadd.f32 1.0, %v6446_v10 }
 0xdfa   :  { %6447 = vrcp.f32 %v2306_v47 }
 0xdfb   :  { %6449 = vrcp.f32 %v2307_v17 }
 0xe04   :  { %v6448_v39 = vpop.eup %6447 }
 0xe05   :  { %v6450_v56 = vpop.eup %6449 }
 0xe52   :  { %v2337_v33 = vpop.permute.xlu1 %2336 }
 0xe53   :  { %v2342_v12 = vmul.f32 %v6448_v39, %v2337_v33  ;;  %v2339_v48 = vpop.permute.xlu0 %2338 }
 0xe54   :  { %v2343_v0 = vmul.f32 %v6450_v56, %v2339_v48 }
 0xe55   :  { %v2349_v24 = vrot.slane %v2342_v12, %v7539_v3 }
 0xe56   :  { %v2353_v25 = vrot.slane %v2343_v0, %v7539_v3 }
 0xe58   :  { %v7791_v26 = vsel %vm1138_vm4, %v2353_v25, %v2349_v24  ;;  %v2494_v55 = vsel %vm532_vm1, %v2353_v25, %v2349_v24 }
 0xe59   :  { %5374 = vmatmul.mubr.msk.f32.vlgmr.msra.gmra.mrb[14].mxu1 %vm373_vm2, %v2494_v55 }
 0xe5a   :  { %5914 = vmatpush1.bf16.msra.mxu1 %v7344_v21  ;;  %2731 = vmatprep.mubr.f32.mxu1 %v8635_v57 }
 0xe5b   :  { %5916 = vmatprep.subr.bf16.mxu1 %v7346_v22 }
 0xe5e   :  { %5918 = vmatpush1.bf16.msra.mxu1 %v7351_v30 }
 0xe5f   :  { %5920 = vmatprep.subr.bf16.mxu1 %v7354_v31 }
 0xe62   :  { %5922 = vmatpush1.bf16.msra.mxu1 %v7357_v43 }
 0xe63   :  { %5924 = vmatprep.subr.bf16.mxu1 %v7360_v46 }
 0xe66   :  { %5926 = vmatpush1.bf16.msra.mxu1 %v7363_v53 }
 0xe67   :  { %5928 = vmatprep.subr.bf16.mxu1 %v7366_v54 }
 0xe6a   :  { %5930 = vmatpush1.bf16.msra.mxu1 %v7369_v59 }
 0xe6b   :  { %5932 = vmatprep.subr.bf16.mxu1 %v7372_v60 }
 0xe6e   :  { %5934 = vmatpush1.bf16.msra.mxu1 %v7375_v63 }
 0xe6f   :  { %5936 = vmatprep.subr.bf16.mxu1 %v7381_v11 }
 0xe72   :  { %5938 = vmatpush1.bf16.msra.mxu1 %v7383_v15 }
 0xe73   :  { %5940 = vmatprep.subr.bf16.mxu1 %v7396_v36 }
 0xe76   :  { %5942 = vmatpush1.bf16.msra.mxu1 %v7398_v41 }
 0xe77   :  { %5992 = vmatprep.subr.bf16.mxu1 %v7217_v4 }
 0xebe   :  { %v2123_v13 = vpop.f32.mrb[12].mxu1 }
 0xebf   :  { %v2124_v5 = vadd.f32 %v2123_v13, %v7446_v42  ;;  %v2125_v49 = vpop.f32.mrb[13].mxu1 }
 0xec0   :  { %v2126_v23 = vadd.f32 %v2125_v49, %v7452_v1 }
 0xec1   :  { %v5365_v44 = vmul.f32 -1.442695, %v2124_v5 }
 0xec2   :  { %v5366_v13 = vmul.f32 -1.442695, %v2126_v23 }
 0xec3   :  { %6451 = vpow2.f32 %v5365_v44 }
 0xec4   :  { %6453 = vtanh.f32 %v2126_v23 }
 0xecd   :  { %v6452_v29 = vpop.eup %6451 }
 0xece   :  { %v2131_v19 = vadd.f32 1.0, %v6452_v29  ;;  %v6454_v10 = vpop.eup %6453 }
 0xed0   :  { %6455 = vrcp.f32 %v2131_v19 }
 0xeda   :  { %v6456_v47 = vpop.eup %6455 }
 0xedb   :  { %v2142_v17 = vmul.f32 %v6456_v47, %v6454_v10 }
 0xedd   :  { %2144 = vrot.lane.b32.xlu1 %v2142_v17, %s6966_s2 }
 0xf2c   :  { %v2563_v39 = vpop.f32.mrb[14].mxu1 }
 0xf2d   :  { %v2565_v33 = vpop.f32.mrb[15].mxu1 }
 0xf2e   :  { %v2570_v56 = vcombine.low %v2563_v39, %v2565_v33 }
 0xf30   :  { %v2571_v12 = vrot.slane %v2570_v56, 5  ;;  %v2572_v48 = vrot.slane %v2570_v56, 6  ;;  %v2620_v56 = vrot.slane %v7764_v6, 7 }
 0xf32   :  { %v2575_v0 = vadd.f32 %v2571_v12, %v7325_v45  ;;  %v2576_v24 = vadd.f32 %v2572_v48, %v7441_v7  ;;  %v2619_v7 = vrot.slane %v7762_v38, 7 }
 0xf34   :  { %v5375_v25 = vmul.f32 -1.442695, %v2575_v0  ;;  %v5376_v55 = vmul.f32 -1.442695, %v2576_v24  ;;  %v2591_v5 = vrot.slane %v2575_v0, 4  ;;  %v2592_v49 = vrot.slane %v2576_v24, 4 }
 0xf36   :  { %6457 = vpow2.f32 %v5375_v25  ;;  %v2141_v25 = vmul.f32 %v6456_v47, %v7769_v2 }
 0xf37   :  { %6459 = vpow2.f32 %v5376_v55 }
 0xf38   :  { %6461 = vpow2.f32 %v5366_v13 }
 0xf39   :  { %6463 = vtanh.f32 %v2591_v5 }
 0xf3a   :  { %6465 = vtanh.f32 %v2592_v49 }
 0xf40   :  { %v6458_v44 = vpop.eup %6457 }
 0xf41   :  { %v6460_v29 = vpop.eup %6459  ;;  %v2583_v19 = vadd.f32 1.0, %v6458_v44 }
 0xf42   :  { %v2584_v10 = vadd.f32 1.0, %v6460_v29  ;;  %v6462_v17 = vpop.eup %6461 }
 0xf43   :  { %6467 = vrcp.f32 %v2583_v19  ;;  %v6464_v45 = vpop.eup %6463  ;;  %v2138_v23 = vadd.f32 1.0, %v6462_v17 }
 0xf44   :  { %6469 = vrcp.f32 %v2584_v10  ;;  %v6466_v39 = vpop.eup %6465 }
 0xf45   :  { %6471 = vrcp.f32 %v2138_v23 }
 0xf4d   :  { %v6468_v33 = vpop.eup %6467 }
 0xf4e   :  { %v6470_v12 = vpop.eup %6469  ;;  %v2625_v48 = vmul.f32 %v6468_v33, %v6464_v45  ;;  %v2623_v55 = vmul.f32 %v6468_v33, %v2619_v7 }
 0xf4f   :  { %v2626_v13 = vmul.f32 %v6470_v12, %v6466_v39  ;;  %v2145_v5 = vpop.permute.xlu1 %2144  ;;  %v2624_v44 = vmul.f32 %v6470_v12, %v2620_v56  ;;  %v6472_v38 = vpop.eup %6471 }
 0xf50   :  { %2629 = vrot.lane.b32.xlu0 %v2625_v48, %s6966_s2  ;;  %v7821_v49 = vadd.f32 %v2145_v5, %v2141_v25 }
 0xf51   :  { %2631 = vrot.lane.b32.xlu1 %v2626_v13, %s6966_s2 }
 0xf52   :  { %6473 = vtanh.f32 %v7821_v49 }
 0xf54   :  { %2597 = vrot.lane.b32.xlu0 %v2575_v0, %s6966_s2 }
 0xf55   :  { %2599 = vrot.lane.b32.xlu1 %v2576_v24, %s6966_s2 }
 0xf5c   :  { %v6474_v6 = vpop.eup %6473 }
 0xf5d   :  { %v7827_v2 = vmul.f32 %v6474_v6, %v6472_v38 }
 0xf5f   :  { %v2356_v47 = vrot.slane %v7827_v2, 6 }
 0xf61   :  { %v2358_v29 = vsel %vm373_vm2, %v7791_v26, %v2356_v47 }
 0xf62   :  { %v2360_v19 = vrot.slane %v2358_v29, 2 }
 0xf64   :  { %2427 = vmatmul.mubr.f32.vlgmr.msra.gmra.mrb[18].mxu0 %v2360_v19 }
 0xf65   :  { %5946 = vmatpush1.bf16.msra.mxu0 %v7228_v8  ;;  %2866 = vmatprep.mubr.f32.mxu0 %v8635_v57 }
 0xf66   :  { %5948 = vmatprep.subr.bf16.mxu0 %v7230_v9 }
 0xf69   :  { %5950 = vmatpush1.bf16.msra.mxu0 %v7246_v14 }
 0xf6a   :  { %5952 = vmatprep.subr.bf16.mxu0 %v7252_v18 }
 0xf6d   :  { %5954 = vmatpush1.bf16.msra.mxu0 %v7275_v27 }
 0xf6e   :  { %5956 = vmatprep.subr.bf16.mxu0 %v7279_v28 }
 0xf71   :  { %5958 = vmatpush1.bf16.msra.mxu0 %v7290_v32 }
 0xf72   :  { %5960 = vmatprep.subr.bf16.mxu0 %v7342_v16 }
 0xfc2   :  { %v2630_v26 = vpop.permute.xlu0 %2629 }
 0xfc3   :  { %v7841_v0 = vadd.f32 %v2630_v26, %v2623_v55  ;;  %v2632_v24 = vpop.permute.xlu1 %2631 }
 0xfc4   :  { %v7843_v10 = vadd.f32 %v2632_v24, %v2624_v44 }
 0xfc5   :  { %6475 = vtanh.f32 %v7841_v0 }
 0xfc6   :  { %6477 = vtanh.f32 %v7843_v10  ;;  %v2598_v39 = vpop.permute.xlu0 %2597 }
 0xfc7   :  { %v2600_v7 = vpop.permute.xlu1 %2599  ;;  %v2601_v33 = vrot.slane %v2598_v39, 4 }
 0xfc8   :  { %v2602_v56 = vrot.slane %v2600_v7, 4 }
 0xfc9   :  { %v5377_v23 = vmul.f32 -1.442695, %v2601_v33 }
 0xfca   :  { %v5378_v12 = vmul.f32 -1.442695, %v2602_v56 }
 0xfcb   :  { %6479 = vpow2.f32 %v5377_v23 }
 0xfcc   :  { %6481 = vpow2.f32 %v5378_v12 }
 0xfcf   :  { %v6476_v17 = vpop.eup %6475 }
 0xfd0   :  { %v6478_v45 = vpop.eup %6477  ;;  %2641 = vrot.lane.b32.xlu0 %v6476_v17, %s6966_s2 }
 0xfd1   :  { %2643 = vrot.lane.b32.xlu1 %v6478_v45, %s6966_s2 }
 0xfd5   :  { %v6480_v48 = vpop.eup %6479 }
 0xfd6   :  { %v6482_v25 = vpop.eup %6481  ;;  %v2611_v55 = vadd.f32 1.0, %v6480_v48 }
 0xfd7   :  { %v2612_v13 = vadd.f32 1.0, %v6482_v25 }
 0xfd8   :  { %6483 = vrcp.f32 %v2611_v55 }
 0xfd9   :  { %6485 = vrcp.f32 %v2612_v13 }
 0xfe2   :  { %v6484_v47 = vpop.eup %6483 }
 0xfe3   :  { %v6486_v19 = vpop.eup %6485 }
0x1037   :  { %v2428_v5 = vpop.f32.mrb[18].mxu0 }
0x1038   :  { %v2429_v44 = vadd.f32 %v2428_v5, %v7446_v42  ;;  %v2430_v38 = vpop.f32.mrb[19].mxu0 }
0x1039   :  { %v2431_v17 = vadd.f32 %v2430_v38, %v7452_v1 }
0x103a   :  { %v5372_v6 = vmul.f32 -1.442695, %v2429_v44 }
0x103b   :  { %v5373_v13 = vmul.f32 -1.442695, %v2431_v17 }
0x103c   :  { %6487 = vpow2.f32 %v5372_v6 }
0x103d   :  { %6489 = vtanh.f32 %v2431_v17 }
0x1042   :  { %v2642_v29 = vpop.permute.xlu0 %2641 }
0x1043   :  { %v2647_v26 = vmul.f32 %v6484_v47, %v2642_v29  ;;  %v2644_v24 = vpop.permute.xlu1 %2643 }
0x1044   :  { %v2648_v45 = vmul.f32 %v6486_v19, %v2644_v24 }
0x1045   :  { %v2654_v39 = vrot.slane %v2647_v26, %v7603_v20 }
0x1046   :  { %v6488_v7 = vpop.eup %6487  ;;  %v2658_v33 = vrot.slane %v2648_v45, %v7603_v20 }
0x1047   :  { %v2436_v56 = vadd.f32 1.0, %v6488_v7  ;;  %v6490_v48 = vpop.eup %6489 }
0x1048   :  { %v2659_v23 = vsel %vm1444_vm5, %v2658_v33, %v2654_v39  ;;  %v2799_v12 = vsel %vm532_vm1, %v2658_v33, %v2654_v39 }
0x1049   :  { %6491 = vrcp.f32 %v2436_v56  ;;  %5381 = vmatmul.mubr.msk.f32.vlgmr.msra.gmra.mrb[20].mxu0 %vm373_vm2, %v2799_v12 }
0x104a   :  { %5962 = vmatpush1.bf16.msra.mxu0 %v7344_v21  ;;  %3032 = vmatprep.mubr.f32.mxu0 %v8635_v57  ;;  %6493 = vpow2.f32 %v5373_v13 }
0x104b   :  { %5964 = vmatprep.subr.bf16.mxu0 %v7346_v22 }
0x104e   :  { %5966 = vmatpush1.bf16.msra.mxu0 %v7351_v30 }
0x104f   :  { %5968 = vmatprep.subr.bf16.mxu0 %v7354_v31 }
0x1052   :  { %5970 = vmatpush1.bf16.msra.mxu0 %v7357_v43 }
0x1053   :  { %v6492_v25 = vpop.eup %6491  ;;  %5972 = vmatprep.subr.bf16.mxu0 %v7360_v46 }
0x1054   :  { %v2447_v55 = vmul.f32 %v6492_v25, %v6490_v48  ;;  %v6494_v5 = vpop.eup %6493  ;;  %v2446_v38 = vmul.f32 %v6492_v25, %v7821_v49 }
0x1055   :  { %v2443_v44 = vadd.f32 1.0, %v6494_v5 }
0x1056   :  { %2449 = vrot.lane.b32.xlu0 %v2447_v55, %s6966_s2  ;;  %5974 = vmatpush1.bf16.msra.mxu0 %v7363_v53 }
0x1057   :  { %5976 = vmatprep.subr.bf16.mxu0 %v7366_v54  ;;  %6495 = vrcp.f32 %v2443_v44 }
0x105a   :  { %5978 = vmatpush1.bf16.msra.mxu0 %v7369_v59 }
0x105b   :  { %5980 = vmatprep.subr.bf16.mxu0 %v7372_v60 }
0x105e   :  { %5982 = vmatpush1.bf16.msra.mxu0 %v7375_v63 }
0x105f   :  { %5984 = vmatprep.subr.bf16.mxu0 %v7381_v11 }
0x1061   :  { %v6496_v29 = vpop.eup %6495 }
0x1062   :  { %5986 = vmatpush1.bf16.msra.mxu0 %v7383_v15 }
0x1063   :  { %5988 = vmatprep.subr.bf16.mxu0 %v7396_v36 }
0x1066   :  { %5990 = vmatpush1.bf16.msra.mxu0 %v7398_v41 }
0x1067   :  { %6040 = vmatprep.subr.bf16.mxu0 %v7217_v4 }
0x10c8   :  { %v2450_v6 = vpop.permute.xlu0 %2449 }
0x10c9   :  { %v7875_v47 = vadd.f32 %v2450_v6, %v2446_v38 }
0x10cb   :  { %6497 = vtanh.f32 %v7875_v47 }
0x10d5   :  { %v6498_v19 = vpop.eup %6497 }
0x10d6   :  { %v7878_v26 = vmul.f32 %v6498_v19, %v6496_v29  ;;  %v5386_v29 = vrot.slane %v7841_v0, 11 }
0x10d8   :  { %v2661_v24 = vrot.slane %v7878_v26, 5 }
0x10da   :  { %v2663_v45 = vsel %vm373_vm2, %v2659_v23, %v2661_v24 }
0x10db   :  { %v2665_v17 = vrot.slane %v2663_v45, 3  ;;  %v5387_v45 = vrot.slane %v7843_v10, 11 }
0x10dd   :  { %2732 = vmatmul.mubr.f32.vlgmr.msra.gmra.mrb[16].mxu1 %v2665_v17 }
0x10de   :  { %5994 = vmatpush1.bf16.msra.mxu1 %v7228_v8  ;;  %3166 = vmatprep.mubr.f32.mxu1 %v8635_v57 }
0x10df   :  { %5996 = vmatprep.subr.bf16.mxu1 %v7230_v9 }
0x10e2   :  { %5998 = vmatpush1.bf16.msra.mxu1 %v7246_v14 }
0x10e3   :  { %6000 = vmatprep.subr.bf16.mxu1 %v7252_v18 }
0x10e6   :  { %6002 = vmatpush1.bf16.msra.mxu1 %v7275_v27 }
0x10e7   :  { %6004 = vmatprep.subr.bf16.mxu1 %v7279_v28 }
0x10ea   :  { %6006 = vmatpush1.bf16.msra.mxu1 %v7290_v32 }
0x10eb   :  { %6008 = vmatprep.subr.bf16.mxu1 %v7342_v16 }
0x111c   :  { %v2868_v49 = vpop.f32.mrb[20].mxu0 }
0x111d   :  { %v2870_v39 = vpop.f32.mrb[21].mxu0 }
0x111e   :  { %v2875_v7 = vcombine.low %v2868_v49, %v2870_v39 }
0x1120   :  { %v2876_v33 = vrot.slane %v2875_v7, 1  ;;  %v2879_v56 = vadd.f32 %v2875_v7, %v7329_v50 }
0x1122   :  { %v2880_v23 = vadd.f32 %v2876_v33, %v7443_v40  ;;  %v5382_v12 = vmul.f32 -1.442695, %v2879_v56  ;;  %v2895_v25 = vrot.slane %v2879_v56, 4 }
0x1124   :  { %6499 = vpow2.f32 %v5382_v12  ;;  %v5383_v48 = vmul.f32 -1.442695, %v2880_v23  ;;  %v2896_v13 = vrot.slane %v2880_v23, 4 }
0x1126   :  { %6501 = vpow2.f32 %v5383_v48 }
0x1127   :  { %6503 = vtanh.f32 %v2895_v25 }
0x112e   :  { %v6500_v55 = vpop.eup %6499 }
0x112f   :  { %v2887_v5 = vadd.f32 1.0, %v6500_v55 }
0x1130   :  { %v6502_v44 = vpop.eup %6501 }
0x1131   :  { %v2888_v38 = vadd.f32 1.0, %v6502_v44  ;;  %6505 = vrcp.f32 %v2887_v5  ;;  %v6504_v6 = vpop.eup %6503 }
0x1132   :  { %6507 = vtanh.f32 %v2896_v13 }
0x1133   :  { %6509 = vrcp.f32 %v2888_v38 }
0x113b   :  { %v6506_v19 = vpop.eup %6505 }
0x113c   :  { %v6508_v24 = vpop.eup %6507  ;;  %v2931_v17 = vmul.f32 %v6506_v19, %v6504_v6  ;;  %v2929_v49 = vmul.f32 %v6506_v19, %v5386_v29 }
0x113d   :  { %v6510_v39 = vpop.eup %6509 }
0x113e   :  { %2935 = vrot.lane.b32.xlu1 %v2931_v17, %s6966_s2  ;;  %v2932_v7 = vmul.f32 %v6510_v39, %v6508_v24  ;;  %v2930_v33 = vmul.f32 %v6510_v39, %v5387_v45 }
0x1140   :  { %2937 = vrot.lane.b32.xlu0 %v2932_v7, %s6966_s2 }
0x1142   :  { %2901 = vrot.lane.b32.xlu1 %v2879_v56, %s6966_s2 }
0x1144   :  { %2903 = vrot.lane.b32.xlu0 %v2880_v23, %s6966_s2 }
0x11b0   :  { %v2936_v12 = vpop.permute.xlu1 %2935  ;;  %v2733_v48 = vpop.f32.mrb[16].mxu1 }
0x11b1   :  { %v7899_v0 = vadd.f32 %v2936_v12, %v2929_v49  ;;  %v2734_v25 = vadd.f32 %v2733_v48, %v7446_v42  ;;  %v2735_v10 = vpop.f32.mrb[17].mxu1 }
0x11b2   :  { %v2938_v55 = vpop.permute.xlu0 %2937  ;;  %v2736_v56 = vadd.f32 %v2735_v10, %v7452_v1 }
0x11b3   :  { %6511 = vtanh.f32 %v7899_v0  ;;  %v7903_v13 = vadd.f32 %v2938_v55, %v2930_v33  ;;  %v5379_v5 = vmul.f32 -1.442695, %v2734_v25 }
0x11b4   :  { %v2902_v45 = vpop.permute.xlu1 %2901  ;;  %v5380_v55 = vmul.f32 -1.442695, %v2736_v56 }
0x11b5   :  { %6513 = vtanh.f32 %v7903_v13  ;;  %v2905_v49 = vrot.slane %v2902_v45, 4 }
0x11b6   :  { %6515 = vpow2.f32 %v5379_v5  ;;  %v2904_v17 = vpop.permute.xlu0 %2903 }
0x11b7   :  { %6517 = vtanh.f32 %v2736_v56  ;;  %v2906_v39 = vrot.slane %v2904_v17, 4  ;;  %v5384_v7 = vmul.f32 -1.442695, %v2905_v49 }
0x11b9   :  { %v5385_v33 = vmul.f32 -1.442695, %v2906_v39 }
0x11bd   :  { %v6512_v44 = vpop.eup %6511 }
0x11be   :  { %2947 = vrot.lane.b32.xlu1 %v6512_v44, %s6966_s2 }
0x11bf   :  { %v6514_v23 = vpop.eup %6513 }
0x11c0   :  { %v6516_v38 = vpop.eup %6515  ;;  %2949 = vrot.lane.b32.xlu0 %v6514_v23, %s6966_s2 }
0x11c1   :  { %v2741_v6 = vadd.f32 1.0, %v6516_v38  ;;  %v6518_v29 = vpop.eup %6517 }
0x11c3   :  { %6519 = vrcp.f32 %v2741_v6 }
0x11c4   :  { %6521 = vpow2.f32 %v5384_v7 }
0x11c5   :  { %6523 = vpow2.f32 %v5385_v33 }
0x11cd   :  { %v6520_v19 = vpop.eup %6519 }
0x11ce   :  { %v2752_v24 = vmul.f32 %v6520_v19, %v6518_v29  ;;  %v6522_v12 = vpop.eup %6521  ;;  %v2751_v39 = vmul.f32 %v6520_v19, %v7875_v47 }
0x11cf   :  { %v6524_v48 = vpop.eup %6523  ;;  %v2915_v25 = vadd.f32 1.0, %v6522_v12 }
0x11d0   :  { %2754 = vrot.lane.b32.xlu1 %v2752_v24, %s6966_s2  ;;  %v2916_v10 = vadd.f32 1.0, %v6524_v48 }
0x11d1   :  { %6525 = vrcp.f32 %v2915_v25 }
0x11d2   :  { %6527 = vrcp.f32 %v2916_v10 }
0x11d3   :  { %6529 = vpow2.f32 %v5380_v55 }
0x11db   :  { %v6526_v5 = vpop.eup %6525 }
0x11dc   :  { %v6528_v38 = vpop.eup %6527 }
0x11dd   :  { %v6530_v56 = vpop.eup %6529 }
0x11de   :  { %v2748_v49 = vadd.f32 1.0, %v6530_v56 }
0x11e0   :  { %6531 = vrcp.f32 %v2748_v49 }
0x11ea   :  { %v6532_v47 = vpop.eup %6531 }
0x1230   :  { %v2948_v44 = vpop.permute.xlu1 %2947 }
0x1231   :  { %v2953_v23 = vmul.f32 %v6526_v5, %v2948_v44 }
0x1232   :  { %v2950_v6 = vpop.permute.xlu0 %2949 }
0x1233   :  { %v2954_v29 = vmul.f32 %v6528_v38, %v2950_v6  ;;  %v2960_v24 = vrot.slane %v2953_v23, %v7310_v35 }
0x1235   :  { %v2964_v45 = vrot.slane %v2954_v29, %v7310_v35 }
0x1237   :  { %v2965_v17 = vsel %vm532_vm1, %v2964_v45, %v2960_v24 }
0x1238   :  { %5390 = vmatmul.mubr.msk.f32.vlgmr.msra.gmra.mrb[18].mxu1 %vm373_vm2, %v2965_v17 }
0x1239   :  { %6010 = vmatpush1.bf16.msra.mxu1 %v7344_v21  ;;  %3335 = vmatprep.mubr.f32.mxu1 %v8635_v57 }
0x123a   :  { %6012 = vmatprep.subr.bf16.mxu1 %v7346_v22 }
0x123d   :  { %6014 = vmatpush1.bf16.msra.mxu1 %v7351_v30 }
0x123e   :  { %6016 = vmatprep.subr.bf16.mxu1 %v7354_v31 }
0x1241   :  { %6018 = vmatpush1.bf16.msra.mxu1 %v7357_v43 }
0x1242   :  { %v2755_v7 = vpop.permute.xlu1 %2754  ;;  %6020 = vmatprep.subr.bf16.mxu1 %v7360_v46 }
0x1243   :  { %v7922_v33 = vadd.f32 %v2755_v7, %v2751_v39 }
0x1245   :  { %6533 = vtanh.f32 %v7922_v33  ;;  %6022 = vmatpush1.bf16.msra.mxu1 %v7363_v53 }
0x1246   :  { %6024 = vmatprep.subr.bf16.mxu1 %v7366_v54 }
0x1249   :  { %6026 = vmatpush1.bf16.msra.mxu1 %v7369_v59 }
0x124a   :  { %6028 = vmatprep.subr.bf16.mxu1 %v7372_v60 }
0x124d   :  { %6030 = vmatpush1.bf16.msra.mxu1 %v7375_v63 }
0x124e   :  { %6032 = vmatprep.subr.bf16.mxu1 %v7381_v11 }
0x124f   :  { %v6534_v19 = vpop.eup %6533 }
0x1250   :  { %v7931_v12 = vmul.f32 %v6534_v19, %v6532_v47  ;;  %v3224_v19 = vrot.slane %v7903_v13, 7 }
0x1251   :  { %6034 = vmatpush1.bf16.msra.mxu1 %v7383_v15 }
0x1252   :  { %v2967_v48 = vsel %vm373_vm2, %v2965_v17, %v7931_v12  ;;  %6036 = vmatprep.subr.bf16.mxu1 %v7396_v36 }
0x1253   :  { %3033 = vmatmul.mubr.f32.vlgmr.msra.gmra.mrb[22].mxu0 %v2967_v48 }
0x1254   :  { %6042 = vmatpush1.bf16.msra.mxu0 %v7228_v8  ;;  %3470 = vmatprep.mubr.f32.mxu0 %v8635_v57 }
0x1255   :  { %6044 = vmatprep.subr.bf16.mxu0 %v7230_v9  ;;  %6038 = vmatpush1.bf16.msra.mxu1 %v7398_v41 }
0x1256   :  { %6088 = vmatprep.subr.bf16.mxu1 %v7217_v4 }
0x1258   :  { %6046 = vmatpush1.bf16.msra.mxu0 %v7246_v14 }
0x1259   :  { %6048 = vmatprep.subr.bf16.mxu0 %v7252_v18 }
0x125c   :  { %6050 = vmatpush1.bf16.msra.mxu0 %v7275_v27 }
0x125d   :  { %6052 = vmatprep.subr.bf16.mxu0 %v7279_v28 }
0x1260   :  { %6054 = vmatpush1.bf16.msra.mxu0 %v7290_v32 }
0x1261   :  { %6056 = vmatprep.subr.bf16.mxu0 %v7342_v16 }
0x130b   :  { %v3168_v25 = vpop.f32.mrb[18].mxu1 }
0x130c   :  { %v3170_v10 = vpop.f32.mrb[19].mxu1 }
0x130d   :  { %v3175_v55 = vcombine.low %v3168_v25, %v3170_v10 }
0x130f   :  { %v3176_v5 = vrot.slane %v3175_v55, 7  ;;  %v3180_v44 = vadd.f32 %v3175_v55, %v7443_v40  ;;  %v3223_v55 = vrot.slane %v7899_v0, 7 }
0x1311   :  { %v3179_v4 = vadd.f32 %v3176_v5, %v7329_v50  ;;  %v5392_v23 = vmul.f32 -1.442695, %v3180_v44  ;;  %v3196_v6 = vrot.slane %v3180_v44, 4 }
0x1313   :  { %v5391_v38 = vmul.f32 -1.442695, %v3179_v4  ;;  %6535 = vpow2.f32 %v5392_v23  ;;  %v3195_v24 = vrot.slane %v3179_v4, 4 }
0x1315   :  { %6537 = vpow2.f32 %v5391_v38 }
0x1316   :  { %6539 = vtanh.f32 %v3196_v6 }
0x131d   :  { %v6536_v29 = vpop.eup %6535 }
0x131e   :  { %v3188_v45 = vadd.f32 1.0, %v6536_v29 }
0x131f   :  { %v6538_v17 = vpop.eup %6537 }
0x1320   :  { %v3187_v56 = vadd.f32 1.0, %v6538_v17  ;;  %6541 = vrcp.f32 %v3188_v45  ;;  %v6540_v47 = vpop.eup %6539 }
0x1321   :  { %6543 = vtanh.f32 %v3195_v24 }
0x1322   :  { %6545 = vrcp.f32 %v3187_v56 }
0x1326   :  { %v3034_v49 = vpop.f32.mrb[22].mxu0 }
0x1327   :  { %v3035_v39 = vadd.f32 %v3034_v49, %v7446_v42  ;;  %v3036_v7 = vpop.f32.mrb[23].mxu0 }
0x1328   :  { %v3037_v24 = vadd.f32 %v3036_v7, %v7452_v1 }
0x1329   :  { %v5388_v48 = vmul.f32 -1.442695, %v3035_v39 }
0x132a   :  { %v6542_v25 = vpop.eup %6541 }
0x132b   :  { %v6544_v10 = vpop.eup %6543  ;;  %6547 = vpow2.f32 %v5388_v48  ;;  %v3230_v5 = vmul.f32 %v6542_v25, %v6540_v47  ;;  %v3228_v23 = vmul.f32 %v6542_v25, %v3224_v19 }
0x132c   :  { %v6546_v38 = vpop.eup %6545  ;;  %6549 = vtanh.f32 %v3037_v24 }
0x132d   :  { %3235 = vrot.lane.b32.xlu1 %v3230_v5, %s6966_s2  ;;  %v3229_v6 = vmul.f32 %v6546_v38, %v6544_v10  ;;  %v3227_v29 = vmul.f32 %v6546_v38, %v3223_v55 }
0x132f   :  { %3233 = vrot.lane.b32.xlu0 %v3229_v6, %s6966_s2 }
0x1331   :  { %3203 = vrot.lane.b32.xlu1 %v3180_v44, %s6966_s2 }
0x1333   :  { %3201 = vrot.lane.b32.xlu0 %v3179_v4, %s6966_s2 }
0x1335   :  { %v6548_v13 = vpop.eup %6547 }
0x1336   :  { %v3042_v45 = vadd.f32 1.0, %v6548_v13  ;;  %v6550_v0 = vpop.eup %6549 }
0x1338   :  { %6551 = vrcp.f32 %v3042_v45 }
0x1342   :  { %v6552_v17 = vpop.eup %6551 }
0x1343   :  { %v3053_v56 = vmul.f32 %v6552_v17, %v6550_v0 }
0x139f   :  { %v3236_v49 = vpop.permute.xlu1 %3235 }
0x13a0   :  { %v7958_v39 = vadd.f32 %v3236_v49, %v3228_v23 }
0x13a1   :  { %v3234_v47 = vpop.permute.xlu0 %3233 }
0x13a2   :  { %6553 = vtanh.f32 %v7958_v39  ;;  %v7961_v19 = vadd.f32 %v3234_v47, %v3227_v29  ;;  %v5389_v29 = vmul.f32 -1.442695, %v3037_v24 }
0x13a3   :  { %v3204_v7 = vpop.permute.xlu1 %3203 }
0x13a4   :  { %6555 = vtanh.f32 %v7961_v19  ;;  %v3206_v25 = vrot.slane %v3204_v7, 4 }
0x13a5   :  { %v3202_v48 = vpop.permute.xlu0 %3201 }
0x13a6   :  { %v3205_v10 = vrot.slane %v3202_v48, 4  ;;  %v5394_v55 = vmul.f32 -1.442695, %v3206_v25 }
0x13a8   :  { %v5393_v5 = vmul.f32 -1.442695, %v3205_v10  ;;  %6557 = vpow2.f32 %v5394_v55  ;;  %v3052_v10 = vmul.f32 %v6552_v17, %v7922_v33 }
0x13aa   :  { %6559 = vpow2.f32 %v5393_v5 }
0x13ac   :  { %v6554_v44 = vpop.eup %6553 }
0x13ad   :  { %3247 = vrot.lane.b32.xlu1 %v6554_v44, %s6966_s2 }
0x13ae   :  { %v6556_v4 = vpop.eup %6555 }
0x13af   :  { %3245 = vrot.lane.b32.xlu0 %v6556_v4, %s6966_s2 }
0x13b2   :  { %v6558_v23 = vpop.eup %6557 }
0x13b3   :  { %3055 = vrot.lane.b32.xlu0 %v3053_v56, %s6966_s2  ;;  %v3216_v6 = vadd.f32 1.0, %v6558_v23 }
0x13b4   :  { %v6560_v38 = vpop.eup %6559 }
0x13b5   :  { %v3215_v13 = vadd.f32 1.0, %v6560_v38  ;;  %6561 = vrcp.f32 %v3216_v6 }
0x13b6   :  { %6563 = vpow2.f32 %v5389_v29 }
0x13b7   :  { %6565 = vrcp.f32 %v3215_v13 }
0x13bf   :  { %v6562_v45 = vpop.eup %6561 }
0x13c0   :  { %v6564_v49 = vpop.eup %6563 }
0x13c1   :  { %v6566_v47 = vpop.eup %6565  ;;  %v3049_v7 = vadd.f32 1.0, %v6564_v49 }
0x13c3   :  { %6567 = vrcp.f32 %v3049_v7 }
0x13cd   :  { %v6568_v33 = vpop.eup %6567 }
0x141f   :  { %v3248_v0 = vpop.permute.xlu1 %3247 }
0x1420   :  { %v3252_v56 = vmul.f32 %v6562_v45, %v3248_v0 }
0x1421   :  { %v3246_v44 = vpop.permute.xlu0 %3245 }
0x1422   :  { %v3251_v4 = vmul.f32 %v6566_v47, %v3246_v44  ;;  %v3262_v48 = vrot.slane %v3252_v56, %v7313_v37 }
0x1424   :  { %v3258_v25 = vrot.slane %v3251_v4, %v7313_v37 }
0x1425   :  { %v3056_v55 = vpop.permute.xlu0 %3055 }
0x1426   :  { %v7970_v24 = vadd.f32 %v3056_v55, %v3052_v10  ;;  %v3403_v5 = vsel %vm532_vm1, %v3262_v48, %v3258_v25  ;;  %v3263_v6 = vsel %vm832_vm3, %v3262_v48, %v3258_v25 }
0x1427   :  { %5397 = vmatmul.mubr.msk.f32.vlgmr.msra.gmra.mrb[24].mxu0 %vm373_vm2, %v3403_v5 }
0x1428   :  { %6569 = vtanh.f32 %v7970_v24  ;;  %6058 = vmatpush1.bf16.msra.mxu0 %v7344_v21  ;;  %3640 = vmatprep.mubr.f32.mxu0 %v8635_v57 }
0x1429   :  { %6060 = vmatprep.subr.bf16.mxu0 %v7346_v22 }
0x142c   :  { %6062 = vmatpush1.bf16.msra.mxu0 %v7351_v30 }
0x142d   :  { %6064 = vmatprep.subr.bf16.mxu0 %v7354_v31 }
0x1430   :  { %6066 = vmatpush1.bf16.msra.mxu0 %v7357_v43 }
0x1431   :  { %6068 = vmatprep.subr.bf16.mxu0 %v7360_v46 }
0x1432   :  { %v6570_v17 = vpop.eup %6569 }
0x1433   :  { %v7982_v23 = vmul.f32 %v6570_v17, %v6568_v33  ;;  %v3528_v33 = vrot.slane %v7961_v19, 7 }
0x1434   :  { %6070 = vmatpush1.bf16.msra.mxu0 %v7363_v53 }
0x1435   :  { %v3265_v38 = vrot.slane %v7982_v23, 7  ;;  %6072 = vmatprep.subr.bf16.mxu0 %v7366_v54 }
0x1437   :  { %v3267_v29 = vsel %vm373_vm2, %v3263_v6, %v3265_v38  ;;  %v3529_v38 = vrot.slane %v7958_v39, 7 }
0x1438   :  { %v3269_v13 = vrot.slane %v3267_v29, 1  ;;  %6074 = vmatpush1.bf16.msra.mxu0 %v7369_v59 }
0x1439   :  { %6076 = vmatprep.subr.bf16.mxu0 %v7372_v60 }
0x143a   :  { %3336 = vmatmul.mubr.f32.vlgmr.msra.gmra.mrb[20].mxu1 %v3269_v13 }
0x143b   :  { %6090 = vmatpush1.bf16.msra.mxu1 %v7228_v8  ;;  %3775 = vmatprep.mubr.f32.mxu1 %v8635_v57 }
0x143c   :  { %6092 = vmatprep.subr.bf16.mxu1 %v7230_v9  ;;  %6078 = vmatpush1.bf16.msra.mxu0 %v7375_v63 }
0x143d   :  { %6080 = vmatprep.subr.bf16.mxu0 %v7381_v11 }
0x143f   :  { %6094 = vmatpush1.bf16.msra.mxu1 %v7246_v14 }
0x1440   :  { %6096 = vmatprep.subr.bf16.mxu1 %v7252_v18  ;;  %6082 = vmatpush1.bf16.msra.mxu0 %v7383_v15 }
0x1441   :  { %6084 = vmatprep.subr.bf16.mxu0 %v7396_v36 }
0x1443   :  { %6098 = vmatpush1.bf16.msra.mxu1 %v7275_v27 }
0x1444   :  { %6100 = vmatprep.subr.bf16.mxu1 %v7279_v28  ;;  %6086 = vmatpush1.bf16.msra.mxu0 %v7398_v41 }
0x1447   :  { %6102 = vmatpush1.bf16.msra.mxu1 %v7290_v32 }
0x1448   :  { %6104 = vmatprep.subr.bf16.mxu1 %v7342_v16 }
0x14fa   :  { %v3472_v8 = vpop.f32.mrb[24].mxu0 }
0x14fb   :  { %v3474_v9 = vpop.f32.mrb[25].mxu0 }
0x14fc   :  { %v3479_v45 = vcombine.low %v3472_v8, %v3474_v9 }
0x14fe   :  { %v3480_v14 = vrot.slane %v3479_v45, 6  ;;  %v3481_v0 = vrot.slane %v3479_v45, 7 }
0x1500   :  { %v3484_v18 = vadd.f32 %v3480_v14, %v7329_v50  ;;  %v3485_v49 = vadd.f32 %v3481_v0, %v7443_v40 }
0x1502   :  { %v5398_v56 = vmul.f32 -1.442695, %v3484_v18  ;;  %v5399_v47 = vmul.f32 -1.442695, %v3485_v49  ;;  %v3500_v27 = vrot.slane %v3484_v18, 4  ;;  %v3501_v28 = vrot.slane %v3485_v49, 4 }
0x1504   :  { %6571 = vpow2.f32 %v5398_v56 }
0x1505   :  { %6573 = vpow2.f32 %v5399_v47 }
0x1506   :  { %6575 = vtanh.f32 %v3500_v27 }
0x1507   :  { %6577 = vtanh.f32 %v3501_v28 }
0x150d   :  { %v3337_v44 = vpop.f32.mrb[20].mxu1 }
0x150e   :  { %v6572_v4 = vpop.eup %6571  ;;  %v3338_v32 = vadd.f32 %v3337_v44, %v7446_v42  ;;  %v3339_v16 = vpop.f32.mrb[21].mxu1 }
0x150f   :  { %v6574_v7 = vpop.eup %6573  ;;  %v3492_v48 = vadd.f32 1.0, %v6572_v4  ;;  %v3340_v6 = vadd.f32 %v3339_v16, %v7452_v1 }
0x1510   :  { %v3493_v25 = vadd.f32 1.0, %v6574_v7  ;;  %v5395_v10 = vmul.f32 -1.442695, %v3338_v32  ;;  %v6576_v55 = vpop.eup %6575 }
0x1511   :  { %6579 = vrcp.f32 %v3492_v48  ;;  %v6578_v5 = vpop.eup %6577 }
0x1512   :  { %6581 = vrcp.f32 %v3493_v25 }
0x1513   :  { %6583 = vpow2.f32 %v5395_v10 }
0x1514   :  { %6585 = vtanh.f32 %v3340_v6 }
0x151b   :  { %v6580_v17 = vpop.eup %6579 }
0x151c   :  { %v6582_v29 = vpop.eup %6581  ;;  %v3534_v13 = vmul.f32 %v6580_v17, %v6576_v55  ;;  %v3532_v8 = vmul.f32 %v6580_v17, %v3528_v33 }
0x151d   :  { %v6584_v9 = vpop.eup %6583  ;;  %v3535_v45 = vmul.f32 %v6582_v29, %v6578_v5  ;;  %v3533_v14 = vmul.f32 %v6582_v29, %v3529_v38  ;;  %v5396_v5 = vmul.f32 -1.442695, %v3340_v6 }
0x151e   :  { %v3345_v0 = vadd.f32 1.0, %v6584_v9  ;;  %3538 = vrot.lane.b32.xlu1 %v3534_v13, %s6966_s2  ;;  %v6586_v39 = vpop.eup %6585 }
0x151f   :  { %3540 = vrot.lane.b32.xlu0 %v3535_v45, %s6966_s2 }
0x1520   :  { %6587 = vrcp.f32 %v3345_v0 }
0x1522   :  { %3506 = vrot.lane.b32.xlu1 %v3484_v18, %s6966_s2 }
0x1523   :  { %3508 = vrot.lane.b32.xlu0 %v3485_v49, %s6966_s2 }
0x152a   :  { %v6588_v19 = vpop.eup %6587 }
0x152b   :  { %v3356_v56 = vmul.f32 %v6588_v19, %v6586_v39 }
0x1590   :  { %v3539_v47 = vpop.permute.xlu1 %3538 }
0x1591   :  { %v8015_v27 = vadd.f32 %v3539_v47, %v3532_v8  ;;  %v3541_v28 = vpop.permute.xlu0 %3540 }
0x1592   :  { %v8017_v44 = vadd.f32 %v3541_v28, %v3533_v14 }
0x1593   :  { %6589 = vtanh.f32 %v8015_v27 }
0x1594   :  { %6591 = vtanh.f32 %v8017_v44  ;;  %v3507_v18 = vpop.permute.xlu1 %3506 }
0x1595   :  { %v3509_v49 = vpop.permute.xlu0 %3508  ;;  %v3510_v16 = vrot.slane %v3507_v18, 4 }
0x1596   :  { %v3511_v7 = vrot.slane %v3509_v49, 4 }
0x1597   :  { %v5400_v48 = vmul.f32 -1.442695, %v3510_v16 }
0x1598   :  { %v5401_v25 = vmul.f32 -1.442695, %v3511_v7 }
0x1599   :  { %6593 = vpow2.f32 %v5400_v48 }
0x159a   :  { %6595 = vpow2.f32 %v5401_v25 }
0x159b   :  { %6597 = vpow2.f32 %v5396_v5 }
0x159d   :  { %v6590_v4 = vpop.eup %6589 }
0x159e   :  { %v6592_v32 = vpop.eup %6591  ;;  %3550 = vrot.lane.b32.xlu1 %v6590_v4, %s6966_s2 }
0x159f   :  { %3552 = vrot.lane.b32.xlu0 %v6592_v32, %s6966_s2 }
0x15a2   :  { %3358 = vrot.lane.b32.xlu1 %v3356_v56, %s6966_s2  ;;  %v3355_v56 = vmul.f32 %v6588_v19, %v7970_v24 }
0x15a3   :  { %v6594_v10 = vpop.eup %6593 }
0x15a4   :  { %v6596_v55 = vpop.eup %6595  ;;  %v3520_v33 = vadd.f32 1.0, %v6594_v10 }
0x15a5   :  { %v3521_v17 = vadd.f32 1.0, %v6596_v55  ;;  %v6598_v38 = vpop.eup %6597  ;;  %v3833_v55 = vrot.slane %v8015_v27, 7 }
0x15a6   :  { %6599 = vrcp.f32 %v3520_v33  ;;  %v3352_v14 = vadd.f32 1.0, %v6598_v38  ;;  %v3834_v33 = vrot.slane %v8017_v44, 7 }
0x15a7   :  { %6601 = vrcp.f32 %v3521_v17 }
0x15a8   :  { %6603 = vrcp.f32 %v3352_v14 }
0x15b0   :  { %v6600_v29 = vpop.eup %6599 }
0x15b1   :  { %v6602_v8 = vpop.eup %6601 }
0x1610   :  { %v3551_v13 = vpop.permute.xlu1 %3550 }
0x1611   :  { %v3556_v9 = vmul.f32 %v6600_v29, %v3551_v13  ;;  %v3553_v45 = vpop.permute.xlu0 %3552 }
0x1612   :  { %v3557_v0 = vmul.f32 %v6602_v8, %v3553_v45 }
0x1613   :  { %v3563_v39 = vrot.slane %v3556_v9, %v7539_v3 }
0x1614   :  { %v3567_v47 = vrot.slane %v3557_v0, %v7539_v3  ;;  %v3359_v6 = vpop.permute.xlu1 %3358  ;;  %v6604_v3 = vpop.eup %6603 }
0x1615   :  { %v8027_v28 = vadd.f32 %v3359_v6, %v3355_v56 }
0x1616   :  { %v3708_v4 = vsel %vm532_vm1, %v3567_v47, %v3563_v39 }
0x1617   :  { %6605 = vtanh.f32 %v8027_v28  ;;  %5404 = vmatmul.mubr.msk.f32.vlgmr.msra.gmra.mrb[22].mxu1 %vm373_vm2, %v3708_v4 }
0x1618   :  { %6106 = vmatpush1.bf16.msra.mxu1 %v7344_v21  ;;  %3945 = vmatprep.mubr.f32.mxu1 %v8635_v57  ;;  %v3568_v21 = vsel %vm1138_vm4, %v3567_v47, %v3563_v39  ;;  %v6967_v39 = vmov 1966171168  }
0x1619   :  { %6108 = vmatprep.subr.bf16.mxu1 %v7346_v22  ;;  %v631_v56 = vunpack.c.l.s4 %v6967_v39 }
0x161b   :  { %v632_v6 = vunpack.c.0.s8 %v631_v56 }
0x161c   :  { %6110 = vmatpush1.bf16.msra.mxu1 %v7351_v30 }
0x161d   :  { %6112 = vmatprep.subr.bf16.mxu1 %v7354_v31 }
0x1620   :  { %6114 = vmatpush1.bf16.msra.mxu1 %v7357_v43 }
0x1621   :  { %v6606_v24 = vpop.eup %6605  ;;  %6116 = vmatprep.subr.bf16.mxu1 %v7360_v46 }
0x1622   :  { %v8039_v19 = vmul.f32 %v6606_v24, %v6604_v3 }
0x1624   :  { %v3570_v32 = vrot.slane %v8039_v19, 6  ;;  %6118 = vmatpush1.bf16.msra.mxu1 %v7363_v53 }
0x1625   :  { %6120 = vmatprep.subr.bf16.mxu1 %v7366_v54 }
0x1626   :  { %v3572_v22 = vsel %vm373_vm2, %v3568_v21, %v3570_v32  ;;  %v8065_v32 = vsub.s32 %v632_v6, %v7307_v34 }
0x1627   :  { %v3574_v30 = vrot.slane %v3572_v22, 2 }
0x1628   :  { %6122 = vmatpush1.bf16.msra.mxu1 %v7369_v59  ;;  %v636_v22 = vrot.slane %v7524_v52, %v8065_v32  ;;  %v1854_v52 = vrot.slane %v7774_v51, %v8065_v32 }
0x1629   :  { %3641 = vmatmul.mubr.f32.vlgmr.msra.gmra.mrb[26].mxu0 %v3574_v30  ;;  %6124 = vmatprep.subr.bf16.mxu1 %v7372_v60 }
0x162a   :  { %5482 = vmatprep.mubr.msk.f32.mxu0 %vm6969_vm7, %v8635_v57 }
0x162c   :  { %6126 = vmatpush1.bf16.msra.mxu1 %v7375_v63 }
0x162d   :  { %6128 = vmatprep.subr.bf16.mxu1 %v7381_v11 }
0x1630   :  { %6130 = vmatpush1.bf16.msra.mxu1 %v7383_v15 }
0x1631   :  { %6132 = vmatprep.subr.bf16.mxu1 %v7396_v36 }
0x1634   :  { %6134 = vmatpush1.bf16.msra.mxu1 %v7398_v41 }
0x16ea   :  { %v3777_v31 = vpop.f32.mrb[22].mxu1 }
0x16eb   :  { %v3779_v43 = vpop.f32.mrb[23].mxu1 }
0x16ec   :  { %v3784_v46 = vcombine.low %v3777_v31, %v3779_v43  ;;  %v644_v31 = vrot.slane %v636_v22, %v8065_v32  ;;  %v1247_v43 = vrot.slane %v7652_v58, %v8065_v32  ;;  %v1862_v58 = vrot.slane %v1854_v52, %v8065_v32 }
0x16ee   :  { %v3785_v53 = vrot.slane %v3784_v46, 5  ;;  %v3786_v54 = vrot.slane %v3784_v46, 6 }
0x16f0   :  { %v3789_v59 = vadd.f32 %v3785_v53, %v7329_v50  ;;  %v3790_v18 = vadd.f32 %v3786_v54, %v7443_v40  ;;  %v655_v54 = vrot.slane %v644_v31, %v7310_v35 }
0x16f2   :  { %v5405_v60 = vmul.f32 -1.442695, %v3789_v59  ;;  %v5406_v49 = vmul.f32 -1.442695, %v3790_v18  ;;  %v3805_v63 = vrot.slane %v3789_v59, 4  ;;  %v3806_v11 = vrot.slane %v3790_v18, 4 }
0x16f4   :  { %6607 = vpow2.f32 %v5405_v60 }
0x16f5   :  { %6609 = vpow2.f32 %v5406_v49  ;;  %v2462_v49 = vrot.slane %v7878_v26, %v8065_v32 }
0x16f6   :  { %6611 = vtanh.f32 %v3805_v63 }
0x16f7   :  { %6613 = vtanh.f32 %v3806_v11  ;;  %v2470_v51 = vrot.slane %v2462_v49, %v8065_v32 }
0x16fc   :  { %v3642_v15 = vpop.f32.mrb[26].mxu0 }
0x16fd   :  { %v3643_v36 = vadd.f32 %v3642_v15, %v7446_v42  ;;  %v3644_v16 = vpop.f32.mrb[27].mxu0 }
0x16fe   :  { %v6608_v41 = vpop.eup %6607  ;;  %v3645_v17 = vadd.f32 %v3644_v16, %v7452_v1  ;;  %v637_v16 = vcombine.high %v636_v22, %v636_v22 }
0x16ff   :  { %v6610_v7 = vpop.eup %6609  ;;  %v3797_v48 = vadd.f32 1.0, %v6608_v41  ;;  %v5402_v25 = vmul.f32 -1.442695, %v3643_v36  ;;  %v1873_v36 = vrot.slane %v1862_v58, %v7310_v35 }
0x1700   :  { %v3798_v10 = vadd.f32 1.0, %v6610_v7  ;;  %v6612_v50 = vpop.eup %6611  ;;  %v5403_v21 = vmul.f32 -1.442695, %v3645_v17  ;;  %v2481_v7 = vrot.slane %v2470_v51, %v7310_v35  ;;  %v651_v26 = vrot.slane %v637_v16, %v8065_v32 }
0x1701   :  { %6615 = vrcp.f32 %v3797_v48  ;;  %v6614_v40 = vpop.eup %6613 }
0x1702   :  { %6617 = vrcp.f32 %v3798_v10  ;;  %v659_v48 = vrot.slane %v651_v26, %v7310_v35  ;;  %v1855_v10 = vcombine.high %v1854_v52, %v1854_v52 }
0x1703   :  { %6619 = vpow2.f32 %v5402_v25 }
0x1704   :  { %6621 = vtanh.f32 %v3645_v17 }
0x170b   :  { %v6616_v5 = vpop.eup %6615 }
0x170c   :  { %v6618_v38 = vpop.eup %6617  ;;  %v3839_v29 = vmul.f32 %v6616_v5, %v6612_v50  ;;  %v3837_v13 = vmul.f32 %v6616_v5, %v3833_v55  ;;  %v2463_v50 = vcombine.high %v2462_v49, %v2462_v49  ;;  %v1869_v55 = vrot.slane %v1855_v10, %v8065_v32 }
0x170d   :  { %v6620_v8 = vpop.eup %6619  ;;  %v3840_v9 = vmul.f32 %v6618_v38, %v6614_v40  ;;  %v3838_v45 = vmul.f32 %v6618_v38, %v3834_v33 }
0x170e   :  { %v3650_v14 = vadd.f32 1.0, %v6620_v8  ;;  %3843 = vrot.lane.b32.xlu0 %v3839_v29, %s6966_s2  ;;  %v6622_v27 = vpop.eup %6621  ;;  %v1877_v17 = vrot.slane %v1869_v55, %v7310_v35  ;;  %v2477_v38 = vrot.slane %v2463_v50, %v8065_v32  ;;  %v3068_v29 = vrot.slane %v7982_v23, %v8065_v32 }
0x170f   :  { %3845 = vrot.lane.b32.xlu1 %v3840_v9, %s6966_s2 }
0x1710   :  { %6623 = vrcp.f32 %v3650_v14  ;;  %v2485_v8 = vrot.slane %v2477_v38, %v7310_v35  ;;  %v3076_v9 = vrot.slane %v3068_v29, %v8065_v32 }
0x1712   :  { %3811 = vrot.lane.b32.xlu0 %v3789_v59, %s6966_s2  ;;  %v1255_v59 = vrot.slane %v1247_v43, %v8065_v32  ;;  %v3087_v14 = vrot.slane %v3076_v9, %v7310_v35  ;;  %v941_v9 = vrot.slane %v7588_v61, %v8065_v32 }
0x1713   :  { %3813 = vrot.lane.b32.xlu1 %v3790_v18, %s6966_s2 }
0x1714   :  { %v1266_v60 = vrot.slane %v1255_v59, %v7310_v35 }
0x171a   :  { %v6624_v44 = vpop.eup %6623 }
0x171b   :  { %v3661_v0 = vmul.f32 %v6624_v44, %v6622_v27  ;;  %v3660_v63 = vmul.f32 %v6624_v44, %v8027_v28  ;;  %v1248_v28 = vcombine.high %v1247_v43, %v1247_v43  ;;  %v3069_v44 = vcombine.high %v3068_v29, %v3068_v29 }
0x171d   :  { %3663 = vrot.lane.b32.xlu0 %v3661_v0, %s6966_s2  ;;  %v1262_v25 = vrot.slane %v1248_v28, %v8065_v32  ;;  %v3083_v0 = vrot.slane %v3069_v44, %v8065_v32  ;;  %v1553_v44 = vrot.slane %v7713_v62, %v8065_v32  ;;  %v4025_v62 = vld [vmem:[#allocation12 + $0x10] sm:$0xff] }
0x171f   :  { %v1270_v40 = vrot.slane %v1262_v25, %v7310_v35  ;;  %v3091_v56 = vrot.slane %v3083_v0, %v7310_v35  ;;  %v6968_v0 = vmov 0.0|0.0  }
0x1720   :  { %6135 = vmatprep.subr.bf16.mxu0 %v6968_v0  ;;  %6159 = vmatprep.subr.bf16.mxu1 %v6968_v0 }
0x1780   :  { %v3844_v47 = vpop.permute.xlu0 %3843 }
0x1781   :  { %v3849_v4 = vadd.f32 %v3844_v47, %v3837_v13  ;;  %v3846_v3 = vpop.permute.xlu1 %3845 }
0x1782   :  { %v3850_v24 = vadd.f32 %v3846_v3, %v3838_v45 }
0x1783   :  { %6625 = vtanh.f32 %v3849_v4 }
0x1784   :  { %6627 = vtanh.f32 %v3850_v24  ;;  %v3812_v53 = vpop.permute.xlu0 %3811 }
0x1785   :  { %6629 = vpow2.f32 %v5403_v21  ;;  %v3814_v4 = vpop.permute.xlu1 %3813  ;;  %v3815_v3 = vrot.slane %v3812_v53, 4 }
0x1786   :  { %v3816_v24 = vrot.slane %v3814_v4, 4 }
0x1787   :  { %v5407_v21 = vmul.f32 -1.442695, %v3815_v3 }
0x1788   :  { %v5408_v22 = vmul.f32 -1.442695, %v3816_v24 }
0x178d   :  { %v6626_v30 = vpop.eup %6625 }
0x178e   :  { %v6628_v46 = vpop.eup %6627  ;;  %3855 = vrot.lane.b32.xlu1 %v6626_v30, %s6966_s2 }
0x178f   :  { %3857 = vrot.lane.b32.xlu0 %v6628_v46, %s6966_s2  ;;  %v3664_v18 = vpop.permute.xlu0 %3663  ;;  %v6630_v11 = vpop.eup %6629 }
0x1790   :  { %v8085_v15 = vadd.f32 %v3664_v18, %v3660_v63  ;;  %v3657_v41 = vadd.f32 1.0, %v6630_v11 }
0x1792   :  { %6631 = vtanh.f32 %v8085_v15 }
0x1793   :  { %660 = vrot.lane.b32.xlu0 %v655_v54, %s6966_s2  ;;  %6633 = vrcp.f32 %v3657_v41 }
0x1794   :  { %6635 = vpow2.f32 %v5407_v21  ;;  %v2767_v21 = vrot.slane %v7931_v12, %v8065_v32 }
0x1795   :  { %6637 = vpow2.f32 %v5408_v22  ;;  %v4027_v22 = vld [vmem:[#allocation12 + $0x20] sm:$0xff] }
0x1797   :  { %1271 = vrot.lane.b32.xlu0 %v1266_v60, %s6966_s2 }
0x179b   :  { %1878 = vrot.lane.b32.xlu0 %v1873_v36, %s6966_s2 }
0x179c   :  { %v6632_v5 = vpop.eup %6631 }
0x179d   :  { %v6634_v33 = vpop.eup %6633 }
0x179e   :  { %v3668_v13 = vmul.f32 %v6634_v33, %v6632_v5  ;;  %v6636_v30 = vpop.eup %6635 }
0x179f   :  { %2486 = vrot.lane.b32.xlu0 %v2481_v7, %s6966_s2  ;;  %v6638_v31 = vpop.eup %6637  ;;  %v3825_v43 = vadd.f32 1.0, %v6636_v30 }
0x17a0   :  { %v3676_v45 = vrot.slane %v3668_v13, %v8065_v32  ;;  %v3826_v46 = vadd.f32 1.0, %v6638_v31  ;;  %v3875_v11 = vrot.slane %v3668_v13, 5 }
0x17a1   :  { %6639 = vrcp.f32 %v3825_v43  ;;  %v2775_v43 = vrot.slane %v2767_v21, %v8065_v32 }
0x17a2   :  { %v3684_v27 = vrot.slane %v3676_v45, %v8065_v32  ;;  %v3677_v39 = vcombine.high %v3676_v45, %v3676_v45  ;;  %6641 = vrcp.f32 %v3826_v46  ;;  %v942_v46 = vcombine.high %v941_v9, %v941_v9 }
0x17a3   :  { %662 = vrot.lane.b32.xlu0 %v659_v48, %s6966_s2 }
0x17a4   :  { %v3695_v23 = vrot.slane %v3684_v27, %v7310_v35  ;;  %v3691_v47 = vrot.slane %v3677_v39, %v8065_v32 }
0x17a6   :  { %v3699_v6 = vrot.slane %v3691_v47, %v7310_v35  ;;  %v2157_v47 = vrot.slane %v7827_v2, %v8065_v32  ;;  %v4028_v2 = vld [vmem:[#allocation12 + $0x28] sm:$0xff] }
0x17a7   :  { %1273 = vrot.lane.b32.xlu0 %v1270_v40, %s6966_s2  ;;  %v6142_v30 = vpack.c.bf16 %v4028_v2, %v4027_v22  ;;  %v4138_v22 = vld [vmem:[#allocation11 + $0x20] sm:$0xff]  ;;  %v4139_v2 = vld [vmem:[#allocation11 + $0x28] sm:$0xff] }
0x17a8   :  { %v2165_v24 = vrot.slane %v2157_v47, %v8065_v32 }
0x17aa   :  { %v2176_v31 = vrot.slane %v2165_v24, %v7310_v35 }
0x17ab   :  { %1880 = vrot.lane.b32.xlu0 %v1877_v17, %s6966_s2  ;;  %v6640_v54 = vpop.eup %6639 }
0x17ac   :  { %v6642_v52 = vpop.eup %6641 }
0x17af   :  { %2488 = vrot.lane.b32.xlu0 %v2485_v8, %s6966_s2 }
0x17b3   :  { %3092 = vrot.lane.b32.xlu0 %v3087_v14, %s6966_s2 }
0x17b7   :  { %3700 = vrot.lane.b32.xlu0 %v3695_v23, %s6966_s2  ;;  %v4024_v23 = vld [vmem:[#allocation12 + $0x8] sm:$0xff] }
0x17bb   :  { %3094 = vrot.lane.b32.xlu0 %v3091_v56, %s6966_s2  ;;  %v1561_v56 = vrot.slane %v1553_v44, %v8065_v32 }
0x17bd   :  { %v1572_v3 = vrot.slane %v1561_v56, %v7310_v35 }
0x17bf   :  { %3702 = vrot.lane.b32.xlu0 %v3699_v6, %s6966_s2  ;;  %v4026_v6 = vld [vmem:[#allocation12 + $0x18] sm:$0xff] }
0x17c0   :  { %v6139_v4 = vpack.c.bf16 %v4026_v6, %v4025_v62 }
0x1800   :  { %v3856_v59 = vpop.permute.xlu1 %3855 }
0x1801   :  { %v3861_v18 = vmul.f32 %v6640_v54, %v3856_v59  ;;  %v3858_v60 = vpop.permute.xlu0 %3857  ;;  %v4029_v54 = vld [vmem:[#allocation12 + $0x30] sm:$0xff]  ;;  %v4030_v59 = vld [vmem:[#allocation12 + $0x38] sm:$0xff] }
0x1802   :  { %v3862_v58 = vmul.f32 %v6642_v52, %v3858_v60  ;;  %v6145_v12 = vpack.c.bf16 %v4030_v59, %v4029_v54  ;;  %v2786_v52 = vrot.slane %v2775_v43, %v7310_v35  ;;  %v1554_v60 = vcombine.high %v1553_v44, %v1553_v44  ;;  %v4140_v43 = vld [vmem:[#allocation11 + $0x30] sm:$0xff] }
0x1803   :  { %v3868_v49 = vrot.slane %v3861_v18, %v7603_v20  ;;  %v956_v18 = vrot.slane %v942_v46, %v8065_v32  ;;  %v4141_v46 = vld [vmem:[#allocation11 + $0x38] sm:$0xff] }
0x1804   :  { %v3872_v53 = vrot.slane %v3862_v58, %v7603_v20  ;;  %v6157_v59 = vpack.c.bf16 %v4141_v46, %v4140_v43 }
0x1805   :  { %v661_v63 = vpop.permute.xlu0 %660  ;;  %v964_v58 = vrot.slane %v956_v18, %v7310_v35 }
0x1806   :  { %v3873_v36 = vsel %vm1444_vm5, %v3872_v53, %v3868_v49  ;;  %667 = vst.msk [vmem:[#allocation2] sm:$0x1] %vm666_vm6, %v661_v63  ;;  %v1568_v49 = vrot.slane %v1554_v60, %v8065_v32  ;;  %v2158_v53 = vcombine.high %v2157_v47, %v2157_v47  ;;  %v2768_v63 = vcombine.high %v2767_v21, %v2767_v21 }
0x1807   :  { %v3877_v51 = vsel %vm373_vm2, %v3873_v36, %v3875_v11 }
0x1808   :  { %v3879_v16 = vrot.slane %v3877_v51, 3  ;;  %v1576_v11 = vrot.slane %v1568_v49, %v7310_v35  ;;  %v2172_v36 = vrot.slane %v2158_v53, %v8065_v32 }
0x1809   :  { %v1272_v41 = vpop.permute.xlu0 %1271 }
0x180a   :  { %1277 = vst.msk [vmem:[#allocation2 + $0x2] sm:$0x1] %vm666_vm6, %v1272_v41  ;;  %3946 = vmatmul.mubr.f32.vlgmr.msra.gmra.mrb[24].mxu1 %v3879_v16  ;;  %v2180_v51 = vrot.slane %v2172_v36, %v7310_v35  ;;  %v2782_v16 = vrot.slane %v2768_v63, %v8065_v32  ;;  %v3371_v41 = vrot.slane %v8039_v19, %v8065_v32 }
0x180b   :  { %5526 = vmatprep.mubr.msk.f32.mxu1 %vm6969_vm7, %v8635_v57 }
0x180d   :  { %v1879_v7 = vpop.permute.xlu0 %1878 }
0x180e   :  { %1884 = vst.msk [vmem:[#allocation2 + $0x4] sm:$0x1] %vm666_vm6, %v1879_v7  ;;  %v2790_v7 = vrot.slane %v2782_v16, %v7310_v35 }
0x1811   :  { %v2487_v26 = vpop.permute.xlu0 %2486 }
0x1812   :  { %2492 = vst.msk [vmem:[#allocation2 + $0x6] sm:$0x1] %vm666_vm6, %v2487_v26  ;;  %v3379_v26 = vrot.slane %v3371_v41, %v8065_v32 }
0x1815   :  { %v663_v20 = vpop.permute.xlu0 %662 }
0x1816   :  { %668 = vst.msk [vmem:[#allocation2 + $0x10] sm:$0x1] %vm666_vm6, %v663_v20  ;;  %v3372_v20 = vcombine.high %v3371_v41, %v3371_v41 }
0x1819   :  { %v1274_v28 = vpop.permute.xlu0 %1273 }
0x181a   :  { %1278 = vst.msk [vmem:[#allocation2 + $0x12] sm:$0x1] %vm666_vm6, %v1274_v28  ;;  %v3390_v28 = vrot.slane %v3379_v26, %v7310_v35  ;;  %v5411_v26 = vld [vmem:[#allocation14] ss:$0 sm:$0xff] }
0x181d   :  { %v1881_v48 = vpop.permute.xlu0 %1880 }
0x181e   :  { %1885 = vst.msk [vmem:[#allocation2 + $0x14] sm:$0x1] %vm666_vm6, %v1881_v48  ;;  %v3386_v48 = vrot.slane %v3372_v20, %v8065_v32 }
0x1821   :  { %v2489_v25 = vpop.permute.xlu0 %2488 }
0x1822   :  { %2493 = vst.msk [vmem:[#allocation2 + $0x16] sm:$0x1] %vm666_vm6, %v2489_v25  ;;  %v3394_v25 = vrot.slane %v3386_v48, %v7310_v35  ;;  %v5415_v48 = vld [vmem:[%s8619_s7] ss:$0 sm:$0xff]  ;;  %s6970_s7 = smov 112  }
0x1825   :  { %v3093_v10 = vpop.permute.xlu0 %3092 }
0x1826   :  { %3098 = vst.msk [vmem:[#allocation2 + $0x8] sm:$0x1] %vm666_vm6, %v3093_v10 }
0x1829   :  { %v3701_v50 = vpop.permute.xlu0 %3700 }
0x182a   :  { %3706 = vst.msk [vmem:[#allocation2 + $0xa] sm:$0x1] %vm666_vm6, %v3701_v50 }
0x182d   :  { %v3095_v40 = vpop.permute.xlu0 %3094 }
0x182e   :  { %3099 = vst.msk [vmem:[#allocation2 + $0x18] sm:$0x1] %vm666_vm6, %v3095_v40 }
0x1831   :  { %v3703_v55 = vpop.permute.xlu0 %3702 }
0x1832   :  { %3707 = vst.msk [vmem:[#allocation2 + $0x1a] sm:$0x1] %vm666_vm6, %v3703_v55 }
0x18dd   :  { %v3947_v5 = vpop.f32.mrb[24].mxu1 }
0x18de   :  { %v3948_v33 = vadd.f32 %v3947_v5, %v7446_v42  ;;  %v3949_v17 = vpop.f32.mrb[25].mxu1  ;;  %v949_v42 = vrot.slane %v941_v9, %v8065_v32 }
0x18df   :  { %v8138_v29 = vadd.f32 %v3949_v17, %v7452_v1  ;;  %v4023_v1 = vld [vmem:[#allocation12] sm:$0xff] }
0x18e0   :  { %v5409_v38 = vmul.f32 -1.442695, %v3948_v33  ;;  %v6136_v39 = vpack.c.bf16 %v4024_v23, %v4023_v1  ;;  %v960_v61 = vrot.slane %v949_v42, %v7310_v35  ;;  %v4134_v1 = vld [vmem:[#allocation11] sm:$0xff]  ;;  %v4135_v23 = vld [vmem:[#allocation11 + $0x8] sm:$0xff] }
0x18e1   :  { %v5410_v19 = vmul.f32 -1.442695, %v8138_v29  ;;  %v6148_v62 = vpack.c.bf16 %v4135_v23, %v4134_v1 }
0x18e2   :  { %6643 = vpow2.f32 %v5409_v38  ;;  %6137 = vmatpush3.bf16.msra.mxu0 %v6136_v39 }
0x18e3   :  { %6645 = vtanh.f32 %v8138_v29  ;;  %6138 = vmatprep.subr.bf16.mxu0 %v6968_v0 }
0x18e6   :  { %6140 = vmatpush3.bf16.msra.mxu0 %v6139_v4  ;;  %v4136_v4 = vld [vmem:[#allocation11 + $0x10] sm:$0xff] }
0x18e7   :  { %6141 = vmatprep.subr.bf16.mxu0 %v6968_v0 }
0x18ea   :  { %6143 = vmatpush3.bf16.msra.mxu0 %v6142_v30 }
0x18eb   :  { %6144 = vmatprep.subr.bf16.mxu0 %v6968_v0 }
0x18ec   :  { %v6644_v13 = vpop.eup %6643 }
0x18ed   :  { %v3955_v8 = vadd.f32 1.0, %v6644_v13  ;;  %v6646_v45 = vpop.eup %6645 }
0x18ee   :  { %6146 = vmatpush3.bf16.msra.mxu0 %v6145_v12 }
0x18ef   :  { %6647 = vrcp.f32 %v3955_v8  ;;  %6147 = vmatprep.subr.bf16.mxu0 %v6968_v0 }
0x18f0   :  { %6649 = vpow2.f32 %v5410_v19 }
0x18f9   :  { %v8143_v14 = vpop.eup %6647 }
0x18fa   :  { %v3966_v27 = vmul.f32 %v8143_v14, %v6646_v45  ;;  %v6650_v10 = vpop.eup %6649  ;;  %v3965_v40 = vmul.f32 %v8143_v14, %v8085_v15 }
0x18fb   :  { %v3962_v50 = vadd.f32 1.0, %v6650_v10 }
0x18fc   :  { %3968 = vrot.lane.b32.xlu1 %v3966_v27, %s6966_s2 }
0x18fd   :  { %6651 = vrcp.f32 %v3962_v50 }
0x1900   :  { %965 = vrot.lane.b32.xlu1 %v960_v61, %s6966_s2 }
0x1904   :  { %1577 = vrot.lane.b32.xlu1 %v1572_v3, %s6966_s2  ;;  %v4137_v3 = vld [vmem:[#allocation11 + $0x18] sm:$0xff] }
0x1905   :  { %v6151_v21 = vpack.c.bf16 %v4137_v3, %v4136_v4 }
0x1907   :  { %v6652_v38 = vpop.eup %6651 }
0x1908   :  { %2181 = vrot.lane.b32.xlu1 %v2176_v31, %s6966_s2  ;;  %v6154_v31 = vpack.c.bf16 %v4139_v2, %v4138_v22 }
0x190c   :  { %2791 = vrot.lane.b32.xlu1 %v2786_v52, %s6966_s2 }
0x1910   :  { %967 = vrot.lane.b32.xlu1 %v964_v58, %s6966_s2 }
0x1914   :  { %1579 = vrot.lane.b32.xlu1 %v1576_v11, %s6966_s2 }
0x1918   :  { %2183 = vrot.lane.b32.xlu1 %v2180_v51, %s6966_s2 }
0x191c   :  { %2793 = vrot.lane.b32.xlu1 %v2790_v7, %s6966_s2 }
0x1920   :  { %3395 = vrot.lane.b32.xlu1 %v3390_v28, %s6966_s2 }
0x1924   :  { %3397 = vrot.lane.b32.xlu1 %v3394_v25, %s6966_s2 }
0x196e   :  { %v3969_v55 = vpop.permute.xlu1 %3968 }
0x196f   :  { %v3971_v5 = vadd.f32 %v3969_v55, %v3965_v40 }
0x1971   :  { %6653 = vtanh.f32 %v3971_v5 }
0x1972   :  { %v966_v33 = vpop.permute.xlu1 %965 }
0x1973   :  { %971 = vst.msk [vmem:[#allocation2 + $0x1] sm:$0x1] %vm666_vm6, %v966_v33 }
0x1976   :  { %v1578_v17 = vpop.permute.xlu1 %1577 }
0x1977   :  { %1583 = vst.msk [vmem:[#allocation2 + $0x3] sm:$0x1] %vm666_vm6, %v1578_v17 }
0x197a   :  { %v2182_v13 = vpop.permute.xlu1 %2181 }
0x197b   :  { %v6654_v8 = vpop.eup %6653  ;;  %2187 = vst.msk [vmem:[#allocation2 + $0x5] sm:$0x1] %vm666_vm6, %v2182_v13 }
0x197c   :  { %v3973_v29 = vmul.f32 %v6654_v8, %v6652_v38 }
0x197e   :  { %v2792_v9 = vpop.permute.xlu1 %2791  ;;  %v3981_v45 = vrot.slane %v3973_v29, %v8065_v32  ;;  %4149 = vrot.lane.b32.xlu0 %v3973_v29, %s6966_s2 }
0x197f   :  { %2797 = vst.msk [vmem:[#allocation2 + $0x7] sm:$0x1] %vm666_vm6, %v2792_v9 }
0x1980   :  { %v3989_v15 = vrot.slane %v3981_v45, %v8065_v32  ;;  %v3982_v14 = vcombine.high %v3981_v45, %v3981_v45 }
0x1982   :  { %v968_v27 = vpop.permute.xlu1 %967  ;;  %v4000_v42 = vrot.slane %v3989_v15, %v7310_v35  ;;  %v3996_v44 = vrot.slane %v3982_v14, %v8065_v32 }
0x1983   :  { %972 = vst.msk [vmem:[#allocation2 + $0x11] sm:$0x1] %vm666_vm6, %v968_v27 }
0x1984   :  { %4005 = vrot.lane.b32.xlu1 %v4000_v42, %s6966_s2  ;;  %v4004_v61 = vrot.slane %v3996_v44, %v7310_v35 }
0x1986   :  { %v1580_v39 = vpop.permute.xlu1 %1579  ;;  %v4013_v56 = vld [vmem:[#allocation2] sm:$0xff] }
0x1987   :  { %1584 = vst.msk [vmem:[#allocation2 + $0x13] sm:$0x1] %vm666_vm6, %v1580_v39  ;;  %v4021_v47 = vcombine.high %v4013_v56, %v4013_v56 }
0x1988   :  { %4007 = vrot.lane.b32.xlu1 %v4004_v61, %s6966_s2 }
0x1989   :  { %v4038_v6 = vcombine.low %v4013_v56, %v4021_v47 }
0x198a   :  { %v2184_v24 = vpop.permute.xlu1 %2183 }
0x198b   :  { %2188 = vst.msk [vmem:[#allocation2 + $0x15] sm:$0x1] %vm666_vm6, %v2184_v24  ;;  %5483 = vmatmul.mubr.msk.f32.vlgmr.msra.gmra.mrb[28].mxu0 %vm373_vm2, %v4038_v6 }
0x198c   :  { %6149 = vmatpush3.bf16.msra.mxu0 %v6148_v62  ;;  %5485 = vmatprep.mubr.msk.f32.mxu0 %vm6969_vm7, %v8635_v57 }
0x198d   :  { %6150 = vmatprep.subr.bf16.mxu0 %v6968_v0 }
0x198e   :  { %v2794_v30 = vpop.permute.xlu1 %2793 }
0x198f   :  { %2798 = vst.msk [vmem:[#allocation2 + $0x17] sm:$0x1] %vm666_vm6, %v2794_v30 }
0x1990   :  { %6152 = vmatpush3.bf16.msra.mxu0 %v6151_v21 }
0x1991   :  { %6153 = vmatprep.subr.bf16.mxu0 %v6968_v0 }
0x1992   :  { %v3396_v54 = vpop.permute.xlu1 %3395 }
0x1993   :  { %3401 = vst.msk [vmem:[#allocation2 + $0x9] sm:$0x1] %vm666_vm6, %v3396_v54 }
0x1994   :  { %6155 = vmatpush3.bf16.msra.mxu0 %v6154_v31 }
0x1995   :  { %6156 = vmatprep.subr.bf16.mxu0 %v6968_v0 }
0x1996   :  { %v3398_v12 = vpop.permute.xlu1 %3397  ;;  %v4015_v58 = vld [vmem:[#allocation2 + $0x10] sm:$0xff] }
0x1997   :  { %3402 = vst.msk [vmem:[#allocation2 + $0x19] sm:$0x1] %vm666_vm6, %v3398_v12  ;;  %v4022_v53 = vcombine.high %v4015_v58, %v4015_v58 }
0x1998   :  { %6158 = vmatpush3.bf16.msra.mxu0 %v6157_v59 }
0x1999   :  { %6171 = vmatprep.subr.bf16.mxu0 %v6968_v0 }
0x19f0   :  { %v4150_v36 = vpop.permute.xlu0 %4149 }
0x19f6   :  { %v4006_v52 = vpop.permute.xlu1 %4005 }
0x19f7   :  { %4011 = vst.msk [vmem:[#allocation2 + $0xb] sm:$0x1] %vm666_vm6, %v4006_v52 }
0x19fa   :  { %v4008_v18 = vpop.permute.xlu1 %4007 }
0x19fb   :  { %4012 = vst.msk [vmem:[#allocation2 + $0x1b] sm:$0x1] %vm666_vm6, %v4008_v18 }
0x19fe   :  { %v4014_v60 = vld [vmem:[#allocation2 + $0x8] sm:$0xf] }
0x19ff   :  { %v4039_v49 = vcombine.low %v4014_v60, %v4015_v58 }
0x1a01   :  { %5486 = vmatmul.mubr.msk.f32.gmra.mrb[30].mxu0 %vm373_vm2, %v4039_v49 }
0x1a02   :  { %5488 = vmatprep.mubr.msk.f32.mxu0 %vm6969_vm7, %v8635_v57  ;;  %v4016_v63 = vld [vmem:[#allocation2 + $0x18] sm:$0xf] }
0x1a03   :  { %v4040_v11 = vcombine.low %v4022_v53, %v4016_v63 }
0x1a05   :  { %5489 = vmatmul.mubr.msk.f32.gmra.mrb[32].mxu0 %vm373_vm2, %v4040_v11  ;;  %v8636_v11 = vlaneseq }
0x1a06   :  { %5507 = vmatprep.mubr.msk.f32.mxu0 %vm6969_vm7, %v8635_v57 }
0x1a09   :  { %5508 = vmatmul.mubr.msk.f32.vlgmr.msra.gmra.mrb[34].mxu0 %vm373_vm2, %v4150_v36  ;;  %v4287_v36 = vand.u32 127, %v8636_v11 }
0x1a0a   :  { %5545 = vmatprep.mubr.msk.f32.mxu0 %vm6969_vm7, %v8635_v57 }
0x1a5e   :  { %v4113_v51 = vpop.f32.mrb[28].mxu0 }
0x1a5f   :  { %v5484_v16 = vpop.f32.mrb[29].mxu0  ;;  %v4114_v25 = vadd.f32 %v5411_v26, %v4113_v51 }
0x1a61   :  { %v4130_v40 = vcombine.high %v4114_v25, %v4114_v25 }
0x1a63   :  { %v8239_v33 = vcombine.low %v4114_v25, %v4130_v40 }
0x1ad4   :  { %v4118_v41 = vpop.f32.mrb[30].mxu0 }
0x1ad5   :  { %v5487_v7 = vpop.f32.mrb[31].mxu0  ;;  %v8241_v17 = vadd.f32 %v5411_v26, %v4118_v41  ;;  %v4292_v41 = vadd.s32 4294967288, %v4287_v36 }
0x1ad7   :  { %v4131_v15 = vcombine.high %v8241_v17, %v8241_v17 }
0x1ad8   :  { %v4123_v20 = vpop.f32.mrb[32].mxu0 }
0x1ad9   :  { %v5490_v28 = vpop.f32.mrb[33].mxu0  ;;  %v4124_v45 = vadd.f32 %v5411_v26, %v4123_v20  ;;  %v8286_v20 = vsub.s32 %v4292_v41, %v7307_v34 }
0x1adb   :  { %v8258_v27 = vcombine.high %v4124_v45, %v4124_v45  ;;  %v8260_v42 = vcombine.low %v4131_v15, %v4124_v45 }
0x1adc   :  { %v4219_v19 = vpop.f32.mrb[34].mxu0 }
0x1add   :  { %v4220_v10 = vadd.f32 %v5415_v48, %v4219_v19  ;;  %v5509_v50 = vpop.f32.mrb[35].mxu0  ;;  %v8291_v48 = vsub.s32 %v4287_v36, %v7307_v34 }
0x1adf   :  { %v4230_v55 = vrot.slane %v4220_v10, %v8065_v32 }
0x1ae1   :  { %v4238_v5 = vrot.slane %v4230_v55, %v8065_v32  ;;  %v4231_v13 = vcombine.high %v4230_v55, %v4230_v55 }
0x1ae3   :  { %v4249_v38 = vrot.slane %v4238_v5, %v7310_v35  ;;  %v4245_v9 = vrot.slane %v4231_v13, %v8065_v32 }
0x1ae5   :  { %v8245_v8 = vmul.f32 %v4249_v38, %v8241_v17  ;;  %v8248_v29 = vmul.f32 %v8239_v33, %v4249_v38  ;;  %v4253_v14 = vrot.slane %v4245_v9, %v7310_v35 }
0x1ae7   :  { %4452 = vrot.lane.b32.xlu0 %v8245_v8, %s6970_s7  ;;  %4450 = vrot.lane.b32.xlu1 %v8248_v29, %s6970_s7  ;;  %v4263_v32 = vmul.f32 %v4253_v14, %v8258_v27  ;;  %v4262_v44 = vmul.f32 %v8260_v42, %v4253_v14  ;;  %v4269_v58 = vsel %vm4268_vm8, %v8245_v8, 0.0  ;;  %v4265_v49 = vsel %vm4264_vm9, %v8248_v29, 0.0 }
0x1ae9   :  { %v4275_v53 = vsel %vm4268_vm8, %v4263_v32, 0.0  ;;  %v4272_v63 = vsel %vm4264_vm9, %v4262_v44, 0.0 }
0x1aeb   :  { %4639 = vrot.lane.b32.xlu0 %v8245_v8, %s6971_s24  ;;  %4637 = vrot.lane.b32.xlu1 %v8248_v29, %s6971_s24 }
0x1aef   :  { %4826 = vrot.lane.b32.xlu0 %v8245_v8, %s6972_s28  ;;  %4824 = vrot.lane.b32.xlu1 %v8248_v29, %s6972_s28 }
0x1af3   :  { %4456 = vrot.lane.b32.xlu0 %v4263_v32, %s6970_s7  ;;  %4454 = vrot.lane.b32.xlu1 %v4262_v44, %s6970_s7 }
0x1af7   :  { %4643 = vrot.lane.b32.xlu0 %v4263_v32, %s6971_s24  ;;  %4641 = vrot.lane.b32.xlu1 %v4262_v44, %s6971_s24 }
0x1afb   :  { %4830 = vrot.lane.b32.xlu0 %v4263_v32, %s6972_s28  ;;  %4828 = vrot.lane.b32.xlu1 %v4262_v44, %s6972_s28 }
0x1b59   :  { %v4453_v1 = vpop.permute.xlu0 %4452  ;;  %v4451_v23 = vpop.permute.xlu1 %4450 }
0x1b5a   :  { %v4465_v39 = vsel %vm4268_vm8, %v4453_v1, 0.0  ;;  %v4462_v61 = vsel %vm4264_vm9, %v4451_v23, 0.0 }
0x1b5b   :  { %4466 = vadd.xlane.f32.xlu0 %v4465_v39  ;;  %4463 = vadd.xlane.f32.xlu1 %v4462_v61 }
0x1b5d   :  { %v4640_v56 = vpop.permute.xlu0 %4639  ;;  %v4638_v47 = vpop.permute.xlu1 %4637 }
0x1b5e   :  { %v4652_v62 = vsel %vm4268_vm8, %v4640_v56, 0.0  ;;  %v4649_v6 = vsel %vm4264_vm9, %v4638_v47, 0.0 }
0x1b5f   :  { %4650 = vadd.xlane.f32.xlu0 %v4649_v6  ;;  %4653 = vadd.xlane.f32.xlu1 %v4652_v62 }
0x1b61   :  { %v4827_v4 = vpop.permute.xlu0 %4826  ;;  %v4825_v3 = vpop.permute.xlu1 %4824 }
0x1b62   :  { %v4839_v24 = vsel %vm4268_vm8, %v4827_v4, 0.0  ;;  %v4836_v21 = vsel %vm4264_vm9, %v4825_v3, 0.0 }
0x1b63   :  { %4837 = vadd.xlane.f32.xlu0 %v4836_v21  ;;  %4840 = vadd.xlane.f32.xlu1 %v4839_v24 }
0x1b65   :  { %v4457_v22 = vpop.permute.xlu0 %4456  ;;  %v4455_v2 = vpop.permute.xlu1 %4454 }
0x1b66   :  { %v4471_v30 = vsel %vm4268_vm8, %v4457_v22, 0.0  ;;  %v4468_v31 = vsel %vm4264_vm9, %v4455_v2, 0.0 }
0x1b67   :  { %4472 = vadd.xlane.f32.xlu1 %v4471_v30  ;;  %4469 = vadd.xlane.f32.xlu0 %v4468_v31 }
0x1b69   :  { %v4644_v43 = vpop.permute.xlu0 %4643  ;;  %v4642_v46 = vpop.permute.xlu1 %4641 }
0x1b6a   :  { %v4658_v54 = vsel %vm4268_vm8, %v4644_v43, 0.0  ;;  %v4655_v59 = vsel %vm4264_vm9, %v4642_v46, 0.0 }
0x1b6b   :  { %4659 = vadd.xlane.f32.xlu1 %v4658_v54  ;;  %4656 = vadd.xlane.f32.xlu0 %v4655_v59 }
0x1b6d   :  { %v4831_v12 = vpop.permute.xlu0 %4830  ;;  %v4829_v52 = vpop.permute.xlu1 %4828 }
0x1b6e   :  { %v4845_v18 = vsel %vm4268_vm8, %v4831_v12, 0.0  ;;  %v4842_v60 = vsel %vm4264_vm9, %v4829_v52, 0.0 }
0x1b6f   :  { %4846 = vadd.xlane.f32.xlu1 %v4845_v18  ;;  %4843 = vadd.xlane.f32.xlu0 %v4842_v60 }
0x1b73   :  { %4270 = vadd.xlane.f32.xlu1 %v4269_v58  ;;  %4266 = vadd.xlane.f32.xlu0 %v4265_v49 }
0x1b77   :  { %4276 = vadd.xlane.f32.xlu1 %v4275_v53  ;;  %4273 = vadd.xlane.f32.xlu0 %v4272_v63 }
0x1be8   :  { %v4467_v51 = vpop.xlane.xlu0 %4466  ;;  %v4464_v16 = vpop.xlane.xlu1 %4463 }
0x1be9   :  { %v8288_v28 = vmul.f32 0.25, %v4467_v51  ;;  %v8293_v25 = vmul.f32 0.25, %v4464_v16 }
0x1beb   :  { %v4489_v50 = vrot.slane %v8288_v28, %v8286_v20  ;;  %v4485_v40 = vrot.slane %v8293_v25, %v8291_v48 }
0x1bec   :  { %v4651_v7 = vpop.xlane.xlu0 %4650  ;;  %v4654_v26 = vpop.xlane.xlu1 %4653 }
0x1bed   :  { %v8299_v55 = vmul.f32 0.25, %v4651_v7  ;;  %v8301_v5 = vmul.f32 0.25, %v4654_v26  ;;  %v4490_v1 = vsel %vm4297_vm10, %v4489_v50, %v4485_v40 }
0x1bef   :  { %v4672_v45 = vrot.slane %v8299_v55, %v8291_v48  ;;  %v4676_v15 = vrot.slane %v8301_v5, %v8286_v20 }
0x1bf0   :  { %v4838_v19 = vpop.xlane.xlu0 %4837  ;;  %v4841_v10 = vpop.xlane.xlu1 %4840 }
0x1bf1   :  { %v8315_v14 = vmul.f32 0.25, %v4838_v19  ;;  %v8318_v23 = vmul.f32 0.25, %v4841_v10  ;;  %v4677_v22 = vsel %vm4297_vm10, %v4676_v15, %v4672_v45 }
0x1bf3   :  { %v4859_v3 = vrot.slane %v8315_v14, %v8291_v48  ;;  %v4863_v2 = vrot.slane %v8318_v23, %v8286_v20 }
0x1bf4   :  { %v4470_v38 = vpop.xlane.xlu0 %4469  ;;  %v4473_v13 = vpop.xlane.xlu1 %4472 }
0x1bf5   :  { %v8303_v8 = vmul.f32 0.25, %v4470_v38  ;;  %v8305_v34 = vmul.f32 0.25, %v4473_v13  ;;  %v4864_v49 = vsel %vm4297_vm10, %v4863_v2, %v4859_v3 }
0x1bf7   :  { %v4494_v29 = vrot.slane %v8303_v8, %v8291_v48  ;;  %v4498_v9 = vrot.slane %v8305_v34, %v8286_v20 }
0x1bf8   :  { %v4657_v32 = vpop.xlane.xlu0 %4656  ;;  %v4660_v44 = vpop.xlane.xlu1 %4659 }
0x1bf9   :  { %v8320_v39 = vmul.f32 0.25, %v4657_v32  ;;  %v8322_v61 = vmul.f32 0.25, %v4660_v44  ;;  %v4499_v56 = vsel %vm4297_vm10, %v4498_v9, %v4494_v29  ;;  %v6973_v29 = vmov 0  }
0x1bfa   :  { %v4500_v47 = vsel %vm532_vm1, %v4499_v56, %v4490_v1  ;;  %6216 = vset.pattern.permute.xlu1 %v6973_v29  ;;  %6215 = vset.pattern.permute.xlu0 %v6973_v29 }
0x1bfb   :  { %v4681_v62 = vrot.slane %v8320_v39, %v8291_v48  ;;  %v4685_v6 = vrot.slane %v8322_v61, %v8286_v20  ;;  %v4502_v4 = vsel %vm4310_vm11, %v4500_v47, -inf }
0x1bfc   :  { %v4844_v24 = vpop.xlane.xlu0 %4843  ;;  %v4847_v21 = vpop.xlane.xlu1 %4846  ;;  %4503 = vmax.xlane.f32.xlu0 %v4502_v4 }
0x1bfd   :  { %v8336_v30 = vmul.f32 0.25, %v4844_v24  ;;  %v4851_v31 = vmul.f32 0.25, %v4847_v21  ;;  %v4686_v43 = vsel %vm4297_vm10, %v4685_v6, %v4681_v62 }
0x1bfe   :  { %v4687_v46 = vsel %vm532_vm1, %v4686_v43, %v4677_v22 }
0x1bff   :  { %v4868_v54 = vrot.slane %v8336_v30, %v8291_v48  ;;  %v4872_v59 = vrot.slane %v4851_v31, %v8286_v20  ;;  %v4689_v12 = vsel %vm4310_vm11, %v4687_v46, -inf }
0x1c00   :  { %v4267_v52 = vpop.xlane.xlu0 %4266  ;;  %4690 = vmax.xlane.f32.xlu1 %v4689_v12  ;;  %v4271_v18 = vpop.xlane.xlu1 %4270 }
0x1c01   :  { %v8344_v60 = vmul.f32 0.25, %v4267_v52  ;;  %v8346_v58 = vmul.f32 0.25, %v4271_v18  ;;  %v4873_v53 = vsel %vm4297_vm10, %v4872_v59, %v4868_v54 }
0x1c02   :  { %v4874_v63 = vsel %vm532_vm1, %v4873_v53, %v4864_v49 }
0x1c03   :  { %v4876_v11 = vsel %vm4310_vm11, %v4874_v63, -inf  ;;  %v4291_v16 = vrot.slane %v8344_v60, %v8291_v48  ;;  %v4296_v41 = vrot.slane %v8346_v58, %v8286_v20 }
0x1c04   :  { %v4277_v36 = vpop.xlane.xlu1 %4276  ;;  %4877 = vmax.xlane.f32.xlu0 %v4876_v11  ;;  %v4274_v51 = vpop.xlane.xlu0 %4273 }
0x1c05   :  { %v4281_v7 = vmul.f32 0.25, %v4277_v36  ;;  %v8356_v26 = vmul.f32 0.25, %v4274_v51  ;;  %v4298_v50 = vsel %vm4297_vm10, %v4296_v41, %v4291_v16 }
0x1c07   :  { %v4306_v19 = vrot.slane %v4281_v7, %v8286_v20  ;;  %v4302_v10 = vrot.slane %v8356_v26, %v8291_v48 }
0x1c09   :  { %v4307_v40 = vsel %vm4297_vm10, %v4306_v19, %v4302_v10 }
0x1c0a   :  { %v4308_v38 = vsel %vm532_vm1, %v4307_v40, %v4298_v50 }
0x1c0b   :  { %v4311_v13 = vsel %vm4310_vm11, %v4308_v38, -inf }
0x1c0c   :  { %4312 = vmax.xlane.f32.xlu1 %v4311_v13 }
0x1c89   :  { %v4504_v9 = vpop.xlane.xlu0 %4503 }
0x1c8a   :  { %v4509_v45 = vrot.slane %v4504_v9, %v7310_v35  ;;  %v4513_v15 = vrot.slane %v4504_v9, %v7313_v37 }
0x1c8c   :  { %v4516_v32 = vsub.f32 %v8293_v25, %v4509_v45  ;;  %v4517_v44 = vsub.f32 %v8288_v28, %v4509_v45  ;;  %v4518_v1 = vsub.f32 %v8303_v8, %v4513_v15  ;;  %v4519_v6 = vsub.f32 %v8305_v34, %v4513_v15 }
0x1c8d   :  { %v4691_v56 = vpop.xlane.xlu1 %4690 }
0x1c8e   :  { %v4520_v47 = vmul.f32 1.442695, %v4516_v32  ;;  %v4522_v62 = vmul.f32 1.442695, %v4517_v44  ;;  %v4696_v4 = vrot.slane %v4691_v56, %v7310_v35  ;;  %v4524_v3 = vmul.f32 1.442695, %v4518_v1 }
0x1c8f   :  { %v4526_v25 = vmul.f32 1.442695, %v4519_v6  ;;  %v4700_v34 = vrot.slane %v4691_v56, %v7313_v37 }
0x1c90   :  { %6655 = vpow2.f32 %v4520_v47  ;;  %v4703_v28 = vsub.f32 %v8299_v55, %v4696_v4  ;;  %v4704_v46 = vsub.f32 %v8301_v5, %v4696_v4 }
0x1c91   :  { %6657 = vpow2.f32 %v4522_v62  ;;  %v4878_v24 = vpop.xlane.xlu0 %4877  ;;  %v4706_v51 = vsub.f32 %v8322_v61, %v4700_v34 }
0x1c92   :  { %v4883_v21 = vrot.slane %v4878_v24, %v7310_v35  ;;  %v4887_v22 = vrot.slane %v4878_v24, %v7313_v37  ;;  %6659 = vpow2.f32 %v4524_v3  ;;  %v4707_v54 = vmul.f32 1.442695, %v4703_v28 }
0x1c93   :  { %6661 = vpow2.f32 %v4526_v25 }
0x1c94   :  { %v4891_v8 = vsub.f32 %v8318_v23, %v4883_v21  ;;  %v4893_v2 = vsub.f32 %v4851_v31, %v4887_v22  ;;  %v4705_v23 = vsub.f32 %v8320_v39, %v4700_v34  ;;  %v4709_v31 = vmul.f32 1.442695, %v4704_v46 }
0x1c95   :  { %v4892_v61 = vsub.f32 %v8336_v30, %v4887_v22 }
0x1c96   :  { %v4896_v43 = vmul.f32 1.442695, %v4891_v8  ;;  %v4900_v59 = vmul.f32 1.442695, %v4893_v2  ;;  %v4711_v36 = vmul.f32 1.442695, %v4705_v23 }
0x1c98   :  { %6663 = vpow2.f32 %v4896_v43 }
0x1c99   :  { %v4313_v12 = vpop.xlane.xlu1 %4312  ;;  %6665 = vpow2.f32 %v4707_v54 }
0x1c9a   :  { %v8378_v52 = vpop.eup %6655  ;;  %v4318_v18 = vrot.slane %v4313_v12, %v7310_v35  ;;  %v4322_v55 = vrot.slane %v4313_v12, %v7313_v37  ;;  %6667 = vpow2.f32 %v4900_v59 }
0x1c9b   :  { %v8382_v49 = vpop.eup %6657  ;;  %4533 = vperm.xlu0 %6215, %v8378_v52   ;;  %6669 = vpow2.f32 %v4709_v31 }
0x1c9c   :  { %v4326_v5 = vsub.f32 %v8346_v58, %v4318_v18  ;;  %4536 = vperm.xlu1 %6216, %v8382_v49   ;;  %v4328_v53 = vsub.f32 %v4281_v7, %v4322_v55  ;;  %v8388_v11 = vpop.eup %6659  ;;  %v4713_v58 = vmul.f32 1.442695, %v4706_v51  ;;  %v4890_v7 = vsub.f32 %v8315_v14, %v4883_v21 }
0x1c9d   :  { %v8392_v39 = vpop.eup %6661  ;;  %v4898_v14 = vmul.f32 1.442695, %v4892_v61  ;;  %v4325_v13 = vsub.f32 %v8344_v60, %v4318_v18  ;;  %v4327_v30 = vsub.f32 %v8356_v26, %v4322_v55 }
0x1c9e   :  { %v4331_v63 = vmul.f32 1.442695, %v4326_v5  ;;  %v4335_v16 = vmul.f32 1.442695, %v4328_v53  ;;  %v4894_v50 = vmul.f32 1.442695, %v4890_v7 }
0x1c9f   :  { %v4329_v45 = vmul.f32 1.442695, %v4325_v13  ;;  %v4333_v32 = vmul.f32 1.442695, %v4327_v30 }
0x1ca0   :  { %4539 = vperm.xlu1 %6216, %v8388_v11   ;;  %6671 = vpow2.f32 %v4331_v63 }
0x1ca1   :  { %6673 = vpow2.f32 %v4711_v36 }
0x1ca2   :  { %v8394_v41 = vpop.eup %6663  ;;  %6675 = vpow2.f32 %v4335_v16 }
0x1ca3   :  { %4910 = vperm.xlu0 %6215, %v8394_v41   ;;  %v8399_v19 = vpop.eup %6665  ;;  %6677 = vpow2.f32 %v4713_v58 }
0x1ca4   :  { %4542 = vperm.xlu1 %6216, %v8392_v39   ;;  %v8401_v10 = vpop.eup %6667  ;;  %6679 = vpow2.f32 %v4894_v50 }
0x1ca5   :  { %v8406_v40 = vpop.eup %6669  ;;  %6681 = vpow2.f32 %v4898_v14 }
0x1ca6   :  { %6683 = vpow2.f32 %v4329_v45 }
0x1ca7   :  { %4916 = vperm.xlu0 %6215, %v8401_v10   ;;  %6685 = vpow2.f32 %v4333_v32 }
0x1ca8   :  { %4720 = vperm.xlu1 %6216, %v8399_v19  }
0x1caa   :  { %v8408_v38 = vpop.eup %6671 }
0x1cab   :  { %4345 = vperm.xlu0 %6215, %v8408_v38   ;;  %v8413_v29 = vpop.eup %6673 }
0x1cac   :  { %4723 = vperm.xlu1 %6216, %v8406_v40   ;;  %v8415_v9 = vpop.eup %6675 }
0x1cad   :  { %v8420_v15 = vpop.eup %6677 }
0x1cae   :  { %v8423_v44 = vpop.eup %6679 }
0x1caf   :  { %4351 = vperm.xlu0 %6215, %v8415_v9   ;;  %v8426_v60 = vpop.eup %6681 }
0x1cb0   :  { %4726 = vperm.xlu1 %6216, %v8413_v29   ;;  %v8429_v1 = vpop.eup %6683 }
0x1cb1   :  { %v8432_v26 = vpop.eup %6685 }
0x1cb4   :  { %4729 = vperm.xlu1 %6216, %v8420_v15  }
0x1cb8   :  { %4907 = vperm.xlu1 %6216, %v8423_v44  }
0x1cbc   :  { %4913 = vperm.xlu1 %6216, %v8426_v60  }
0x1cc0   :  { %4342 = vperm.xlu1 %6216, %v8429_v1  }
0x1cc4   :  { %4348 = vperm.xlu1 %6216, %v8432_v26  }
0x1d1a   :  { %v4534_v47 = vpop.permute.xlu0 %4533 }
0x1d1b   :  { %v4537_v56 = vpop.permute.xlu1 %4536  ;;  %v4547_v4 = vrot.slane %v4534_v47, %v8291_v48 }
0x1d1c   :  { %v4551_v6 = vrot.slane %v4537_v56, %v8286_v20 }
0x1d1e   :  { %v4552_v22 = vsel %vm4297_vm10, %v4551_v6, %v4547_v4 }
0x1d1f   :  { %v4540_v62 = vpop.permute.xlu1 %4539 }
0x1d20   :  { %v4556_v24 = vrot.slane %v4540_v62, %v8291_v48 }
0x1d22   :  { %v4911_v34 = vpop.permute.xlu0 %4910 }
0x1d23   :  { %v4543_v3 = vpop.permute.xlu1 %4542  ;;  %v4925_v7 = vrot.slane %v4911_v34, %v8286_v20 }
0x1d24   :  { %v4560_v21 = vrot.slane %v4543_v3, %v8286_v20 }
0x1d26   :  { %v4561_v25 = vsel %vm4297_vm10, %v4560_v21, %v4556_v24  ;;  %v4917_v23 = vpop.permute.xlu0 %4916 }
0x1d27   :  { %v4721_v28 = vpop.permute.xlu1 %4720  ;;  %v4562_v8 = vsel %vm532_vm1, %v4561_v25, %v4552_v22  ;;  %v4934_v61 = vrot.slane %v4917_v23, %v8286_v20 }
0x1d28   :  { %v4564_v2 = vsel %vm4310_vm11, %v4562_v8, 0.0  ;;  %v4734_v12 = vrot.slane %v4721_v28, %v8291_v48 }
0x1d29   :  { %4565 = vadd.xlane.f32.xlu1 %v4564_v2 }
0x1d2a   :  { %v4346_v16 = vpop.permute.xlu0 %4345 }
0x1d2b   :  { %v4724_v43 = vpop.permute.xlu1 %4723  ;;  %v4360_v6 = vrot.slane %v4346_v16, %v8286_v20 }
0x1d2c   :  { %v4738_v54 = vrot.slane %v4724_v43, %v8286_v20 }
0x1d2e   :  { %v4739_v31 = vsel %vm4297_vm10, %v4738_v54, %v4734_v12  ;;  %v4352_v56 = vpop.permute.xlu0 %4351 }
0x1d2f   :  { %v4727_v46 = vpop.permute.xlu1 %4726  ;;  %v4369_v4 = vrot.slane %v4352_v56, %v8286_v20 }
0x1d30   :  { %v4743_v18 = vrot.slane %v4727_v46, %v8291_v48 }
0x1d33   :  { %v4730_v59 = vpop.permute.xlu1 %4729 }
0x1d34   :  { %v4747_v55 = vrot.slane %v4730_v59, %v8286_v20 }
0x1d36   :  { %v4748_v5 = vsel %vm4297_vm10, %v4747_v55, %v4743_v18 }
0x1d37   :  { %v4908_v53 = vpop.permute.xlu1 %4907  ;;  %v4749_v63 = vsel %vm532_vm1, %v4748_v5, %v4739_v31 }
0x1d38   :  { %v4751_v36 = vsel %vm4310_vm11, %v4749_v63, 0.0  ;;  %v4921_v51 = vrot.slane %v4908_v53, %v8291_v48 }
0x1d39   :  { %4752 = vadd.xlane.f32.xlu0 %v4751_v36 }
0x1d3a   :  { %v4926_v14 = vsel %vm4297_vm10, %v4925_v7, %v4921_v51 }
0x1d3b   :  { %v4914_v58 = vpop.permute.xlu1 %4913 }
0x1d3c   :  { %v4930_v50 = vrot.slane %v4914_v58, %v8291_v48 }
0x1d3e   :  { %v4935_v13 = vsel %vm4297_vm10, %v4934_v61, %v4930_v50 }
0x1d3f   :  { %v4343_v30 = vpop.permute.xlu1 %4342  ;;  %v4936_v45 = vsel %vm532_vm1, %v4935_v13, %v4926_v14 }
0x1d40   :  { %v4938_v32 = vsel %vm4310_vm11, %v4936_v45, 0.0  ;;  %v4356_v47 = vrot.slane %v4343_v30, %v8291_v48 }
0x1d41   :  { %4939 = vadd.xlane.f32.xlu0 %v4938_v32 }
0x1d42   :  { %v4361_v24 = vsel %vm4297_vm10, %v4360_v6, %v4356_v47 }
0x1d43   :  { %v4349_v62 = vpop.permute.xlu1 %4348 }
0x1d44   :  { %v4365_v3 = vrot.slane %v4349_v62, %v8291_v48 }
0x1d46   :  { %v4370_v21 = vsel %vm4297_vm10, %v4369_v4, %v4365_v3 }
0x1d47   :  { %v4371_v22 = vsel %vm532_vm1, %v4370_v21, %v4361_v24 }
0x1d48   :  { %v4373_v25 = vsel %vm4310_vm11, %v4371_v22, 0.0 }
0x1d49   :  { %4374 = vadd.xlane.f32.xlu1 %v4373_v25 }
0x1d57   :  { %4605 = vrot.lane.b32.xlu0 %v8241_v17, %s6974_s0 }
0x1d5a   :  { %4603 = vrot.lane.b32.xlu1 %v8239_v33, %s6974_s0 }
0x1d5b   :  { %4609 = vrot.lane.b32.xlu0 %v8258_v27, %s6974_s0 }
0x1d5e   :  { %4607 = vrot.lane.b32.xlu1 %v8260_v42, %s6974_s0 }
0x1d5f   :  { %4792 = vrot.lane.b32.xlu0 %v8241_v17, %s6975_s11 }
0x1d62   :  { %4790 = vrot.lane.b32.xlu1 %v8239_v33, %s6975_s11 }
0x1d63   :  { %4796 = vrot.lane.b32.xlu0 %v8258_v27, %s6975_s11 }
0x1d66   :  { %4794 = vrot.lane.b32.xlu1 %v8260_v42, %s6975_s11 }
0x1db6   :  { %v4566_v20 = vpop.xlane.xlu1 %4565 }
0x1db7   :  { %6687 = vrcp.f32 %v4566_v20 }
0x1dc1   :  { %v6688_v48 = vpop.eup %6687 }
0x1dc2   :  { %v4572_v28 = vrot.slane %v6688_v48, %v7310_v35  ;;  %v4576_v43 = vrot.slane %v6688_v48, %v7313_v37 }
0x1dc4   :  { %v4579_v8 = vmul.f32 %v8378_v52, %v4572_v28  ;;  %v4580_v2 = vmul.f32 %v8382_v49, %v4572_v28  ;;  %v4582_v46 = vmul.f32 %v8392_v39, %v4576_v43  ;;  %v4581_v54 = vmul.f32 %v8388_v11, %v4576_v43 }
0x1dc6   :  { %4585 = vperm.xlu0 %6215, %v4579_v8   ;;  %4590 = vperm.xlu1 %6216, %v4580_v2   ;;  %v4753_v34 = vpop.xlane.xlu0 %4752 }
0x1dc7   :  { %6689 = vrcp.f32 %v4753_v34 }
0x1dca   :  { %4600 = vperm.xlu0 %6215, %v4582_v46   ;;  %4595 = vperm.xlu1 %6216, %v4581_v54  }
0x1dce   :  { %v4940_v59 = vpop.xlane.xlu0 %4939 }
0x1dcf   :  { %6691 = vrcp.f32 %v4940_v59 }
0x1dd1   :  { %v6690_v12 = vpop.eup %6689 }
0x1dd2   :  { %v4759_v18 = vrot.slane %v6690_v12, %v7310_v35  ;;  %v4763_v55 = vrot.slane %v6690_v12, %v7313_v37 }
0x1dd4   :  { %v4767_v52 = vmul.f32 %v8406_v40, %v4759_v18  ;;  %v4766_v49 = vmul.f32 %v8399_v19, %v4759_v18  ;;  %v4769_v39 = vmul.f32 %v8420_v15, %v4763_v55  ;;  %v4768_v11 = vmul.f32 %v8413_v29, %v4763_v55 }
0x1dd6   :  { %4777 = vperm.xlu0 %6215, %v4767_v52   ;;  %4772 = vperm.xlu1 %6216, %v4766_v49   ;;  %v4375_v23 = vpop.xlane.xlu1 %4374 }
0x1dd7   :  { %6693 = vrcp.f32 %v4375_v23 }
0x1dd9   :  { %v6692_v31 = vpop.eup %6691 }
0x1dda   :  { %4787 = vperm.xlu0 %6215, %v4769_v39   ;;  %4782 = vperm.xlu1 %6216, %v4768_v11   ;;  %v4946_v5 = vrot.slane %v6692_v31, %v7310_v35  ;;  %v4950_v19 = vrot.slane %v6692_v31, %v7313_v37 }
0x1ddc   :  { %v4954_v53 = vmul.f32 %v8394_v41, %v4946_v5  ;;  %v4953_v40 = vmul.f32 %v8423_v44, %v4946_v5  ;;  %v4956_v63 = vmul.f32 %v8401_v10, %v4950_v19  ;;  %v4955_v15 = vmul.f32 %v8426_v60, %v4950_v19 }
0x1dde   :  { %4964 = vperm.xlu0 %6215, %v4954_v53   ;;  %4959 = vperm.xlu1 %6216, %v4953_v40  }
0x1de1   :  { %v6694_v29 = vpop.eup %6693 }
0x1de2   :  { %4974 = vperm.xlu0 %6215, %v4956_v63   ;;  %4969 = vperm.xlu1 %6216, %v4955_v15   ;;  %v4381_v41 = vrot.slane %v6694_v29, %v7310_v35  ;;  %v4385_v60 = vrot.slane %v6694_v29, %v7313_v37  ;;  %v4606_v35 = vpop.permute.xlu0 %4605  ;;  %v4604_v37 = vpop.permute.xlu1 %4603  ;;  %v5038_v29 = vld [vmem:[#allocation15] sm:$0xff] }
0x1de4   :  { %v4389_v10 = vmul.f32 %v8408_v38, %v4381_v41  ;;  %v4388_v44 = vmul.f32 %v8429_v1, %v4381_v41  ;;  %v4391_v36 = vmul.f32 %v8415_v9, %v4385_v60  ;;  %v4390_v51 = vmul.f32 %v8432_v26, %v4385_v60  ;;  %v5039_v41 = vld [vmem:[#allocation15 + $0x8] sm:$0xff]  ;;  %v5041_v60 = vld [vmem:[#allocation15 + $0x18] sm:$0xff] }
0x1de6   :  { %4979 = vrot.lane.b32.xlu0 %v8241_v17, %s6960_s27  ;;  %4977 = vrot.lane.b32.xlu1 %v8239_v33, %s6960_s27  ;;  %v4610_v38 = vpop.permute.xlu0 %4609  ;;  %v4608_v9 = vpop.permute.xlu1 %4607 }
0x1dea   :  { %4983 = vrot.lane.b32.xlu0 %v8258_v27, %s6960_s27  ;;  %4981 = vrot.lane.b32.xlu1 %v8260_v42, %s6960_s27  ;;  %v4793_v1 = vpop.permute.xlu0 %4792  ;;  %v4791_v26 = vpop.permute.xlu1 %4790 }
0x1dee   :  { %4399 = vperm.xlu0 %6215, %v4389_v10   ;;  %4394 = vperm.xlu1 %6216, %v4388_v44   ;;  %v4797_v16 = vpop.permute.xlu0 %4796  ;;  %v4795_v58 = vpop.permute.xlu1 %4794  ;;  %v5040_v10 = vld [vmem:[#allocation15 + $0x10] sm:$0xff]  ;;  %v6160_v44 = vpack.c.bf16 %v5039_v41, %v5038_v29 }
0x1df0   :  { %6161 = vmatpush3.bf16.msra.mxu1 %v6160_v44 }
0x1df1   :  { %6162 = vmatprep.subr.bf16.mxu1 %v6968_v0 }
0x1df2   :  { %4409 = vperm.xlu0 %6215, %v4391_v36   ;;  %4404 = vperm.xlu1 %6216, %v4390_v51  }
0x1df6   :  { %4414 = vrot.lane.b32.xlu0 %v8241_v17, %s6966_s2  ;;  %4412 = vrot.lane.b32.xlu1 %v8239_v33, %s6966_s2 }
0x1dfa   :  { %4418 = vrot.lane.b32.xlu0 %v8258_v27, %s6966_s2  ;;  %4416 = vrot.lane.b32.xlu1 %v8260_v42, %s6966_s2 }
0x1e45   :  { %v4591_v7 = vpop.permute.xlu1 %4590  ;;  %v4586_v61 = vpop.permute.xlu0 %4585 }
0x1e46   :  { %v4616_v17 = vmul.f32 %v4606_v35, %v4591_v7  ;;  %v4615_v50 = vmul.f32 %v4604_v37, %v4586_v61 }
0x1e48   :  { %v4620_v33 = vsel %vm4268_vm8, %v4616_v17, 0.0  ;;  %v4619_v14 = vsel %vm4264_vm9, %v4615_v50, 0.0 }
0x1e49   :  { %v4621_v27 = vadd.f32 %v4620_v33, %v4619_v14  ;;  %v4596_v13 = vpop.permute.xlu1 %4595  ;;  %v4601_v30 = vpop.permute.xlu0 %4600 }
0x1e4a   :  { %v4617_v42 = vmul.f32 %v4608_v9, %v4596_v13  ;;  %v4618_v45 = vmul.f32 %v4610_v38, %v4601_v30  ;;  %v6163_v38 = vpack.c.bf16 %v5041_v60, %v5040_v10  ;;  %v5045_v13 = vld [vmem:[#allocation15 + $0x38] sm:$0xff] }
0x1e4b   :  { %v4622_v32 = vrot.slane %v4621_v27, 4 }
0x1e4c   :  { %v4628_v56 = vsel %vm4264_vm9, %v4617_v42, 0.0  ;;  %v4629_v47 = vsel %vm4268_vm8, %v4618_v45, 0.0  ;;  %6164 = vmatpush3.bf16.msra.mxu1 %v6163_v38 }
0x1e4d   :  { %v4623_v62 = vadd.f32 %v4622_v32, %v4621_v27  ;;  %v4630_v6 = vadd.f32 %v4629_v47, %v4628_v56  ;;  %6165 = vmatprep.subr.bf16.mxu1 %v6968_v0  ;;  %v5044_v27 = vld [vmem:[#allocation15 + $0x30] sm:$0xff] }
0x1e4f   :  { %v4624_v4 = vrot.slane %v4623_v62, 2  ;;  %v4631_v3 = vrot.slane %v4630_v6, 4 }
0x1e51   :  { %v4625_v24 = vadd.f32 %v4624_v4, %v4623_v62  ;;  %v4632_v21 = vadd.f32 %v4631_v3, %v4630_v6  ;;  %v6169_v3 = vpack.c.bf16 %v5045_v13, %v5044_v27 }
0x1e53   :  { %v4633_v22 = vrot.slane %v4632_v21, 2  ;;  %v4626_v28 = vrot.slane %v4625_v24, 1 }
0x1e55   :  { %v4634_v25 = vadd.f32 %v4633_v22, %v4632_v21  ;;  %v4773_v20 = vpop.permute.xlu1 %4772  ;;  %v4778_v48 = vpop.permute.xlu0 %4777  ;;  %v4627_v18 = vadd.f32 %v4626_v28, %v4625_v24 }
0x1e56   :  { %v4802_v8 = vmul.f32 %v4791_v26, %v4773_v20  ;;  %v4803_v2 = vmul.f32 %v4793_v1, %v4778_v48  ;;  %v5042_v1 = vld [vmem:[#allocation15 + $0x20] sm:$0xff]  ;;  %v5043_v26 = vld [vmem:[#allocation15 + $0x28] sm:$0xff] }
0x1e57   :  { %v4635_v43 = vrot.slane %v4634_v25, 1  ;;  %v6166_v33 = vpack.c.bf16 %v5043_v26, %v5042_v1 }
0x1e58   :  { %v4806_v34 = vsel %vm4264_vm9, %v4802_v8, 0.0  ;;  %v4807_v46 = vsel %vm4268_vm8, %v4803_v2, 0.0  ;;  %v5126_v2 = vld [vmem:[%s8624_s12] sm:$0xff] }
0x1e59   :  { %v4808_v54 = vadd.f32 %v4807_v46, %v4806_v34  ;;  %v4783_v59 = vpop.permute.xlu1 %4782  ;;  %v4788_v12 = vpop.permute.xlu0 %4787  ;;  %v4636_v52 = vadd.f32 %v4635_v43, %v4634_v25  ;;  %6167 = vmatpush3.bf16.msra.mxu1 %v6166_v33  ;;  %v5127_v43 = vld [vmem:[%s8624_s12 + $0x8] sm:$0xff]  ;;  %v5128_v34 = vld [vmem:[%s8624_s12 + $0x10] sm:$0xff] }
0x1e5a   :  { %v4804_v49 = vmul.f32 %v4795_v58, %v4783_v59  ;;  %v4805_v55 = vmul.f32 %v4797_v16, %v4788_v12  ;;  %6168 = vmatprep.subr.bf16.mxu1 %v6968_v0  ;;  %v6172_v59 = vpack.c.bf16 %v5127_v43, %v5126_v2  ;;  %v5129_v12 = vld [vmem:[%s8624_s12 + $0x18] sm:$0xff] }
0x1e5b   :  { %v4809_v23 = vrot.slane %v4808_v54, 4  ;;  %v5017_v39 = vsel %vm532_vm1, %v4636_v52, %v4627_v18  ;;  %v6175_v52 = vpack.c.bf16 %v5129_v12, %v5128_v34  ;;  %v5217_v34 = vld [vmem:[%s8626_s14 + $0x10] sm:$0xff] }
0x1e5c   :  { %v4815_v11 = vsel %vm4264_vm9, %v4804_v49, 0.0  ;;  %v4816_v31 = vsel %vm4268_vm8, %v4805_v55, 0.0  ;;  %5018 = vrot.lane.b32.xlu1 %v5017_v39, %s6960_s27  ;;  %6173 = vmatpush3.bf16.msra.mxu0 %v6172_v59  ;;  %v5130_v49 = vld [vmem:[%s8624_s12 + $0x20] sm:$0xff]  ;;  %v5131_v55 = vld [vmem:[%s8624_s12 + $0x28] sm:$0xff]  ;;  %v5419_v59 = vld [vmem:[#allocation18] ss:$0 sm:$0xff] }
0x1e5d   :  { %v4810_v5 = vadd.f32 %v4809_v23, %v4808_v54  ;;  %v4817_v53 = vadd.f32 %v4816_v31, %v4815_v11  ;;  %v4960_v40 = vpop.permute.xlu1 %4959  ;;  %v4965_v19 = vpop.permute.xlu0 %4964  ;;  %6170 = vmatpush3.bf16.msra.mxu1 %v6169_v3  ;;  %6174 = vmatprep.subr.bf16.mxu0 %v6968_v0  ;;  %v6178_v31 = vpack.c.bf16 %v5131_v55, %v5130_v49  ;;  %v5421_v49 = vld [vmem:[%s8627_s15] ss:$0 sm:$0xff] }
0x1e5e   :  { %6183 = vmatprep.subr.bf16.mxu1 %v6968_v0 }
0x1e5f   :  { %v4811_v63 = vrot.slane %v4810_v5, 2  ;;  %v4818_v15 = vrot.slane %v4817_v53, 4 }
0x1e60   :  { %6176 = vmatpush3.bf16.msra.mxu0 %v6175_v52 }
0x1e61   :  { %v4812_v36 = vadd.f32 %v4811_v63, %v4810_v5  ;;  %v4819_v51 = vadd.f32 %v4818_v15, %v4817_v53  ;;  %v4970_v35 = vpop.permute.xlu1 %4969  ;;  %v4975_v37 = vpop.permute.xlu0 %4974  ;;  %6177 = vmatprep.subr.bf16.mxu0 %v6968_v0 }
0x1e63   :  { %v4820_v9 = vrot.slane %v4819_v51, 2  ;;  %v4813_v16 = vrot.slane %v4812_v36, 1 }
0x1e64   :  { %6179 = vmatpush3.bf16.msra.mxu0 %v6178_v31 }
0x1e65   :  { %v4821_v58 = vadd.f32 %v4820_v9, %v4819_v51  ;;  %v4978_v7 = vpop.permute.xlu1 %4977  ;;  %v4980_v61 = vpop.permute.xlu0 %4979  ;;  %v4814_v47 = vadd.f32 %v4813_v16, %v4812_v36  ;;  %6180 = vmatprep.subr.bf16.mxu0 %v6968_v0 }
0x1e66   :  { %v4989_v17 = vmul.f32 %v4978_v7, %v4960_v40  ;;  %v4990_v50 = vmul.f32 %v4980_v61, %v4965_v19 }
0x1e67   :  { %v4822_v14 = vrot.slane %v4821_v58, 1 }
0x1e68   :  { %v4993_v30 = vsel %vm4264_vm9, %v4989_v17, 0.0  ;;  %v4994_v42 = vsel %vm4268_vm8, %v4990_v50, 0.0 }
0x1e69   :  { %v4995_v45 = vadd.f32 %v4994_v42, %v4993_v30  ;;  %v4982_v32 = vpop.permute.xlu1 %4981  ;;  %v4984_v56 = vpop.permute.xlu0 %4983  ;;  %v4823_v62 = vadd.f32 %v4822_v14, %v4821_v58 }
0x1e6a   :  { %v4991_v6 = vmul.f32 %v4982_v32, %v4970_v35  ;;  %v4992_v4 = vmul.f32 %v4984_v56, %v4975_v37 }
0x1e6b   :  { %v4996_v24 = vrot.slane %v4995_v45, 4  ;;  %v5023_v21 = vsel %vm532_vm1, %v4823_v62, %v4814_v47 }
0x1e6c   :  { %v5002_v22 = vsel %vm4264_vm9, %v4991_v6, 0.0  ;;  %v5003_v25 = vsel %vm4268_vm8, %v4992_v4, 0.0  ;;  %5024 = vrot.lane.b32.xlu0 %v5023_v21, %s6975_s11  ;;  %v5132_v21 = vld [vmem:[%s8624_s12 + $0x30] sm:$0xff] }
0x1e6d   :  { %v4997_v20 = vadd.f32 %v4996_v24, %v4995_v45  ;;  %v5004_v48 = vadd.f32 %v5003_v25, %v5002_v22  ;;  %v4395_v19 = vpop.permute.xlu1 %4394  ;;  %v4400_v63 = vpop.permute.xlu0 %4399  ;;  %v5133_v22 = vld [vmem:[%s8624_s12 + $0x38] sm:$0xff] }
0x1e6e   :  { %v6181_v25 = vpack.c.bf16 %v5133_v22, %v5132_v21 }
0x1e6f   :  { %v4998_v28 = vrot.slane %v4997_v20, 2  ;;  %v5005_v8 = vrot.slane %v5004_v48, 4 }
0x1e70   :  { %6182 = vmatpush3.bf16.msra.mxu0 %v6181_v25 }
0x1e71   :  { %v4999_v46 = vadd.f32 %v4998_v28, %v4997_v20  ;;  %v5006_v54 = vadd.f32 %v5005_v8, %v5004_v48  ;;  %v4405_v15 = vpop.permute.xlu1 %4404  ;;  %v4410_v29 = vpop.permute.xlu0 %4409  ;;  %v5215_v20 = vld [vmem:[%s8626_s14] sm:$0xff]  ;;  %v5216_v48 = vld [vmem:[%s8626_s14 + $0x8] sm:$0xff] }
0x1e72   :  { %v6184_v28 = vpack.c.bf16 %v5216_v48, %v5215_v20 }
0x1e73   :  { %v5007_v18 = vrot.slane %v5006_v54, 2  ;;  %v5000_v23 = vrot.slane %v4999_v46, 1 }
0x1e75   :  { %v5008_v39 = vadd.f32 %v5007_v18, %v5006_v54  ;;  %v5001_v5 = vadd.f32 %v5000_v23, %v4999_v46  ;;  %v4413_v41 = vpop.permute.xlu1 %4412  ;;  %v4415_v10 = vpop.permute.xlu0 %4414  ;;  %v5218_v46 = vld [vmem:[%s8626_s14 + $0x18] sm:$0xff] }
0x1e76   :  { %v4424_v35 = vmul.f32 %v4413_v41, %v4395_v19  ;;  %v4425_v37 = vmul.f32 %v4415_v10, %v4400_v63  ;;  %v6187_v54 = vpack.c.bf16 %v5218_v46, %v5217_v34 }
0x1e77   :  { %v5009_v11 = vrot.slane %v5008_v39, 1 }
0x1e78   :  { %v4428_v1 = vsel %vm4264_vm9, %v4424_v35, 0.0  ;;  %v4429_v26 = vsel %vm4268_vm8, %v4425_v37, 0.0 }
0x1e79   :  { %v5010_v53 = vadd.f32 %v5009_v11, %v5008_v39  ;;  %v4417_v44 = vpop.permute.xlu1 %4416  ;;  %v4419_v60 = vpop.permute.xlu0 %4418  ;;  %v4430_v58 = vadd.f32 %v4429_v26, %v4428_v1 }
0x1e7a   :  { %v4426_v36 = vmul.f32 %v4417_v44, %v4405_v15  ;;  %v4427_v51 = vmul.f32 %v4419_v60, %v4410_v29 }
0x1e7b   :  { %v5029_v40 = vsel %vm532_vm1, %v5010_v53, %v5001_v5  ;;  %v4431_v61 = vrot.slane %v4430_v58, 4 }
0x1e7c   :  { %5030 = vrot.lane.b32.xlu1 %v5029_v40, %s6974_s0  ;;  %v4437_v38 = vsel %vm4264_vm9, %v4426_v36, 0.0  ;;  %v4438_v9 = vsel %vm4268_vm8, %v4427_v51, 0.0  ;;  %s6976_s0 = smov [#allocation20]  }
0x1e7d   :  { %v4439_v16 = vadd.f32 %v4438_v9, %v4437_v38  ;;  %v4432_v50 = vadd.f32 %v4431_v61, %v4430_v58  ;;  %s5306_s11 = sshll.u32 %s6976_s0, 4  ;;  %s5307_s11 = int_to_ptr.vmem [resolvable:$true] %s5306_s11 }
0x1e7e   :  { %s6915_s14 = scalar_lea.vmem %s5307_s11, 32  ;;  %p6920_p11 = scmp.lt.s32.totalorder %s5307_s11, %s5307_s11 }
0x1e7f   :  { %v4440_v7 = vrot.slane %v4439_v16, 4  ;;  %v4433_v14 = vrot.slane %v4432_v50, 2  ;;  %p6916_p10 = scmp.ne.s32.totalorder %s5307_s11, %s6915_s14  ;;  %p6921_p12 = scmp.lt.s32.totalorder %s6915_s14, %s6915_s14 }
0x1e81   :  { %v4441_v17 = vadd.f32 %v4440_v7, %v4439_v16  ;;  %v4434_v13 = vadd.f32 %v4433_v14, %v4432_v50  ;;  %p6922_p13 = por %p6921_p12, %p6920_p11 }
0x1e83   :  { %v4442_v33 = vrot.slane %v4441_v17, 2  ;;  %v4435_v42 = vrot.slane %v4434_v13, 1  ;;  %p6923_p0 = pnand %p6922_p13, %p6916_p10 }
0x1e85   :  { %v4443_v27 = vadd.f32 %v4442_v33, %v4441_v17  ;;  %v4436_v56 = vadd.f32 %v4435_v42, %v4434_v13 }
0x1e87   :  { %v4444_v30 = vrot.slane %v4443_v27, 1 }
0x1e89   :  { %v4445_v45 = vadd.f32 %v4444_v30, %v4443_v27 }
0x1e8b   :  { %v5013_v62 = vsel %vm532_vm1, %v4445_v45, %v4436_v56 }
0x1ece   :  { %v5019_v32 = vpop.permute.xlu1 %5018 }
0x1ecf   :  { %v5033_v6 = vsel %vm4264_vm9, %v5013_v62, %v5019_v32 }
0x1ede   :  { %v5025_v47 = vpop.permute.xlu0 %5024 }
0x1edf   :  { %v5035_v4 = vsel %vm5034_vm12, %v5033_v6, %v5025_v47 }
0x1eee   :  { %v5031_v3 = vpop.permute.xlu1 %5030 }
0x1eef   :  { %v5037_v24 = vsel %vm5036_vm13, %v5035_v4, %v5031_v3 }
0x1ef0   :  { %5527 = vmatmul.mubr.msk.f32.vlgmr.msra.gmra.mrb[26].mxu1 %vm373_vm2, %v5037_v24 }
0x1ef1   :  { %5556 = vmatprep.mubr.msk.f32.mxu1 %vm6969_vm7, %v8635_v57  ;;  %6185 = vmatpush3.bf16.msra.mxu1 %v6184_v28  ;;  %v5417_v57 = vld [vmem:[#allocation17] ss:$0 sm:$0xff] }
0x1ef2   :  { %6186 = vmatprep.subr.bf16.mxu1 %v6968_v0 }
0x1ef5   :  { %6188 = vmatpush3.bf16.msra.mxu1 %v6187_v54 }
0x1fc3   :  { %v5122_v8 = vpop.f32.mrb[26].mxu1 }
0x1fc4   :  { %v5123_v2 = vadd.f32 %v5417_v57, %v5122_v8  ;;  %v5528_v43 = vpop.f32.mrb[27].mxu1 }
0x1fc6   :  { %5546 = vmatmul.mubr.msk.f32.vlgmr.msra.gmra.mrb[36].mxu0 %vm373_vm2, %v5123_v2 }
0x2099   :  { %v5210_v12 = vpop.f32.mrb[36].mxu0 }
0x209a   :  { %v5211_v18 = vadd.f32 %v5419_v59, %v5210_v12  ;;  %v5547_v0 = vpop.f32.mrb[37].mxu0 }
0x209c   :  { %v5214_v52 = vmax.f32 %v5211_v18, 0.0 }
0x209e   :  { %5557 = vmatmul.mubr.msk.f32.vlgmr.msra.gmra.mrb[28].mxu1 %vm5034_vm12, %v5214_v52 }
0x2171   :  { %v5295_v55 = vpop.f32.mrb[28].mxu1 }
0x2172   :  { %v5296_v23 = vadd.f32 %v5421_v49, %v5295_v55  ;;  %v5558_v39 = vpop.f32.mrb[29].mxu1 }
0x2174   :  { %5299 = vst [vmem:[#allocation20] sm:$0x3] %v5296_v23 }
0x2175   :  { %6926 = shalt.err (!%p6923_p0)
}
0x2176   :  { %s6927_s5 = scalar_lea.hbm %s8628_s16, 32 }
0x2177   :  { %p6928_p1 = scmp.ne.s32.totalorder %s8628_s16, %s6927_s5  ;;  %p6931_p2 = scmp.lt.u32.totalorder %s6927_s5, %s8628_s16 }
0x2179   :  { %p6933_p3 = pnand %p6931_p2, %p6928_p1 }
0x217b   :  { %6936 = shalt.err (!%p6933_p3)
}
0x217c   :  { %5309 = dma.vmem_to_hbm [thread:$0]  %s5307_s11, 32, %s8628_s16, [#allocation5]  }
0x217d   :  { %6949 = dma.done.wait [#allocation5], 32  }
0x217e   :  { %6950 = vsyncadd [#allocation5], 4294967264 }
0x217f   :  { %5313 = vsyncpa [#allocation4], 1 }
0x2180   :  { %5314 = vsyncpa [#allocation7], 1 }
0x2181   :  { %5315 = vsyncpa [#allocation10], 1 }
0x2182   :  { %5316 = vsyncpa [#allocation13], 1 }
0x2183   :  { %5317 = vsyncpa [#allocation16], 1 }
0x2184   :  { %5318 = vsyncpa [#allocation19], 1 }
0x2185   :  { %5319 = vsyncpa [#allocation5], 1 }

</bundles_post_ra>
